<compile_context>
chip_gen: v6e
topology: v6e:2x2x1
jax: 0.10.0
libtpu: 0.0.40
codegen_flags: <defaults>
</compile_context>

<pallas_src>
import functools

import jax
import jax.numpy as jnp
from jax.experimental import pallas as pl
from jax.experimental.pallas import tpu as pltpu

LN_EPS = 1e-5  # torch.nn.LayerNorm default eps


def _layernorm(x, g, b):
    m = jnp.mean(x, axis=-1, keepdims=True)
    v = jnp.mean((x - m) ** 2, axis=-1, keepdims=True)
    return (x - m) * jax.lax.rsqrt(v + LN_EPS) * g + b


def slot_attention_gmm_kernel(
    # static args (bound via functools.partial)
    num_slots, dim, hidden, iters, eps, scale,
    # batched inputs
    x_ref, noise_ref,
    # packed parameter slabs
    vec_ref,      # (14, D)    all D-wide vectors (see init_params row order)
    gbias_ref,    # (2, 3D)    GRU bih / bhh
    wbias_ref,    # (2, 2H)    [bm1 | pad], bo1
    wa_ref,       # (6, D, max(3D,H))  wq, wk, wv, wih, whh, wm1 (col-padded)
    wb_ref,       # (3, 2H, 2H)        wm2, wo1, wo2 (padded)
    # output
    out_ref,
):
    d, n_s, hd = dim, num_slots, hidden
    f32 = jnp.float32

    def vrow(i):                      # (1, D) parameter row
        return vec_ref[i:i + 1, :]

    # ---- per-batch preamble: norm_input, k/v projections (run once) ----
    x = x_ref[0]                                                    # (N, D)
    xn = _layernorm(x, vrow(4), vrow(5))
    k = jnp.dot(xn, wa_ref[1, :, :d], preferred_element_type=f32)   # (N, D)
    v = jnp.dot(xn, wa_ref[2, :, :d], preferred_element_type=f32)   # (N, D)

    # Constants reused every iteration (k, v never change):
    #   k2   = [ (k*k)^T ; k^T ]  -> Gaussian distance is ONE matmul per step
    #   vcat = [ v | v*v ]        -> attn@v and attn@(v*v) fuse into ONE matmul
    k2 = jnp.concatenate([(k * k).T, k.T], axis=0)                  # (2D, N)
    vcat = jnp.concatenate([v, v * v], axis=-1)                     # (N, 2D)

    # ---- slot initialization: mu + exp(logsigma) * noise ----
    slots_mu = vrow(0) + jnp.exp(vrow(2)) * noise_ref[0, 0]         # (S, D)
    slots_ls = vrow(1) + jnp.exp(vrow(3)) * noise_ref[0, 1]         # (S, D)
    pi = jnp.full((n_s, 1), 1.0 / n_s, dtype=f32)                   # (S, 1)

    # loop-invariant parameters (all slices start at lane/sublane offset 0)
    gs_mu, gs_ls = vrow(6), vrow(7)
    bs_mu, bs_ls = vrow(8), vrow(9)
    gmu, bmu = vrow(10), vrow(11)
    bm2 = vrow(12)
    wq = wa_ref[0, :, :d]
    wih = wa_ref[3, :, :3 * d]
    whh = wa_ref[4, :, :3 * d]
    wm1 = wa_ref[5, :, :hd]
    wm2 = wb_ref[0, :hd, :d]
    bih = gbias_ref[0:1, :]
    bhh = gbias_ref[1:2, :]
    bm1 = wbias_ref[0:1, :hd]

    def step(slots_mu, slots_ls, pi):
        # --- norm_slots: joint LayerNorm over concat([mu, ls], -1) ---
        mean = (jnp.sum(slots_mu, -1, keepdims=True)
                + jnp.sum(slots_ls, -1, keepdims=True)) * (0.5 / d)
        var = (jnp.sum((slots_mu - mean) ** 2, -1, keepdims=True)
               + jnp.sum((slots_ls - mean) ** 2, -1, keepdims=True)) * (0.5 / d)
        inv = jax.lax.rsqrt(var + LN_EPS)
        s_mu = (slots_mu - mean) * inv * gs_mu + bs_mu              # (S, D)
        s_ls = (slots_ls - mean) * inv * gs_ls + bs_ls              # (S, D)

        # --- fused queries (reference applies to_q to BOTH halves) ---
        q = jnp.dot(jnp.concatenate([s_mu, s_ls], axis=0), wq,
                    preferred_element_type=f32)                     # (2S, D)
        q_mu, q_ls = q[:n_s], q[n_s:]

        # --- Gaussian distance as a single matmul (scale folded into ivs):
        #     dots = ivs@(k*k)^T - 2*(q_mu*ivs)@k^T + sum(q_mu^2*ivs, -1) ---
        ivs = jnp.exp(-2.0 * q_ls) * scale                          # (S, D)
        lhs = jnp.concatenate([ivs, -2.0 * (q_mu * ivs)], axis=-1)  # (S, 2D)
        dots = (jnp.dot(lhs, k2, preferred_element_type=f32)
                + jnp.sum(q_mu * q_mu * ivs, axis=-1, keepdims=True))  # (S, N)

        dots_exp = (jnp.exp(-dots) + eps) * pi                      # (S, N)
        attn = dots_exp * pl.reciprocal(                            # norm over slots
            jnp.sum(dots_exp, axis=0, keepdims=True), approx=True)
        row = jnp.sum(attn, axis=-1, keepdims=True)                 # (S, 1)
        inv_row = pl.reciprocal(row, approx=True)
        attn = attn * inv_row                                       # norm over tokens
        rs = row * inv_row      # exact row-sum of the final attn (used below)

        # --- fused updates: attn @ [v | v*v] ---
        uv = jnp.dot(attn, vcat, preferred_element_type=f32)        # (S, 2D)
        upd = uv[:, :d]                                             # attn @ v
        avv = uv[:, d:]                                             # attn @ (v*v)

        # --- GRUCell(input=upd, hidden=s_mu): two fused gate matmuls ---
        gi = jnp.dot(upd, wih, preferred_element_type=f32) + bih    # (S, 3D)
        gh = jnp.dot(s_mu, whh, preferred_element_type=f32) + bhh   # (S, 3D)
        r = jax.nn.sigmoid(gi[:, :d] + gh[:, :d])
        z = jax.nn.sigmoid(gi[:, d:2 * d] + gh[:, d:2 * d])
        ng = jnp.tanh(gi[:, 2 * d:] + r * gh[:, 2 * d:])
        upd_mu = (1.0 - z) * ng + z * s_mu                          # (S, D)

        # --- residual MLP on mu ---
        m = _layernorm(upd_mu, gmu, bmu)
        m = jnp.maximum(jnp.dot(m, wm1, preferred_element_type=f32) + bm1, 0.0)
        m = jnp.dot(m, wm2, preferred_element_type=f32) + bm2
        upd_mu = upd_mu + m

        # --- logsigma update, matmul form:
        #     sum_j attn*((v-mu)^2 + eps) = attn@(v*v) - 2*mu*(attn@v) + (mu^2+eps)*rs
        wsum = avv - 2.0 * upd_mu * upd + (upd_mu * upd_mu + eps) * rs
        upd_ls = 0.5 * jnp.log(wsum)

        # --- mixture weights (matches reference: post-token-norm attn sums) ---
        pi_new = rs * pl.reciprocal(
            jnp.sum(rs, axis=0, keepdims=True) + eps, approx=True)
        return upd_mu, upd_ls, pi_new

    # `iters` steps + one extra step (the .detach() is a no-op for forward)
    for _ in range(iters + 1):
        slots_mu, slots_ls, pi = step(slots_mu, slots_ls, pi)

    # ---- mlp_out on concat([mu, ls], -1): one fused (S,2D)@(2D,2H) matmul ----
    wo1 = wb_ref[1, :2 * d, :2 * hd]
    wo2 = wb_ref[2, :2 * hd, :d]
    bo1 = wbias_ref[1:2, :]
    bo2 = vrow(13)
    hh = jnp.dot(jnp.concatenate([slots_mu, slots_ls], axis=-1), wo1,
                 preferred_element_type=f32) + bo1
    out = jnp.dot(jnp.maximum(hh, 0.0), wo2, preferred_element_type=f32) + bo2
    # TODO(synk): reviewed lane-dense (1, S*D) output store skipped — it needs
    # an in-kernel (S, D)->(S*D,) relayout; the (S, D) store cost is negligible
    # at these shapes and this keeps the kernel guaranteed to lower.
    out_ref[0] = out


def init_params(key, dim, hidden):
    """Deterministic parameters packed into a few stacked slabs (few big DMAs)."""
    d, h = dim, hidden
    assert h >= d
    ks = iter(jax.random.split(key, 24))
    nk = lambda: next(ks)

    def lin_w(fan_in, fan_out):
        return jax.random.normal(nk(), (fan_in, fan_out), jnp.float32) / jnp.sqrt(float(fan_in))

    def small(shape):
        return 0.01 * jax.random.normal(nk(), shape, jnp.float32)

    slots_mu = jax.random.normal(nk(), (2 * d,), jnp.float32)        # torch (1,1,2d)
    bound = (6.0 / (1.0 + 2.0 * d)) ** 0.5                           # xavier_uniform
    slots_logsigma = jax.random.uniform(nk(), (2 * d,), jnp.float32, -bound, bound)

    wq, wk, wv = lin_w(d, d), lin_w(d, d), lin_w(d, d)
    wih, whh = lin_w(d, 3 * d), lin_w(d, 3 * d)       # (in, 3*out), gate order r|z|n
    bih, bhh = small((3 * d,)), small((3 * d,))
    wm1, bm1 = lin_w(d, h), small((h,))
    wm2, bm2 = lin_w(h, d), small((d,))
    wo1, bo1 = lin_w(2 * d, 2 * h), small((2 * h,))
    wo2, bo2 = lin_w(2 * h, d), small((d,))

    ones_d, zeros_d = jnp.ones((d,), jnp.float32), jnp.zeros((d,), jnp.float32)

    # (14, D) slab of all D-wide vectors; row order matches the kernel's vrow().
    vecs = jnp.stack([
        slots_mu[:d], slots_mu[d:],
        slots_logsigma[:d], slots_logsigma[d:],
        ones_d, zeros_d,                       # norm_input gamma / beta
        ones_d, ones_d, zeros_d, zeros_d,      # norm_slots gamma(mu,ls) / beta(mu,ls)
        ones_d, zeros_d,                       # norm_mu gamma / beta
        bm2, bo2,
    ], axis=0)

    gru_bias = jnp.stack([bih, bhh], axis=0)                         # (2, 3D)
    wide_bias = jnp.stack([jnp.pad(bm1, (0, 2 * h - h)), bo1], axis=0)  # (2, 2H)

    wa_cols = max(3 * d, h)

    def padc(w):
        return jnp.pad(w, ((0, 0), (0, wa_cols - w.shape[1])))

    wa = jnp.stack([padc(wq), padc(wk), padc(wv),
                    padc(wih), padc(whh), padc(wm1)], axis=0)        # (6, D, wa_cols)

    wb_dim = 2 * h

    def padm(w):
        return jnp.pad(w, ((0, wb_dim - w.shape[0]), (0, wb_dim - w.shape[1])))

    wb = jnp.stack([padm(wm2), padm(wo1), padm(wo2)], axis=0)        # (3, 2H, 2H)

    return (vecs, gru_bias, wide_bias, wa, wb)


def slot_attention_gmm(x, noise, params, *, num_slots, dim, hidden, iters=3, eps=1e-8):
    b, n, d = x.shape
    assert d == dim
    scale = float(d) ** -0.5
    # pre-split the (B, S, 2D) noise into (B, 2, S, D) halves so the kernel
    # never needs an unaligned lane slice
    noise_st = jnp.stack([noise[..., :d], noise[..., d:]], axis=1)

    vecs, gru_bias, wide_bias, wa, wb = params
    kernel = functools.partial(slot_attention_gmm_kernel,
                               num_slots, d, hidden, iters, eps, scale)

    def rep_spec(shape):
        return pl.BlockSpec(shape, lambda i, nd=len(shape): (0,) * nd)

    in_specs = [
        pl.BlockSpec((1, n, d), lambda i: (i, 0, 0)),
        pl.BlockSpec((1, 2, num_slots, d), lambda i: (i, 0, 0, 0)),
        rep_spec(vecs.shape),
        rep_spec(gru_bias.shape),
        rep_spec(wide_bias.shape),
        rep_spec(wa.shape),
        rep_spec(wb.shape),
    ]

    return pl.pallas_call(
        kernel,
        out_shape=jax.ShapeDtypeStruct((b, num_slots, d), jnp.float32),
        grid=(b,),
        in_specs=in_specs,
        out_specs=pl.BlockSpec((1, num_slots, d), lambda i: (i, 0, 0)),
        # batch elements are independent -> "parallel" lets v7x shard the grid
        # over its two TensorCores (harmless no-op on single-TC v5e/v6e).
        compiler_params=pltpu.CompilerParams(dimension_semantics=("parallel",)),
    )(x, noise_st, vecs, gru_bias, wide_bias, wa, wb)


if __name__ == "__main__":
    B, N, D = 2, 16, 32
    NUM_SLOTS, ITERS, EPS = 8, 3, 1e-8
    HIDDEN = max(D, 64)  # hidden_dim=64 passed to the module -> max(dim, 64)

    key = jax.random.PRNGKey(0)
    k_x, k_noise, k_p = jax.random.split(key, 3)

    x = jax.random.normal(k_x, (B, N, D), jnp.float32)
    # TODO(synk): torch.randn inside forward is replaced by this precomputed
    # deterministic noise tensor (no in-kernel RNG needed).
    noise = jax.random.normal(k_noise, (B, NUM_SLOTS, 2 * D), jnp.float32)
    params = init_params(k_p, D, HIDDEN)

    out = slot_attention_gmm(x, noise, params, num_slots=NUM_SLOTS, dim=D,
                             hidden=HIDDEN, iters=ITERS, eps=EPS)
    jax.block_until_ready(out)

    assert out.shape == (B, NUM_SLOTS, D)
    assert bool(jnp.all(jnp.isfinite(out)))
    print("KERNEL_OK")
</pallas_src>

<mosaic_0001>
module attributes {stable_mosaic.version = 11 : i64} {
  func.func @slot_attention_gmm_kernel(%arg0: i32, %arg1: memref<1x16x32xf32, #tpu.memory_space<vmem>>, %arg2: memref<1x2x8x32xf32, #tpu.memory_space<vmem>>, %arg3: memref<14x32xf32, #tpu.memory_space<vmem>>, %arg4: memref<2x96xf32, #tpu.memory_space<vmem>>, %arg5: memref<2x128xf32, #tpu.memory_space<vmem>>, %arg6: memref<6x32x96xf32, #tpu.memory_space<vmem>>, %arg7: memref<3x128x128xf32, #tpu.memory_space<vmem>>, %arg8: memref<1x8x32xf32, #tpu.memory_space<vmem>>) attributes {dimension_semantics = [#tpu.dimension_semantics<parallel>], iteration_bounds = array<i64: 2>, scalar_prefetch = 0 : i64, scratch_operands = 0 : i64, tpu.core_type = #tpu.core_type<tc>, window_params = [{transform_indices = @transform_0, window_bounds = array<i64: 1, 16, 32>}, {transform_indices = @transform_1, window_bounds = array<i64: 1, 2, 8, 32>}, {pipeline_mode = #tpu.pipeline_mode<synchronous>, transform_indices = @transform_2, window_bounds = array<i64: 14, 32>}, {pipeline_mode = #tpu.pipeline_mode<synchronous>, transform_indices = @transform_3, window_bounds = array<i64: 2, 96>}, {pipeline_mode = #tpu.pipeline_mode<synchronous>, transform_indices = @transform_4, window_bounds = array<i64: 2, 128>}, {pipeline_mode = #tpu.pipeline_mode<synchronous>, transform_indices = @transform_5, window_bounds = array<i64: 6, 32, 96>}, {pipeline_mode = #tpu.pipeline_mode<synchronous>, transform_indices = @transform_6, window_bounds = array<i64: 3, 128, 128>}, {transform_indices = @transform_7, window_bounds = array<i64: 1, 8, 32>}]} {
    %c0 = arith.constant 0 : index
    %c0_0 = arith.constant 0 : index
    %c0_1 = arith.constant 0 : index
    %0 = vector.load %arg1[%c0, %c0_0, %c0_1] : memref<1x16x32xf32, #tpu.memory_space<vmem>>, vector<1x16x32xf32>
    %1 = vector.shape_cast %0 : vector<1x16x32xf32> to vector<16x32xf32>
    %c4 = arith.constant 4 : index
    %c0_2 = arith.constant 0 : index
    %2 = vector.load %arg3[%c4, %c0_2] : memref<14x32xf32, #tpu.memory_space<vmem>>, vector<1x32xf32>
    %c5 = arith.constant 5 : index
    %c0_3 = arith.constant 0 : index
    %3 = vector.load %arg3[%c5, %c0_3] : memref<14x32xf32, #tpu.memory_space<vmem>>, vector<1x32xf32>
    %cst = arith.constant dense<0.000000e+00> : vector<16xf32>
    %4 = vector.multi_reduction <add>, %1, %cst [1] : vector<16x32xf32> to vector<16xf32>
    %5 = vector.shape_cast %4 : vector<16xf32> to vector<16x1xf32>
    %cst_4 = arith.constant 3.200000e+01 : f32
    %6 = vector.broadcast %cst_4 : f32 to vector<16x1xf32>
    %7 = arith.divf %5, %6 : vector<16x1xf32>
    %8 = vector.broadcast %7 : vector<16x1xf32> to vector<16x32xf32>
    %9 = arith.subf %1, %8 : vector<16x32xf32>
    %10 = arith.mulf %9, %9 : vector<16x32xf32>
    %cst_5 = arith.constant dense<0.000000e+00> : vector<16xf32>
    %11 = vector.multi_reduction <add>, %10, %cst_5 [1] : vector<16x32xf32> to vector<16xf32>
    %12 = vector.shape_cast %11 : vector<16xf32> to vector<16x1xf32>
    %cst_6 = arith.constant 3.200000e+01 : f32
    %13 = vector.broadcast %cst_6 : f32 to vector<16x1xf32>
    %14 = arith.divf %12, %13 : vector<16x1xf32>
    %15 = vector.broadcast %7 : vector<16x1xf32> to vector<16x32xf32>
    %16 = arith.subf %1, %15 : vector<16x32xf32>
    %cst_7 = arith.constant 9.99999974E-6 : f32
    %17 = vector.broadcast %cst_7 : f32 to vector<16x1xf32>
    %18 = arith.addf %14, %17 : vector<16x1xf32>
    %19 = math.rsqrt %18 : vector<16x1xf32>
    %20 = vector.broadcast %19 : vector<16x1xf32> to vector<16x32xf32>
    %21 = arith.mulf %16, %20 : vector<16x32xf32>
    %22 = vector.broadcast %2 : vector<1x32xf32> to vector<16x32xf32>
    %23 = arith.mulf %21, %22 : vector<16x32xf32>
    %24 = vector.broadcast %3 : vector<1x32xf32> to vector<16x32xf32>
    %25 = arith.addf %23, %24 : vector<16x32xf32>
    %c1 = arith.constant 1 : index
    %c0_8 = arith.constant 0 : index
    %c0_9 = arith.constant 0 : index
    %26 = vector.load %arg6[%c1, %c0_8, %c0_9] : memref<6x32x96xf32, #tpu.memory_space<vmem>>, vector<1x32x32xf32>
    %27 = vector.shape_cast %26 : vector<1x32x32xf32> to vector<32x32xf32>
    %cst_10 = arith.constant dense<0.000000e+00> : vector<16x32xf32>
    %28 = tpu.matmul %25, %27, %cst_10 {dimension_numbers = #tpu.dot_dimension_numbers<[1], [0], [0], [1], [0, 0, 1, 1], [], []>} : vector<16x32xf32>, vector<32x32xf32>, vector<16x32xf32> -> vector<16x32xf32>
    %c2 = arith.constant 2 : index
    %c0_11 = arith.constant 0 : index
    %c0_12 = arith.constant 0 : index
    %29 = vector.load %arg6[%c2, %c0_11, %c0_12] : memref<6x32x96xf32, #tpu.memory_space<vmem>>, vector<1x32x32xf32>
    %30 = vector.shape_cast %29 : vector<1x32x32xf32> to vector<32x32xf32>
    %cst_13 = arith.constant dense<0.000000e+00> : vector<16x32xf32>
    %31 = tpu.matmul %25, %30, %cst_13 {dimension_numbers = #tpu.dot_dimension_numbers<[1], [0], [0], [1], [0, 0, 1, 1], [], []>} : vector<16x32xf32>, vector<32x32xf32>, vector<16x32xf32> -> vector<16x32xf32>
    %32 = arith.mulf %28, %28 : vector<16x32xf32>
    %33 = tpu.transpose %32, [1, 0] : vector<16x32xf32> -> vector<32x16xf32>
    %34 = tpu.transpose %28, [1, 0] : vector<16x32xf32> -> vector<32x16xf32>
    %35 = tpu.concatenate %33, %34 in 0 : vector<32x16xf32>, vector<32x16xf32> -> vector<64x16xf32>
    %36 = arith.mulf %31, %31 : vector<16x32xf32>
    %37 = tpu.concatenate %31, %36 in 1 : vector<16x32xf32>, vector<16x32xf32> -> vector<16x64xf32>
    %c0_14 = arith.constant 0 : index
    %c0_15 = arith.constant 0 : index
    %38 = vector.load %arg3[%c0_14, %c0_15] : memref<14x32xf32, #tpu.memory_space<vmem>>, vector<1x32xf32>
    %c2_16 = arith.constant 2 : index
    %c0_17 = arith.constant 0 : index
    %39 = vector.load %arg3[%c2_16, %c0_17] : memref<14x32xf32, #tpu.memory_space<vmem>>, vector<1x32xf32>
    %40 = math.exp %39 : vector<1x32xf32>
    %c0_18 = arith.constant 0 : index
    %c0_19 = arith.constant 0 : index
    %c0_20 = arith.constant 0 : index
    %c0_21 = arith.constant 0 : index
    %41 = vector.load %arg2[%c0_18, %c0_19, %c0_20, %c0_21] : memref<1x2x8x32xf32, #tpu.memory_space<vmem>>, vector<1x1x8x32xf32>
    %42 = vector.shape_cast %41 : vector<1x1x8x32xf32> to vector<8x32xf32>
    %43 = vector.broadcast %40 : vector<1x32xf32> to vector<8x32xf32>
    %44 = arith.mulf %43, %42 : vector<8x32xf32>
    %45 = vector.broadcast %38 : vector<1x32xf32> to vector<8x32xf32>
    %46 = arith.addf %45, %44 : vector<8x32xf32>
    %c1_22 = arith.constant 1 : index
    %c0_23 = arith.constant 0 : index
    %47 = vector.load %arg3[%c1_22, %c0_23] : memref<14x32xf32, #tpu.memory_space<vmem>>, vector<1x32xf32>
    %c3 = arith.constant 3 : index
    %c0_24 = arith.constant 0 : index
    %48 = vector.load %arg3[%c3, %c0_24] : memref<14x32xf32, #tpu.memory_space<vmem>>, vector<1x32xf32>
    %49 = math.exp %48 : vector<1x32xf32>
    %c0_25 = arith.constant 0 : index
    %c1_26 = arith.constant 1 : index
    %c0_27 = arith.constant 0 : index
    %c0_28 = arith.constant 0 : index
    %50 = vector.load %arg2[%c0_25, %c1_26, %c0_27, %c0_28] : memref<1x2x8x32xf32, #tpu.memory_space<vmem>>, vector<1x1x8x32xf32>
    %51 = vector.shape_cast %50 : vector<1x1x8x32xf32> to vector<8x32xf32>
    %52 = vector.broadcast %49 : vector<1x32xf32> to vector<8x32xf32>
    %53 = arith.mulf %52, %51 : vector<8x32xf32>
    %54 = vector.broadcast %47 : vector<1x32xf32> to vector<8x32xf32>
    %55 = arith.addf %54, %53 : vector<8x32xf32>
    %cst_29 = arith.constant 1.250000e-01 : f32
    %56 = vector.broadcast %cst_29 : f32 to vector<8x1xf32>
    %c6 = arith.constant 6 : index
    %c0_30 = arith.constant 0 : index
    %57 = vector.load %arg3[%c6, %c0_30] : memref<14x32xf32, #tpu.memory_space<vmem>>, vector<1x32xf32>
    %c7 = arith.constant 7 : index
    %c0_31 = arith.constant 0 : index
    %58 = vector.load %arg3[%c7, %c0_31] : memref<14x32xf32, #tpu.memory_space<vmem>>, vector<1x32xf32>
    %c8 = arith.constant 8 : index
    %c0_32 = arith.constant 0 : index
    %59 = vector.load %arg3[%c8, %c0_32] : memref<14x32xf32, #tpu.memory_space<vmem>>, vector<1x32xf32>
    %c9 = arith.constant 9 : index
    %c0_33 = arith.constant 0 : index
    %60 = vector.load %arg3[%c9, %c0_33] : memref<14x32xf32, #tpu.memory_space<vmem>>, vector<1x32xf32>
    %c10 = arith.constant 10 : index
    %c0_34 = arith.constant 0 : index
    %61 = vector.load %arg3[%c10, %c0_34] : memref<14x32xf32, #tpu.memory_space<vmem>>, vector<1x32xf32>
    %c11 = arith.constant 11 : index
    %c0_35 = arith.constant 0 : index
    %62 = vector.load %arg3[%c11, %c0_35] : memref<14x32xf32, #tpu.memory_space<vmem>>, vector<1x32xf32>
    %c12 = arith.constant 12 : index
    %c0_36 = arith.constant 0 : index
    %63 = vector.load %arg3[%c12, %c0_36] : memref<14x32xf32, #tpu.memory_space<vmem>>, vector<1x32xf32>
    %c0_37 = arith.constant 0 : index
    %c0_38 = arith.constant 0 : index
    %c0_39 = arith.constant 0 : index
    %64 = vector.load %arg6[%c0_37, %c0_38, %c0_39] : memref<6x32x96xf32, #tpu.memory_space<vmem>>, vector<1x32x32xf32>
    %65 = vector.shape_cast %64 : vector<1x32x32xf32> to vector<32x32xf32>
    %c3_40 = arith.constant 3 : index
    %c0_41 = arith.constant 0 : index
    %c0_42 = arith.constant 0 : index
    %66 = vector.load %arg6[%c3_40, %c0_41, %c0_42] : memref<6x32x96xf32, #tpu.memory_space<vmem>>, vector<1x32x96xf32>
    %67 = vector.shape_cast %66 : vector<1x32x96xf32> to vector<32x96xf32>
    %c4_43 = arith.constant 4 : index
    %c0_44 = arith.constant 0 : index
    %c0_45 = arith.constant 0 : index
    %68 = vector.load %arg6[%c4_43, %c0_44, %c0_45] : memref<6x32x96xf32, #tpu.memory_space<vmem>>, vector<1x32x96xf32>
    %69 = vector.shape_cast %68 : vector<1x32x96xf32> to vector<32x96xf32>
    %c5_46 = arith.constant 5 : index
    %c0_47 = arith.constant 0 : index
    %c0_48 = arith.constant 0 : index
    %70 = vector.load %arg6[%c5_46, %c0_47, %c0_48] : memref<6x32x96xf32, #tpu.memory_space<vmem>>, vector<1x32x64xf32>
    %71 = vector.shape_cast %70 : vector<1x32x64xf32> to vector<32x64xf32>
    %c0_49 = arith.constant 0 : index
    %c0_50 = arith.constant 0 : index
    %c0_51 = arith.constant 0 : index
    %72 = vector.load %arg7[%c0_49, %c0_50, %c0_51] : memref<3x128x128xf32, #tpu.memory_space<vmem>>, vector<1x64x32xf32>
    %73 = vector.shape_cast %72 : vector<1x64x32xf32> to vector<64x32xf32>
    %c0_52 = arith.constant 0 : index
    %c0_53 = arith.constant 0 : index
    %74 = vector.load %arg4[%c0_52, %c0_53] : memref<2x96xf32, #tpu.memory_space<vmem>>, vector<1x96xf32>
    %c1_54 = arith.constant 1 : index
    %c0_55 = arith.constant 0 : index
    %75 = vector.load %arg4[%c1_54, %c0_55] : memref<2x96xf32, #tpu.memory_space<vmem>>, vector<1x96xf32>
    %c0_56 = arith.constant 0 : index
    %c0_57 = arith.constant 0 : index
    %76 = vector.load %arg5[%c0_56, %c0_57] : memref<2x128xf32, #tpu.memory_space<vmem>>, vector<1x64xf32>
    %cst_58 = arith.constant dense<0.000000e+00> : vector<8xf32>
    %77 = vector.multi_reduction <add>, %46, %cst_58 [1] : vector<8x32xf32> to vector<8xf32>
    %78 = vector.shape_cast %77 : vector<8xf32> to vector<8x1xf32>
    %cst_59 = arith.constant dense<0.000000e+00> : vector<8xf32>
    %79 = vector.multi_reduction <add>, %55, %cst_59 [1] : vector<8x32xf32> to vector<8xf32>
    %80 = vector.shape_cast %79 : vector<8xf32> to vector<8x1xf32>
    %81 = arith.addf %78, %80 : vector<8x1xf32>
    %cst_60 = arith.constant 1.562500e-02 : f32
    %82 = vector.broadcast %cst_60 : f32 to vector<8x1xf32>
    %83 = arith.mulf %81, %82 : vector<8x1xf32>
    %84 = vector.broadcast %83 : vector<8x1xf32> to vector<8x32xf32>
    %85 = arith.subf %46, %84 : vector<8x32xf32>
    %86 = arith.mulf %85, %85 : vector<8x32xf32>
    %cst_61 = arith.constant dense<0.000000e+00> : vector<8xf32>
    %87 = vector.multi_reduction <add>, %86, %cst_61 [1] : vector<8x32xf32> to vector<8xf32>
    %88 = vector.shape_cast %87 : vector<8xf32> to vector<8x1xf32>
    %89 = vector.broadcast %83 : vector<8x1xf32> to vector<8x32xf32>
    %90 = arith.subf %55, %89 : vector<8x32xf32>
    %91 = arith.mulf %90, %90 : vector<8x32xf32>
    %cst_62 = arith.constant dense<0.000000e+00> : vector<8xf32>
    %92 = vector.multi_reduction <add>, %91, %cst_62 [1] : vector<8x32xf32> to vector<8xf32>
    %93 = vector.shape_cast %92 : vector<8xf32> to vector<8x1xf32>
    %94 = arith.addf %88, %93 : vector<8x1xf32>
    %cst_63 = arith.constant 1.562500e-02 : f32
    %95 = vector.broadcast %cst_63 : f32 to vector<8x1xf32>
    %96 = arith.mulf %94, %95 : vector<8x1xf32>
    %cst_64 = arith.constant 9.99999974E-6 : f32
    %97 = vector.broadcast %cst_64 : f32 to vector<8x1xf32>
    %98 = arith.addf %96, %97 : vector<8x1xf32>
    %99 = math.rsqrt %98 : vector<8x1xf32>
    %100 = vector.broadcast %83 : vector<8x1xf32> to vector<8x32xf32>
    %101 = arith.subf %46, %100 : vector<8x32xf32>
    %102 = vector.broadcast %99 : vector<8x1xf32> to vector<8x32xf32>
    %103 = arith.mulf %101, %102 : vector<8x32xf32>
    %104 = vector.broadcast %57 : vector<1x32xf32> to vector<8x32xf32>
    %105 = arith.mulf %103, %104 : vector<8x32xf32>
    %106 = vector.broadcast %59 : vector<1x32xf32> to vector<8x32xf32>
    %107 = arith.addf %105, %106 : vector<8x32xf32>
    %108 = vector.broadcast %83 : vector<8x1xf32> to vector<8x32xf32>
    %109 = arith.subf %55, %108 : vector<8x32xf32>
    %110 = vector.broadcast %99 : vector<8x1xf32> to vector<8x32xf32>
    %111 = arith.mulf %109, %110 : vector<8x32xf32>
    %112 = vector.broadcast %58 : vector<1x32xf32> to vector<8x32xf32>
    %113 = arith.mulf %111, %112 : vector<8x32xf32>
    %114 = vector.broadcast %60 : vector<1x32xf32> to vector<8x32xf32>
    %115 = arith.addf %113, %114 : vector<8x32xf32>
    %116 = tpu.concatenate %107, %115 in 0 : vector<8x32xf32>, vector<8x32xf32> -> vector<16x32xf32>
    %cst_65 = arith.constant dense<0.000000e+00> : vector<16x32xf32>
    %117 = tpu.matmul %116, %65, %cst_65 {dimension_numbers = #tpu.dot_dimension_numbers<[1], [0], [0], [1], [0, 0, 1, 1], [], []>} : vector<16x32xf32>, vector<32x32xf32>, vector<16x32xf32> -> vector<16x32xf32>
    %118 = vector.extract_strided_slice %117 {offsets = [0, 0], sizes = [8, 32], strides = [1, 1]} : vector<16x32xf32> to vector<8x32xf32>
    %119 = vector.extract_strided_slice %117 {offsets = [8, 0], sizes = [8, 32], strides = [1, 1]} : vector<16x32xf32> to vector<8x32xf32>
    %cst_66 = arith.constant -2.000000e+00 : f32
    %120 = vector.broadcast %cst_66 : f32 to vector<8x32xf32>
    %121 = arith.mulf %120, %119 : vector<8x32xf32>
    %122 = math.exp %121 : vector<8x32xf32>
    %cst_67 = arith.constant 0.176776692 : f32
    %123 = vector.broadcast %cst_67 : f32 to vector<8x32xf32>
    %124 = arith.mulf %122, %123 : vector<8x32xf32>
    %125 = arith.mulf %118, %124 : vector<8x32xf32>
    %cst_68 = arith.constant -2.000000e+00 : f32
    %126 = vector.broadcast %cst_68 : f32 to vector<8x32xf32>
    %127 = arith.mulf %126, %125 : vector<8x32xf32>
    %128 = tpu.concatenate %124, %127 in 1 : vector<8x32xf32>, vector<8x32xf32> -> vector<8x64xf32>
    %cst_69 = arith.constant dense<0.000000e+00> : vector<8x16xf32>
    %129 = tpu.matmul %128, %35, %cst_69 {dimension_numbers = #tpu.dot_dimension_numbers<[1], [0], [0], [1], [0, 0, 1, 1], [], []>} : vector<8x64xf32>, vector<64x16xf32>, vector<8x16xf32> -> vector<8x16xf32>
    %130 = arith.mulf %118, %118 : vector<8x32xf32>
    %131 = arith.mulf %130, %124 : vector<8x32xf32>
    %cst_70 = arith.constant dense<0.000000e+00> : vector<8xf32>
    %132 = vector.multi_reduction <add>, %131, %cst_70 [1] : vector<8x32xf32> to vector<8xf32>
    %133 = vector.shape_cast %132 : vector<8xf32> to vector<8x1xf32>
    %134 = vector.broadcast %133 : vector<8x1xf32> to vector<8x16xf32>
    %135 = arith.addf %129, %134 : vector<8x16xf32>
    %cst_71 = arith.constant 0.000000e+00 : f32
    %136 = vector.broadcast %cst_71 : f32 to vector<8x16xf32>
    %137 = arith.subf %136, %135 : vector<8x16xf32>
    %138 = math.exp %137 : vector<8x16xf32>
    %cst_72 = arith.constant 9.99999993E-9 : f32
    %139 = vector.broadcast %cst_72 : f32 to vector<8x16xf32>
    %140 = arith.addf %138, %139 : vector<8x16xf32>
    %141 = vector.broadcast %56 : vector<8x1xf32> to vector<8x16xf32>
    %142 = arith.mulf %140, %141 : vector<8x16xf32>
    %cst_73 = arith.constant dense<0.000000e+00> : vector<16xf32>
    %143 = vector.multi_reduction <add>, %142, %cst_73 [0] : vector<8x16xf32> to vector<16xf32>
    %144 = vector.shape_cast %143 : vector<16xf32> to vector<1x16xf32>
    %145 = tpu.reciprocal %144 {approx = true} : vector<1x16xf32> -> vector<1x16xf32>
    %146 = vector.broadcast %145 : vector<1x16xf32> to vector<8x16xf32>
    %147 = arith.mulf %142, %146 : vector<8x16xf32>
    %cst_74 = arith.constant dense<0.000000e+00> : vector<8xf32>
    %148 = vector.multi_reduction <add>, %147, %cst_74 [1] : vector<8x16xf32> to vector<8xf32>
    %149 = vector.shape_cast %148 : vector<8xf32> to vector<8x1xf32>
    %150 = tpu.reciprocal %149 {approx = true} : vector<8x1xf32> -> vector<8x1xf32>
    %151 = vector.broadcast %150 : vector<8x1xf32> to vector<8x16xf32>
    %152 = arith.mulf %147, %151 : vector<8x16xf32>
    %153 = arith.mulf %149, %150 : vector<8x1xf32>
    %cst_75 = arith.constant dense<0.000000e+00> : vector<8x64xf32>
    %154 = tpu.matmul %152, %37, %cst_75 {dimension_numbers = #tpu.dot_dimension_numbers<[1], [0], [0], [1], [0, 0, 1, 1], [], []>} : vector<8x16xf32>, vector<16x64xf32>, vector<8x64xf32> -> vector<8x64xf32>
    %155 = vector.extract_strided_slice %154 {offsets = [0, 0], sizes = [8, 32], strides = [1, 1]} : vector<8x64xf32> to vector<8x32xf32>
    %156 = vector.extract_strided_slice %154 {offsets = [0, 32], sizes = [8, 32], strides = [1, 1]} : vector<8x64xf32> to vector<8x32xf32>
    %cst_76 = arith.constant dense<0.000000e+00> : vector<8x96xf32>
    %157 = tpu.matmul %155, %67, %cst_76 {dimension_numbers = #tpu.dot_dimension_numbers<[1], [0], [0], [1], [0, 0, 1, 1], [], []>} : vector<8x32xf32>, vector<32x96xf32>, vector<8x96xf32> -> vector<8x96xf32>
    %158 = vector.broadcast %74 : vector<1x96xf32> to vector<8x96xf32>
    %159 = arith.addf %157, %158 : vector<8x96xf32>
    %cst_77 = arith.constant dense<0.000000e+00> : vector<8x96xf32>
    %160 = tpu.matmul %107, %69, %cst_77 {dimension_numbers = #tpu.dot_dimension_numbers<[1], [0], [0], [1], [0, 0, 1, 1], [], []>} : vector<8x32xf32>, vector<32x96xf32>, vector<8x96xf32> -> vector<8x96xf32>
    %161 = vector.broadcast %75 : vector<1x96xf32> to vector<8x96xf32>
    %162 = arith.addf %160, %161 : vector<8x96xf32>
    %163 = vector.extract_strided_slice %159 {offsets = [0, 0], sizes = [8, 32], strides = [1, 1]} : vector<8x96xf32> to vector<8x32xf32>
    %164 = vector.extract_strided_slice %162 {offsets = [0, 0], sizes = [8, 32], strides = [1, 1]} : vector<8x96xf32> to vector<8x32xf32>
    %165 = arith.addf %163, %164 : vector<8x32xf32>
    %166 = arith.negf %165 : vector<8x32xf32>
    %167 = math.exp %166 : vector<8x32xf32>
    %cst_78 = arith.constant 1.000000e+00 : f32
    %168 = vector.broadcast %cst_78 : f32 to vector<8x32xf32>
    %169 = arith.addf %168, %167 : vector<8x32xf32>
    %170 = arith.divf %168, %169 : vector<8x32xf32>
    %171 = vector.extract_strided_slice %159 {offsets = [0, 32], sizes = [8, 32], strides = [1, 1]} : vector<8x96xf32> to vector<8x32xf32>
    %172 = vector.extract_strided_slice %162 {offsets = [0, 32], sizes = [8, 32], strides = [1, 1]} : vector<8x96xf32> to vector<8x32xf32>
    %173 = arith.addf %171, %172 : vector<8x32xf32>
    %174 = arith.negf %173 : vector<8x32xf32>
    %175 = math.exp %174 : vector<8x32xf32>
    %cst_79 = arith.constant 1.000000e+00 : f32
    %176 = vector.broadcast %cst_79 : f32 to vector<8x32xf32>
    %177 = arith.addf %176, %175 : vector<8x32xf32>
    %178 = arith.divf %176, %177 : vector<8x32xf32>
    %179 = vector.extract_strided_slice %159 {offsets = [0, 64], sizes = [8, 32], strides = [1, 1]} : vector<8x96xf32> to vector<8x32xf32>
    %180 = vector.extract_strided_slice %162 {offsets = [0, 64], sizes = [8, 32], strides = [1, 1]} : vector<8x96xf32> to vector<8x32xf32>
    %181 = arith.mulf %170, %180 : vector<8x32xf32>
    %182 = arith.addf %179, %181 : vector<8x32xf32>
    %183 = math.tanh %182 : vector<8x32xf32>
    %cst_80 = arith.constant 1.000000e+00 : f32
    %184 = vector.broadcast %cst_80 : f32 to vector<8x32xf32>
    %185 = arith.subf %184, %178 : vector<8x32xf32>
    %186 = arith.mulf %185, %183 : vector<8x32xf32>
    %187 = arith.mulf %178, %107 : vector<8x32xf32>
    %188 = arith.addf %186, %187 : vector<8x32xf32>
    %cst_81 = arith.constant dense<0.000000e+00> : vector<8xf32>
    %189 = vector.multi_reduction <add>, %188, %cst_81 [1] : vector<8x32xf32> to vector<8xf32>
    %190 = vector.shape_cast %189 : vector<8xf32> to vector<8x1xf32>
    %cst_82 = arith.constant 3.200000e+01 : f32
    %191 = vector.broadcast %cst_82 : f32 to vector<8x1xf32>
    %192 = arith.divf %190, %191 : vector<8x1xf32>
    %193 = vector.broadcast %192 : vector<8x1xf32> to vector<8x32xf32>
    %194 = arith.subf %188, %193 : vector<8x32xf32>
    %195 = arith.mulf %194, %194 : vector<8x32xf32>
    %cst_83 = arith.constant dense<0.000000e+00> : vector<8xf32>
    %196 = vector.multi_reduction <add>, %195, %cst_83 [1] : vector<8x32xf32> to vector<8xf32>
    %197 = vector.shape_cast %196 : vector<8xf32> to vector<8x1xf32>
    %cst_84 = arith.constant 3.200000e+01 : f32
    %198 = vector.broadcast %cst_84 : f32 to vector<8x1xf32>
    %199 = arith.divf %197, %198 : vector<8x1xf32>
    %200 = vector.broadcast %192 : vector<8x1xf32> to vector<8x32xf32>
    %201 = arith.subf %188, %200 : vector<8x32xf32>
    %cst_85 = arith.constant 9.99999974E-6 : f32
    %202 = vector.broadcast %cst_85 : f32 to vector<8x1xf32>
    %203 = arith.addf %199, %202 : vector<8x1xf32>
    %204 = math.rsqrt %203 : vector<8x1xf32>
    %205 = vector.broadcast %204 : vector<8x1xf32> to vector<8x32xf32>
    %206 = arith.mulf %201, %205 : vector<8x32xf32>
    %207 = vector.broadcast %61 : vector<1x32xf32> to vector<8x32xf32>
    %208 = arith.mulf %206, %207 : vector<8x32xf32>
    %209 = vector.broadcast %62 : vector<1x32xf32> to vector<8x32xf32>
    %210 = arith.addf %208, %209 : vector<8x32xf32>
    %cst_86 = arith.constant dense<0.000000e+00> : vector<8x64xf32>
    %211 = tpu.matmul %210, %71, %cst_86 {dimension_numbers = #tpu.dot_dimension_numbers<[1], [0], [0], [1], [0, 0, 1, 1], [], []>} : vector<8x32xf32>, vector<32x64xf32>, vector<8x64xf32> -> vector<8x64xf32>
    %212 = vector.broadcast %76 : vector<1x64xf32> to vector<8x64xf32>
    %213 = arith.addf %211, %212 : vector<8x64xf32>
    %cst_87 = arith.constant 0.000000e+00 : f32
    %214 = vector.broadcast %cst_87 : f32 to vector<8x64xf32>
    %215 = arith.maximumf %213, %214 : vector<8x64xf32>
    %cst_88 = arith.constant dense<0.000000e+00> : vector<8x32xf32>
    %216 = tpu.matmul %215, %73, %cst_88 {dimension_numbers = #tpu.dot_dimension_numbers<[1], [0], [0], [1], [0, 0, 1, 1], [], []>} : vector<8x64xf32>, vector<64x32xf32>, vector<8x32xf32> -> vector<8x32xf32>
    %217 = vector.broadcast %63 : vector<1x32xf32> to vector<8x32xf32>
    %218 = arith.addf %216, %217 : vector<8x32xf32>
    %219 = arith.addf %188, %218 : vector<8x32xf32>
    %cst_89 = arith.constant 2.000000e+00 : f32
    %220 = vector.broadcast %cst_89 : f32 to vector<8x32xf32>
    %221 = arith.mulf %220, %219 : vector<8x32xf32>
    %222 = arith.mulf %221, %155 : vector<8x32xf32>
    %223 = arith.subf %156, %222 : vector<8x32xf32>
    %224 = arith.mulf %219, %219 : vector<8x32xf32>
    %cst_90 = arith.constant 9.99999993E-9 : f32
    %225 = vector.broadcast %cst_90 : f32 to vector<8x32xf32>
    %226 = arith.addf %224, %225 : vector<8x32xf32>
    %227 = vector.broadcast %153 : vector<8x1xf32> to vector<8x32xf32>
    %228 = arith.mulf %226, %227 : vector<8x32xf32>
    %229 = arith.addf %223, %228 : vector<8x32xf32>
    %230 = math.log %229 : vector<8x32xf32>
    %cst_91 = arith.constant 5.000000e-01 : f32
    %231 = vector.broadcast %cst_91 : f32 to vector<8x32xf32>
    %232 = arith.mulf %231, %230 : vector<8x32xf32>
    %cst_92 = arith.constant dense<0.000000e+00> : vector<1xf32>
    %233 = vector.multi_reduction <add>, %153, %cst_92 [0] : vector<8x1xf32> to vector<1xf32>
    %234 = vector.shape_cast %233 : vector<1xf32> to vector<1x1xf32>
    %cst_93 = arith.constant 9.99999993E-9 : f32
    %235 = vector.broadcast %cst_93 : f32 to vector<1x1xf32>
    %236 = arith.addf %234, %235 : vector<1x1xf32>
    %237 = tpu.reciprocal %236 {approx = true} : vector<1x1xf32> -> vector<1x1xf32>
    %238 = vector.broadcast %237 : vector<1x1xf32> to vector<8x1xf32>
    %239 = arith.mulf %153, %238 : vector<8x1xf32>
    %cst_94 = arith.constant dense<0.000000e+00> : vector<8xf32>
    %240 = vector.multi_reduction <add>, %219, %cst_94 [1] : vector<8x32xf32> to vector<8xf32>
    %241 = vector.shape_cast %240 : vector<8xf32> to vector<8x1xf32>
    %cst_95 = arith.constant dense<0.000000e+00> : vector<8xf32>
    %242 = vector.multi_reduction <add>, %232, %cst_95 [1] : vector<8x32xf32> to vector<8xf32>
    %243 = vector.shape_cast %242 : vector<8xf32> to vector<8x1xf32>
    %244 = arith.addf %241, %243 : vector<8x1xf32>
    %cst_96 = arith.constant 1.562500e-02 : f32
    %245 = vector.broadcast %cst_96 : f32 to vector<8x1xf32>
    %246 = arith.mulf %244, %245 : vector<8x1xf32>
    %247 = vector.broadcast %246 : vector<8x1xf32> to vector<8x32xf32>
    %248 = arith.subf %219, %247 : vector<8x32xf32>
    %249 = arith.mulf %248, %248 : vector<8x32xf32>
    %cst_97 = arith.constant dense<0.000000e+00> : vector<8xf32>
    %250 = vector.multi_reduction <add>, %249, %cst_97 [1] : vector<8x32xf32> to vector<8xf32>
    %251 = vector.shape_cast %250 : vector<8xf32> to vector<8x1xf32>
    %252 = vector.broadcast %246 : vector<8x1xf32> to vector<8x32xf32>
    %253 = arith.subf %232, %252 : vector<8x32xf32>
    %254 = arith.mulf %253, %253 : vector<8x32xf32>
    %cst_98 = arith.constant dense<0.000000e+00> : vector<8xf32>
    %255 = vector.multi_reduction <add>, %254, %cst_98 [1] : vector<8x32xf32> to vector<8xf32>
    %256 = vector.shape_cast %255 : vector<8xf32> to vector<8x1xf32>
    %257 = arith.addf %251, %256 : vector<8x1xf32>
    %cst_99 = arith.constant 1.562500e-02 : f32
    %258 = vector.broadcast %cst_99 : f32 to vector<8x1xf32>
    %259 = arith.mulf %257, %258 : vector<8x1xf32>
    %cst_100 = arith.constant 9.99999974E-6 : f32
    %260 = vector.broadcast %cst_100 : f32 to vector<8x1xf32>
    %261 = arith.addf %259, %260 : vector<8x1xf32>
    %262 = math.rsqrt %261 : vector<8x1xf32>
    %263 = vector.broadcast %246 : vector<8x1xf32> to vector<8x32xf32>
    %264 = arith.subf %219, %263 : vector<8x32xf32>
    %265 = vector.broadcast %262 : vector<8x1xf32> to vector<8x32xf32>
    %266 = arith.mulf %264, %265 : vector<8x32xf32>
    %267 = vector.broadcast %57 : vector<1x32xf32> to vector<8x32xf32>
    %268 = arith.mulf %266, %267 : vector<8x32xf32>
    %269 = vector.broadcast %59 : vector<1x32xf32> to vector<8x32xf32>
    %270 = arith.addf %268, %269 : vector<8x32xf32>
    %271 = vector.broadcast %246 : vector<8x1xf32> to vector<8x32xf32>
    %272 = arith.subf %232, %271 : vector<8x32xf32>
    %273 = vector.broadcast %262 : vector<8x1xf32> to vector<8x32xf32>
    %274 = arith.mulf %272, %273 : vector<8x32xf32>
    %275 = vector.broadcast %58 : vector<1x32xf32> to vector<8x32xf32>
    %276 = arith.mulf %274, %275 : vector<8x32xf32>
    %277 = vector.broadcast %60 : vector<1x32xf32> to vector<8x32xf32>
    %278 = arith.addf %276, %277 : vector<8x32xf32>
    %279 = tpu.concatenate %270, %278 in 0 : vector<8x32xf32>, vector<8x32xf32> -> vector<16x32xf32>
    %cst_101 = arith.constant dense<0.000000e+00> : vector<16x32xf32>
    %280 = tpu.matmul %279, %65, %cst_101 {dimension_numbers = #tpu.dot_dimension_numbers<[1], [0], [0], [1], [0, 0, 1, 1], [], []>} : vector<16x32xf32>, vector<32x32xf32>, vector<16x32xf32> -> vector<16x32xf32>
    %281 = vector.extract_strided_slice %280 {offsets = [0, 0], sizes = [8, 32], strides = [1, 1]} : vector<16x32xf32> to vector<8x32xf32>
    %282 = vector.extract_strided_slice %280 {offsets = [8, 0], sizes = [8, 32], strides = [1, 1]} : vector<16x32xf32> to vector<8x32xf32>
    %cst_102 = arith.constant -2.000000e+00 : f32
    %283 = vector.broadcast %cst_102 : f32 to vector<8x32xf32>
    %284 = arith.mulf %283, %282 : vector<8x32xf32>
    %285 = math.exp %284 : vector<8x32xf32>
    %cst_103 = arith.constant 0.176776692 : f32
    %286 = vector.broadcast %cst_103 : f32 to vector<8x32xf32>
    %287 = arith.mulf %285, %286 : vector<8x32xf32>
    %288 = arith.mulf %281, %287 : vector<8x32xf32>
    %cst_104 = arith.constant -2.000000e+00 : f32
    %289 = vector.broadcast %cst_104 : f32 to vector<8x32xf32>
    %290 = arith.mulf %289, %288 : vector<8x32xf32>
    %291 = tpu.concatenate %287, %290 in 1 : vector<8x32xf32>, vector<8x32xf32> -> vector<8x64xf32>
    %cst_105 = arith.constant dense<0.000000e+00> : vector<8x16xf32>
    %292 = tpu.matmul %291, %35, %cst_105 {dimension_numbers = #tpu.dot_dimension_numbers<[1], [0], [0], [1], [0, 0, 1, 1], [], []>} : vector<8x64xf32>, vector<64x16xf32>, vector<8x16xf32> -> vector<8x16xf32>
    %293 = arith.mulf %281, %281 : vector<8x32xf32>
    %294 = arith.mulf %293, %287 : vector<8x32xf32>
    %cst_106 = arith.constant dense<0.000000e+00> : vector<8xf32>
    %295 = vector.multi_reduction <add>, %294, %cst_106 [1] : vector<8x32xf32> to vector<8xf32>
    %296 = vector.shape_cast %295 : vector<8xf32> to vector<8x1xf32>
    %297 = vector.broadcast %296 : vector<8x1xf32> to vector<8x16xf32>
    %298 = arith.addf %292, %297 : vector<8x16xf32>
    %cst_107 = arith.constant 0.000000e+00 : f32
    %299 = vector.broadcast %cst_107 : f32 to vector<8x16xf32>
    %300 = arith.subf %299, %298 : vector<8x16xf32>
    %301 = math.exp %300 : vector<8x16xf32>
    %cst_108 = arith.constant 9.99999993E-9 : f32
    %302 = vector.broadcast %cst_108 : f32 to vector<8x16xf32>
    %303 = arith.addf %301, %302 : vector<8x16xf32>
    %304 = vector.broadcast %239 : vector<8x1xf32> to vector<8x16xf32>
    %305 = arith.mulf %303, %304 : vector<8x16xf32>
    %cst_109 = arith.constant dense<0.000000e+00> : vector<16xf32>
    %306 = vector.multi_reduction <add>, %305, %cst_109 [0] : vector<8x16xf32> to vector<16xf32>
    %307 = vector.shape_cast %306 : vector<16xf32> to vector<1x16xf32>
    %308 = tpu.reciprocal %307 {approx = true} : vector<1x16xf32> -> vector<1x16xf32>
    %309 = vector.broadcast %308 : vector<1x16xf32> to vector<8x16xf32>
    %310 = arith.mulf %305, %309 : vector<8x16xf32>
    %cst_110 = arith.constant dense<0.000000e+00> : vector<8xf32>
    %311 = vector.multi_reduction <add>, %310, %cst_110 [1] : vector<8x16xf32> to vector<8xf32>
    %312 = vector.shape_cast %311 : vector<8xf32> to vector<8x1xf32>
    %313 = tpu.reciprocal %312 {approx = true} : vector<8x1xf32> -> vector<8x1xf32>
    %314 = vector.broadcast %313 : vector<8x1xf32> to vector<8x16xf32>
    %315 = arith.mulf %310, %314 : vector<8x16xf32>
    %316 = arith.mulf %312, %313 : vector<8x1xf32>
    %cst_111 = arith.constant dense<0.000000e+00> : vector<8x64xf32>
    %317 = tpu.matmul %315, %37, %cst_111 {dimension_numbers = #tpu.dot_dimension_numbers<[1], [0], [0], [1], [0, 0, 1, 1], [], []>} : vector<8x16xf32>, vector<16x64xf32>, vector<8x64xf32> -> vector<8x64xf32>
    %318 = vector.extract_strided_slice %317 {offsets = [0, 0], sizes = [8, 32], strides = [1, 1]} : vector<8x64xf32> to vector<8x32xf32>
    %319 = vector.extract_strided_slice %317 {offsets = [0, 32], sizes = [8, 32], strides = [1, 1]} : vector<8x64xf32> to vector<8x32xf32>
    %cst_112 = arith.constant dense<0.000000e+00> : vector<8x96xf32>
    %320 = tpu.matmul %318, %67, %cst_112 {dimension_numbers = #tpu.dot_dimension_numbers<[1], [0], [0], [1], [0, 0, 1, 1], [], []>} : vector<8x32xf32>, vector<32x96xf32>, vector<8x96xf32> -> vector<8x96xf32>
    %321 = vector.broadcast %74 : vector<1x96xf32> to vector<8x96xf32>
    %322 = arith.addf %320, %321 : vector<8x96xf32>
    %cst_113 = arith.constant dense<0.000000e+00> : vector<8x96xf32>
    %323 = tpu.matmul %270, %69, %cst_113 {dimension_numbers = #tpu.dot_dimension_numbers<[1], [0], [0], [1], [0, 0, 1, 1], [], []>} : vector<8x32xf32>, vector<32x96xf32>, vector<8x96xf32> -> vector<8x96xf32>
    %324 = vector.broadcast %75 : vector<1x96xf32> to vector<8x96xf32>
    %325 = arith.addf %323, %324 : vector<8x96xf32>
    %326 = vector.extract_strided_slice %322 {offsets = [0, 0], sizes = [8, 32], strides = [1, 1]} : vector<8x96xf32> to vector<8x32xf32>
    %327 = vector.extract_strided_slice %325 {offsets = [0, 0], sizes = [8, 32], strides = [1, 1]} : vector<8x96xf32> to vector<8x32xf32>
    %328 = arith.addf %326, %327 : vector<8x32xf32>
    %329 = arith.negf %328 : vector<8x32xf32>
    %330 = math.exp %329 : vector<8x32xf32>
    %cst_114 = arith.constant 1.000000e+00 : f32
    %331 = vector.broadcast %cst_114 : f32 to vector<8x32xf32>
    %332 = arith.addf %331, %330 : vector<8x32xf32>
    %333 = arith.divf %331, %332 : vector<8x32xf32>
    %334 = vector.extract_strided_slice %322 {offsets = [0, 32], sizes = [8, 32], strides = [1, 1]} : vector<8x96xf32> to vector<8x32xf32>
    %335 = vector.extract_strided_slice %325 {offsets = [0, 32], sizes = [8, 32], strides = [1, 1]} : vector<8x96xf32> to vector<8x32xf32>
    %336 = arith.addf %334, %335 : vector<8x32xf32>
    %337 = arith.negf %336 : vector<8x32xf32>
    %338 = math.exp %337 : vector<8x32xf32>
    %cst_115 = arith.constant 1.000000e+00 : f32
    %339 = vector.broadcast %cst_115 : f32 to vector<8x32xf32>
    %340 = arith.addf %339, %338 : vector<8x32xf32>
    %341 = arith.divf %339, %340 : vector<8x32xf32>
    %342 = vector.extract_strided_slice %322 {offsets = [0, 64], sizes = [8, 32], strides = [1, 1]} : vector<8x96xf32> to vector<8x32xf32>
    %343 = vector.extract_strided_slice %325 {offsets = [0, 64], sizes = [8, 32], strides = [1, 1]} : vector<8x96xf32> to vector<8x32xf32>
    %344 = arith.mulf %333, %343 : vector<8x32xf32>
    %345 = arith.addf %342, %344 : vector<8x32xf32>
    %346 = math.tanh %345 : vector<8x32xf32>
    %cst_116 = arith.constant 1.000000e+00 : f32
    %347 = vector.broadcast %cst_116 : f32 to vector<8x32xf32>
    %348 = arith.subf %347, %341 : vector<8x32xf32>
    %349 = arith.mulf %348, %346 : vector<8x32xf32>
    %350 = arith.mulf %341, %270 : vector<8x32xf32>
    %351 = arith.addf %349, %350 : vector<8x32xf32>
    %cst_117 = arith.constant dense<0.000000e+00> : vector<8xf32>
    %352 = vector.multi_reduction <add>, %351, %cst_117 [1] : vector<8x32xf32> to vector<8xf32>
    %353 = vector.shape_cast %352 : vector<8xf32> to vector<8x1xf32>
    %cst_118 = arith.constant 3.200000e+01 : f32
    %354 = vector.broadcast %cst_118 : f32 to vector<8x1xf32>
    %355 = arith.divf %353, %354 : vector<8x1xf32>
    %356 = vector.broadcast %355 : vector<8x1xf32> to vector<8x32xf32>
    %357 = arith.subf %351, %356 : vector<8x32xf32>
    %358 = arith.mulf %357, %357 : vector<8x32xf32>
    %cst_119 = arith.constant dense<0.000000e+00> : vector<8xf32>
    %359 = vector.multi_reduction <add>, %358, %cst_119 [1] : vector<8x32xf32> to vector<8xf32>
    %360 = vector.shape_cast %359 : vector<8xf32> to vector<8x1xf32>
    %cst_120 = arith.constant 3.200000e+01 : f32
    %361 = vector.broadcast %cst_120 : f32 to vector<8x1xf32>
    %362 = arith.divf %360, %361 : vector<8x1xf32>
    %363 = vector.broadcast %355 : vector<8x1xf32> to vector<8x32xf32>
    %364 = arith.subf %351, %363 : vector<8x32xf32>
    %cst_121 = arith.constant 9.99999974E-6 : f32
    %365 = vector.broadcast %cst_121 : f32 to vector<8x1xf32>
    %366 = arith.addf %362, %365 : vector<8x1xf32>
    %367 = math.rsqrt %366 : vector<8x1xf32>
    %368 = vector.broadcast %367 : vector<8x1xf32> to vector<8x32xf32>
    %369 = arith.mulf %364, %368 : vector<8x32xf32>
    %370 = vector.broadcast %61 : vector<1x32xf32> to vector<8x32xf32>
    %371 = arith.mulf %369, %370 : vector<8x32xf32>
    %372 = vector.broadcast %62 : vector<1x32xf32> to vector<8x32xf32>
    %373 = arith.addf %371, %372 : vector<8x32xf32>
    %cst_122 = arith.constant dense<0.000000e+00> : vector<8x64xf32>
    %374 = tpu.matmul %373, %71, %cst_122 {dimension_numbers = #tpu.dot_dimension_numbers<[1], [0], [0], [1], [0, 0, 1, 1], [], []>} : vector<8x32xf32>, vector<32x64xf32>, vector<8x64xf32> -> vector<8x64xf32>
    %375 = vector.broadcast %76 : vector<1x64xf32> to vector<8x64xf32>
    %376 = arith.addf %374, %375 : vector<8x64xf32>
    %cst_123 = arith.constant 0.000000e+00 : f32
    %377 = vector.broadcast %cst_123 : f32 to vector<8x64xf32>
    %378 = arith.maximumf %376, %377 : vector<8x64xf32>
    %cst_124 = arith.constant dense<0.000000e+00> : vector<8x32xf32>
    %379 = tpu.matmul %378, %73, %cst_124 {dimension_numbers = #tpu.dot_dimension_numbers<[1], [0], [0], [1], [0, 0, 1, 1], [], []>} : vector<8x64xf32>, vector<64x32xf32>, vector<8x32xf32> -> vector<8x32xf32>
    %380 = vector.broadcast %63 : vector<1x32xf32> to vector<8x32xf32>
    %381 = arith.addf %379, %380 : vector<8x32xf32>
    %382 = arith.addf %351, %381 : vector<8x32xf32>
    %cst_125 = arith.constant 2.000000e+00 : f32
    %383 = vector.broadcast %cst_125 : f32 to vector<8x32xf32>
    %384 = arith.mulf %383, %382 : vector<8x32xf32>
    %385 = arith.mulf %384, %318 : vector<8x32xf32>
    %386 = arith.subf %319, %385 : vector<8x32xf32>
    %387 = arith.mulf %382, %382 : vector<8x32xf32>
    %cst_126 = arith.constant 9.99999993E-9 : f32
    %388 = vector.broadcast %cst_126 : f32 to vector<8x32xf32>
    %389 = arith.addf %387, %388 : vector<8x32xf32>
    %390 = vector.broadcast %316 : vector<8x1xf32> to vector<8x32xf32>
    %391 = arith.mulf %389, %390 : vector<8x32xf32>
    %392 = arith.addf %386, %391 : vector<8x32xf32>
    %393 = math.log %392 : vector<8x32xf32>
    %cst_127 = arith.constant 5.000000e-01 : f32
    %394 = vector.broadcast %cst_127 : f32 to vector<8x32xf32>
    %395 = arith.mulf %394, %393 : vector<8x32xf32>
    %cst_128 = arith.constant dense<0.000000e+00> : vector<1xf32>
    %396 = vector.multi_reduction <add>, %316, %cst_128 [0] : vector<8x1xf32> to vector<1xf32>
    %397 = vector.shape_cast %396 : vector<1xf32> to vector<1x1xf32>
    %cst_129 = arith.constant 9.99999993E-9 : f32
    %398 = vector.broadcast %cst_129 : f32 to vector<1x1xf32>
    %399 = arith.addf %397, %398 : vector<1x1xf32>
    %400 = tpu.reciprocal %399 {approx = true} : vector<1x1xf32> -> vector<1x1xf32>
    %401 = vector.broadcast %400 : vector<1x1xf32> to vector<8x1xf32>
    %402 = arith.mulf %316, %401 : vector<8x1xf32>
    %cst_130 = arith.constant dense<0.000000e+00> : vector<8xf32>
    %403 = vector.multi_reduction <add>, %382, %cst_130 [1] : vector<8x32xf32> to vector<8xf32>
    %404 = vector.shape_cast %403 : vector<8xf32> to vector<8x1xf32>
    %cst_131 = arith.constant dense<0.000000e+00> : vector<8xf32>
    %405 = vector.multi_reduction <add>, %395, %cst_131 [1] : vector<8x32xf32> to vector<8xf32>
    %406 = vector.shape_cast %405 : vector<8xf32> to vector<8x1xf32>
    %407 = arith.addf %404, %406 : vector<8x1xf32>
    %cst_132 = arith.constant 1.562500e-02 : f32
    %408 = vector.broadcast %cst_132 : f32 to vector<8x1xf32>
    %409 = arith.mulf %407, %408 : vector<8x1xf32>
    %410 = vector.broadcast %409 : vector<8x1xf32> to vector<8x32xf32>
    %411 = arith.subf %382, %410 : vector<8x32xf32>
    %412 = arith.mulf %411, %411 : vector<8x32xf32>
    %cst_133 = arith.constant dense<0.000000e+00> : vector<8xf32>
    %413 = vector.multi_reduction <add>, %412, %cst_133 [1] : vector<8x32xf32> to vector<8xf32>
    %414 = vector.shape_cast %413 : vector<8xf32> to vector<8x1xf32>
    %415 = vector.broadcast %409 : vector<8x1xf32> to vector<8x32xf32>
    %416 = arith.subf %395, %415 : vector<8x32xf32>
    %417 = arith.mulf %416, %416 : vector<8x32xf32>
    %cst_134 = arith.constant dense<0.000000e+00> : vector<8xf32>
    %418 = vector.multi_reduction <add>, %417, %cst_134 [1] : vector<8x32xf32> to vector<8xf32>
    %419 = vector.shape_cast %418 : vector<8xf32> to vector<8x1xf32>
    %420 = arith.addf %414, %419 : vector<8x1xf32>
    %cst_135 = arith.constant 1.562500e-02 : f32
    %421 = vector.broadcast %cst_135 : f32 to vector<8x1xf32>
    %422 = arith.mulf %420, %421 : vector<8x1xf32>
    %cst_136 = arith.constant 9.99999974E-6 : f32
    %423 = vector.broadcast %cst_136 : f32 to vector<8x1xf32>
    %424 = arith.addf %422, %423 : vector<8x1xf32>
    %425 = math.rsqrt %424 : vector<8x1xf32>
    %426 = vector.broadcast %409 : vector<8x1xf32> to vector<8x32xf32>
    %427 = arith.subf %382, %426 : vector<8x32xf32>
    %428 = vector.broadcast %425 : vector<8x1xf32> to vector<8x32xf32>
    %429 = arith.mulf %427, %428 : vector<8x32xf32>
    %430 = vector.broadcast %57 : vector<1x32xf32> to vector<8x32xf32>
    %431 = arith.mulf %429, %430 : vector<8x32xf32>
    %432 = vector.broadcast %59 : vector<1x32xf32> to vector<8x32xf32>
    %433 = arith.addf %431, %432 : vector<8x32xf32>
    %434 = vector.broadcast %409 : vector<8x1xf32> to vector<8x32xf32>
    %435 = arith.subf %395, %434 : vector<8x32xf32>
    %436 = vector.broadcast %425 : vector<8x1xf32> to vector<8x32xf32>
    %437 = arith.mulf %435, %436 : vector<8x32xf32>
    %438 = vector.broadcast %58 : vector<1x32xf32> to vector<8x32xf32>
    %439 = arith.mulf %437, %438 : vector<8x32xf32>
    %440 = vector.broadcast %60 : vector<1x32xf32> to vector<8x32xf32>
    %441 = arith.addf %439, %440 : vector<8x32xf32>
    %442 = tpu.concatenate %433, %441 in 0 : vector<8x32xf32>, vector<8x32xf32> -> vector<16x32xf32>
    %cst_137 = arith.constant dense<0.000000e+00> : vector<16x32xf32>
    %443 = tpu.matmul %442, %65, %cst_137 {dimension_numbers = #tpu.dot_dimension_numbers<[1], [0], [0], [1], [0, 0, 1, 1], [], []>} : vector<16x32xf32>, vector<32x32xf32>, vector<16x32xf32> -> vector<16x32xf32>
    %444 = vector.extract_strided_slice %443 {offsets = [0, 0], sizes = [8, 32], strides = [1, 1]} : vector<16x32xf32> to vector<8x32xf32>
    %445 = vector.extract_strided_slice %443 {offsets = [8, 0], sizes = [8, 32], strides = [1, 1]} : vector<16x32xf32> to vector<8x32xf32>
    %cst_138 = arith.constant -2.000000e+00 : f32
    %446 = vector.broadcast %cst_138 : f32 to vector<8x32xf32>
    %447 = arith.mulf %446, %445 : vector<8x32xf32>
    %448 = math.exp %447 : vector<8x32xf32>
    %cst_139 = arith.constant 0.176776692 : f32
    %449 = vector.broadcast %cst_139 : f32 to vector<8x32xf32>
    %450 = arith.mulf %448, %449 : vector<8x32xf32>
    %451 = arith.mulf %444, %450 : vector<8x32xf32>
    %cst_140 = arith.constant -2.000000e+00 : f32
    %452 = vector.broadcast %cst_140 : f32 to vector<8x32xf32>
    %453 = arith.mulf %452, %451 : vector<8x32xf32>
    %454 = tpu.concatenate %450, %453 in 1 : vector<8x32xf32>, vector<8x32xf32> -> vector<8x64xf32>
    %cst_141 = arith.constant dense<0.000000e+00> : vector<8x16xf32>
    %455 = tpu.matmul %454, %35, %cst_141 {dimension_numbers = #tpu.dot_dimension_numbers<[1], [0], [0], [1], [0, 0, 1, 1], [], []>} : vector<8x64xf32>, vector<64x16xf32>, vector<8x16xf32> -> vector<8x16xf32>
    %456 = arith.mulf %444, %444 : vector<8x32xf32>
    %457 = arith.mulf %456, %450 : vector<8x32xf32>
    %cst_142 = arith.constant dense<0.000000e+00> : vector<8xf32>
    %458 = vector.multi_reduction <add>, %457, %cst_142 [1] : vector<8x32xf32> to vector<8xf32>
    %459 = vector.shape_cast %458 : vector<8xf32> to vector<8x1xf32>
    %460 = vector.broadcast %459 : vector<8x1xf32> to vector<8x16xf32>
    %461 = arith.addf %455, %460 : vector<8x16xf32>
    %cst_143 = arith.constant 0.000000e+00 : f32
    %462 = vector.broadcast %cst_143 : f32 to vector<8x16xf32>
    %463 = arith.subf %462, %461 : vector<8x16xf32>
    %464 = math.exp %463 : vector<8x16xf32>
    %cst_144 = arith.constant 9.99999993E-9 : f32
    %465 = vector.broadcast %cst_144 : f32 to vector<8x16xf32>
    %466 = arith.addf %464, %465 : vector<8x16xf32>
    %467 = vector.broadcast %402 : vector<8x1xf32> to vector<8x16xf32>
    %468 = arith.mulf %466, %467 : vector<8x16xf32>
    %cst_145 = arith.constant dense<0.000000e+00> : vector<16xf32>
    %469 = vector.multi_reduction <add>, %468, %cst_145 [0] : vector<8x16xf32> to vector<16xf32>
    %470 = vector.shape_cast %469 : vector<16xf32> to vector<1x16xf32>
    %471 = tpu.reciprocal %470 {approx = true} : vector<1x16xf32> -> vector<1x16xf32>
    %472 = vector.broadcast %471 : vector<1x16xf32> to vector<8x16xf32>
    %473 = arith.mulf %468, %472 : vector<8x16xf32>
    %cst_146 = arith.constant dense<0.000000e+00> : vector<8xf32>
    %474 = vector.multi_reduction <add>, %473, %cst_146 [1] : vector<8x16xf32> to vector<8xf32>
    %475 = vector.shape_cast %474 : vector<8xf32> to vector<8x1xf32>
    %476 = tpu.reciprocal %475 {approx = true} : vector<8x1xf32> -> vector<8x1xf32>
    %477 = vector.broadcast %476 : vector<8x1xf32> to vector<8x16xf32>
    %478 = arith.mulf %473, %477 : vector<8x16xf32>
    %479 = arith.mulf %475, %476 : vector<8x1xf32>
    %cst_147 = arith.constant dense<0.000000e+00> : vector<8x64xf32>
    %480 = tpu.matmul %478, %37, %cst_147 {dimension_numbers = #tpu.dot_dimension_numbers<[1], [0], [0], [1], [0, 0, 1, 1], [], []>} : vector<8x16xf32>, vector<16x64xf32>, vector<8x64xf32> -> vector<8x64xf32>
    %481 = vector.extract_strided_slice %480 {offsets = [0, 0], sizes = [8, 32], strides = [1, 1]} : vector<8x64xf32> to vector<8x32xf32>
    %482 = vector.extract_strided_slice %480 {offsets = [0, 32], sizes = [8, 32], strides = [1, 1]} : vector<8x64xf32> to vector<8x32xf32>
    %cst_148 = arith.constant dense<0.000000e+00> : vector<8x96xf32>
    %483 = tpu.matmul %481, %67, %cst_148 {dimension_numbers = #tpu.dot_dimension_numbers<[1], [0], [0], [1], [0, 0, 1, 1], [], []>} : vector<8x32xf32>, vector<32x96xf32>, vector<8x96xf32> -> vector<8x96xf32>
    %484 = vector.broadcast %74 : vector<1x96xf32> to vector<8x96xf32>
    %485 = arith.addf %483, %484 : vector<8x96xf32>
    %cst_149 = arith.constant dense<0.000000e+00> : vector<8x96xf32>
    %486 = tpu.matmul %433, %69, %cst_149 {dimension_numbers = #tpu.dot_dimension_numbers<[1], [0], [0], [1], [0, 0, 1, 1], [], []>} : vector<8x32xf32>, vector<32x96xf32>, vector<8x96xf32> -> vector<8x96xf32>
    %487 = vector.broadcast %75 : vector<1x96xf32> to vector<8x96xf32>
    %488 = arith.addf %486, %487 : vector<8x96xf32>
    %489 = vector.extract_strided_slice %485 {offsets = [0, 0], sizes = [8, 32], strides = [1, 1]} : vector<8x96xf32> to vector<8x32xf32>
    %490 = vector.extract_strided_slice %488 {offsets = [0, 0], sizes = [8, 32], strides = [1, 1]} : vector<8x96xf32> to vector<8x32xf32>
    %491 = arith.addf %489, %490 : vector<8x32xf32>
    %492 = arith.negf %491 : vector<8x32xf32>
    %493 = math.exp %492 : vector<8x32xf32>
    %cst_150 = arith.constant 1.000000e+00 : f32
    %494 = vector.broadcast %cst_150 : f32 to vector<8x32xf32>
    %495 = arith.addf %494, %493 : vector<8x32xf32>
    %496 = arith.divf %494, %495 : vector<8x32xf32>
    %497 = vector.extract_strided_slice %485 {offsets = [0, 32], sizes = [8, 32], strides = [1, 1]} : vector<8x96xf32> to vector<8x32xf32>
    %498 = vector.extract_strided_slice %488 {offsets = [0, 32], sizes = [8, 32], strides = [1, 1]} : vector<8x96xf32> to vector<8x32xf32>
    %499 = arith.addf %497, %498 : vector<8x32xf32>
    %500 = arith.negf %499 : vector<8x32xf32>
    %501 = math.exp %500 : vector<8x32xf32>
    %cst_151 = arith.constant 1.000000e+00 : f32
    %502 = vector.broadcast %cst_151 : f32 to vector<8x32xf32>
    %503 = arith.addf %502, %501 : vector<8x32xf32>
    %504 = arith.divf %502, %503 : vector<8x32xf32>
    %505 = vector.extract_strided_slice %485 {offsets = [0, 64], sizes = [8, 32], strides = [1, 1]} : vector<8x96xf32> to vector<8x32xf32>
    %506 = vector.extract_strided_slice %488 {offsets = [0, 64], sizes = [8, 32], strides = [1, 1]} : vector<8x96xf32> to vector<8x32xf32>
    %507 = arith.mulf %496, %506 : vector<8x32xf32>
    %508 = arith.addf %505, %507 : vector<8x32xf32>
    %509 = math.tanh %508 : vector<8x32xf32>
    %cst_152 = arith.constant 1.000000e+00 : f32
    %510 = vector.broadcast %cst_152 : f32 to vector<8x32xf32>
    %511 = arith.subf %510, %504 : vector<8x32xf32>
    %512 = arith.mulf %511, %509 : vector<8x32xf32>
    %513 = arith.mulf %504, %433 : vector<8x32xf32>
    %514 = arith.addf %512, %513 : vector<8x32xf32>
    %cst_153 = arith.constant dense<0.000000e+00> : vector<8xf32>
    %515 = vector.multi_reduction <add>, %514, %cst_153 [1] : vector<8x32xf32> to vector<8xf32>
    %516 = vector.shape_cast %515 : vector<8xf32> to vector<8x1xf32>
    %cst_154 = arith.constant 3.200000e+01 : f32
    %517 = vector.broadcast %cst_154 : f32 to vector<8x1xf32>
    %518 = arith.divf %516, %517 : vector<8x1xf32>
    %519 = vector.broadcast %518 : vector<8x1xf32> to vector<8x32xf32>
    %520 = arith.subf %514, %519 : vector<8x32xf32>
    %521 = arith.mulf %520, %520 : vector<8x32xf32>
    %cst_155 = arith.constant dense<0.000000e+00> : vector<8xf32>
    %522 = vector.multi_reduction <add>, %521, %cst_155 [1] : vector<8x32xf32> to vector<8xf32>
    %523 = vector.shape_cast %522 : vector<8xf32> to vector<8x1xf32>
    %cst_156 = arith.constant 3.200000e+01 : f32
    %524 = vector.broadcast %cst_156 : f32 to vector<8x1xf32>
    %525 = arith.divf %523, %524 : vector<8x1xf32>
    %526 = vector.broadcast %518 : vector<8x1xf32> to vector<8x32xf32>
    %527 = arith.subf %514, %526 : vector<8x32xf32>
    %cst_157 = arith.constant 9.99999974E-6 : f32
    %528 = vector.broadcast %cst_157 : f32 to vector<8x1xf32>
    %529 = arith.addf %525, %528 : vector<8x1xf32>
    %530 = math.rsqrt %529 : vector<8x1xf32>
    %531 = vector.broadcast %530 : vector<8x1xf32> to vector<8x32xf32>
    %532 = arith.mulf %527, %531 : vector<8x32xf32>
    %533 = vector.broadcast %61 : vector<1x32xf32> to vector<8x32xf32>
    %534 = arith.mulf %532, %533 : vector<8x32xf32>
    %535 = vector.broadcast %62 : vector<1x32xf32> to vector<8x32xf32>
    %536 = arith.addf %534, %535 : vector<8x32xf32>
    %cst_158 = arith.constant dense<0.000000e+00> : vector<8x64xf32>
    %537 = tpu.matmul %536, %71, %cst_158 {dimension_numbers = #tpu.dot_dimension_numbers<[1], [0], [0], [1], [0, 0, 1, 1], [], []>} : vector<8x32xf32>, vector<32x64xf32>, vector<8x64xf32> -> vector<8x64xf32>
    %538 = vector.broadcast %76 : vector<1x64xf32> to vector<8x64xf32>
    %539 = arith.addf %537, %538 : vector<8x64xf32>
    %cst_159 = arith.constant 0.000000e+00 : f32
    %540 = vector.broadcast %cst_159 : f32 to vector<8x64xf32>
    %541 = arith.maximumf %539, %540 : vector<8x64xf32>
    %cst_160 = arith.constant dense<0.000000e+00> : vector<8x32xf32>
    %542 = tpu.matmul %541, %73, %cst_160 {dimension_numbers = #tpu.dot_dimension_numbers<[1], [0], [0], [1], [0, 0, 1, 1], [], []>} : vector<8x64xf32>, vector<64x32xf32>, vector<8x32xf32> -> vector<8x32xf32>
    %543 = vector.broadcast %63 : vector<1x32xf32> to vector<8x32xf32>
    %544 = arith.addf %542, %543 : vector<8x32xf32>
    %545 = arith.addf %514, %544 : vector<8x32xf32>
    %cst_161 = arith.constant 2.000000e+00 : f32
    %546 = vector.broadcast %cst_161 : f32 to vector<8x32xf32>
    %547 = arith.mulf %546, %545 : vector<8x32xf32>
    %548 = arith.mulf %547, %481 : vector<8x32xf32>
    %549 = arith.subf %482, %548 : vector<8x32xf32>
    %550 = arith.mulf %545, %545 : vector<8x32xf32>
    %cst_162 = arith.constant 9.99999993E-9 : f32
    %551 = vector.broadcast %cst_162 : f32 to vector<8x32xf32>
    %552 = arith.addf %550, %551 : vector<8x32xf32>
    %553 = vector.broadcast %479 : vector<8x1xf32> to vector<8x32xf32>
    %554 = arith.mulf %552, %553 : vector<8x32xf32>
    %555 = arith.addf %549, %554 : vector<8x32xf32>
    %556 = math.log %555 : vector<8x32xf32>
    %cst_163 = arith.constant 5.000000e-01 : f32
    %557 = vector.broadcast %cst_163 : f32 to vector<8x32xf32>
    %558 = arith.mulf %557, %556 : vector<8x32xf32>
    %cst_164 = arith.constant dense<0.000000e+00> : vector<1xf32>
    %559 = vector.multi_reduction <add>, %479, %cst_164 [0] : vector<8x1xf32> to vector<1xf32>
    %560 = vector.shape_cast %559 : vector<1xf32> to vector<1x1xf32>
    %cst_165 = arith.constant 9.99999993E-9 : f32
    %561 = vector.broadcast %cst_165 : f32 to vector<1x1xf32>
    %562 = arith.addf %560, %561 : vector<1x1xf32>
    %563 = tpu.reciprocal %562 {approx = true} : vector<1x1xf32> -> vector<1x1xf32>
    %564 = vector.broadcast %563 : vector<1x1xf32> to vector<8x1xf32>
    %565 = arith.mulf %479, %564 : vector<8x1xf32>
    %cst_166 = arith.constant dense<0.000000e+00> : vector<8xf32>
    %566 = vector.multi_reduction <add>, %545, %cst_166 [1] : vector<8x32xf32> to vector<8xf32>
    %567 = vector.shape_cast %566 : vector<8xf32> to vector<8x1xf32>
    %cst_167 = arith.constant dense<0.000000e+00> : vector<8xf32>
    %568 = vector.multi_reduction <add>, %558, %cst_167 [1] : vector<8x32xf32> to vector<8xf32>
    %569 = vector.shape_cast %568 : vector<8xf32> to vector<8x1xf32>
    %570 = arith.addf %567, %569 : vector<8x1xf32>
    %cst_168 = arith.constant 1.562500e-02 : f32
    %571 = vector.broadcast %cst_168 : f32 to vector<8x1xf32>
    %572 = arith.mulf %570, %571 : vector<8x1xf32>
    %573 = vector.broadcast %572 : vector<8x1xf32> to vector<8x32xf32>
    %574 = arith.subf %545, %573 : vector<8x32xf32>
    %575 = arith.mulf %574, %574 : vector<8x32xf32>
    %cst_169 = arith.constant dense<0.000000e+00> : vector<8xf32>
    %576 = vector.multi_reduction <add>, %575, %cst_169 [1] : vector<8x32xf32> to vector<8xf32>
    %577 = vector.shape_cast %576 : vector<8xf32> to vector<8x1xf32>
    %578 = vector.broadcast %572 : vector<8x1xf32> to vector<8x32xf32>
    %579 = arith.subf %558, %578 : vector<8x32xf32>
    %580 = arith.mulf %579, %579 : vector<8x32xf32>
    %cst_170 = arith.constant dense<0.000000e+00> : vector<8xf32>
    %581 = vector.multi_reduction <add>, %580, %cst_170 [1] : vector<8x32xf32> to vector<8xf32>
    %582 = vector.shape_cast %581 : vector<8xf32> to vector<8x1xf32>
    %583 = arith.addf %577, %582 : vector<8x1xf32>
    %cst_171 = arith.constant 1.562500e-02 : f32
    %584 = vector.broadcast %cst_171 : f32 to vector<8x1xf32>
    %585 = arith.mulf %583, %584 : vector<8x1xf32>
    %cst_172 = arith.constant 9.99999974E-6 : f32
    %586 = vector.broadcast %cst_172 : f32 to vector<8x1xf32>
    %587 = arith.addf %585, %586 : vector<8x1xf32>
    %588 = math.rsqrt %587 : vector<8x1xf32>
    %589 = vector.broadcast %572 : vector<8x1xf32> to vector<8x32xf32>
    %590 = arith.subf %545, %589 : vector<8x32xf32>
    %591 = vector.broadcast %588 : vector<8x1xf32> to vector<8x32xf32>
    %592 = arith.mulf %590, %591 : vector<8x32xf32>
    %593 = vector.broadcast %57 : vector<1x32xf32> to vector<8x32xf32>
    %594 = arith.mulf %592, %593 : vector<8x32xf32>
    %595 = vector.broadcast %59 : vector<1x32xf32> to vector<8x32xf32>
    %596 = arith.addf %594, %595 : vector<8x32xf32>
    %597 = vector.broadcast %572 : vector<8x1xf32> to vector<8x32xf32>
    %598 = arith.subf %558, %597 : vector<8x32xf32>
    %599 = vector.broadcast %588 : vector<8x1xf32> to vector<8x32xf32>
    %600 = arith.mulf %598, %599 : vector<8x32xf32>
    %601 = vector.broadcast %58 : vector<1x32xf32> to vector<8x32xf32>
    %602 = arith.mulf %600, %601 : vector<8x32xf32>
    %603 = vector.broadcast %60 : vector<1x32xf32> to vector<8x32xf32>
    %604 = arith.addf %602, %603 : vector<8x32xf32>
    %605 = tpu.concatenate %596, %604 in 0 : vector<8x32xf32>, vector<8x32xf32> -> vector<16x32xf32>
    %cst_173 = arith.constant dense<0.000000e+00> : vector<16x32xf32>
    %606 = tpu.matmul %605, %65, %cst_173 {dimension_numbers = #tpu.dot_dimension_numbers<[1], [0], [0], [1], [0, 0, 1, 1], [], []>} : vector<16x32xf32>, vector<32x32xf32>, vector<16x32xf32> -> vector<16x32xf32>
    %607 = vector.extract_strided_slice %606 {offsets = [0, 0], sizes = [8, 32], strides = [1, 1]} : vector<16x32xf32> to vector<8x32xf32>
    %608 = vector.extract_strided_slice %606 {offsets = [8, 0], sizes = [8, 32], strides = [1, 1]} : vector<16x32xf32> to vector<8x32xf32>
    %cst_174 = arith.constant -2.000000e+00 : f32
    %609 = vector.broadcast %cst_174 : f32 to vector<8x32xf32>
    %610 = arith.mulf %609, %608 : vector<8x32xf32>
    %611 = math.exp %610 : vector<8x32xf32>
    %cst_175 = arith.constant 0.176776692 : f32
    %612 = vector.broadcast %cst_175 : f32 to vector<8x32xf32>
    %613 = arith.mulf %611, %612 : vector<8x32xf32>
    %614 = arith.mulf %607, %613 : vector<8x32xf32>
    %cst_176 = arith.constant -2.000000e+00 : f32
    %615 = vector.broadcast %cst_176 : f32 to vector<8x32xf32>
    %616 = arith.mulf %615, %614 : vector<8x32xf32>
    %617 = tpu.concatenate %613, %616 in 1 : vector<8x32xf32>, vector<8x32xf32> -> vector<8x64xf32>
    %cst_177 = arith.constant dense<0.000000e+00> : vector<8x16xf32>
    %618 = tpu.matmul %617, %35, %cst_177 {dimension_numbers = #tpu.dot_dimension_numbers<[1], [0], [0], [1], [0, 0, 1, 1], [], []>} : vector<8x64xf32>, vector<64x16xf32>, vector<8x16xf32> -> vector<8x16xf32>
    %619 = arith.mulf %607, %607 : vector<8x32xf32>
    %620 = arith.mulf %619, %613 : vector<8x32xf32>
    %cst_178 = arith.constant dense<0.000000e+00> : vector<8xf32>
    %621 = vector.multi_reduction <add>, %620, %cst_178 [1] : vector<8x32xf32> to vector<8xf32>
    %622 = vector.shape_cast %621 : vector<8xf32> to vector<8x1xf32>
    %623 = vector.broadcast %622 : vector<8x1xf32> to vector<8x16xf32>
    %624 = arith.addf %618, %623 : vector<8x16xf32>
    %cst_179 = arith.constant 0.000000e+00 : f32
    %625 = vector.broadcast %cst_179 : f32 to vector<8x16xf32>
    %626 = arith.subf %625, %624 : vector<8x16xf32>
    %627 = math.exp %626 : vector<8x16xf32>
    %cst_180 = arith.constant 9.99999993E-9 : f32
    %628 = vector.broadcast %cst_180 : f32 to vector<8x16xf32>
    %629 = arith.addf %627, %628 : vector<8x16xf32>
    %630 = vector.broadcast %565 : vector<8x1xf32> to vector<8x16xf32>
    %631 = arith.mulf %629, %630 : vector<8x16xf32>
    %cst_181 = arith.constant dense<0.000000e+00> : vector<16xf32>
    %632 = vector.multi_reduction <add>, %631, %cst_181 [0] : vector<8x16xf32> to vector<16xf32>
    %633 = vector.shape_cast %632 : vector<16xf32> to vector<1x16xf32>
    %634 = tpu.reciprocal %633 {approx = true} : vector<1x16xf32> -> vector<1x16xf32>
    %635 = vector.broadcast %634 : vector<1x16xf32> to vector<8x16xf32>
    %636 = arith.mulf %631, %635 : vector<8x16xf32>
    %cst_182 = arith.constant dense<0.000000e+00> : vector<8xf32>
    %637 = vector.multi_reduction <add>, %636, %cst_182 [1] : vector<8x16xf32> to vector<8xf32>
    %638 = vector.shape_cast %637 : vector<8xf32> to vector<8x1xf32>
    %639 = tpu.reciprocal %638 {approx = true} : vector<8x1xf32> -> vector<8x1xf32>
    %640 = vector.broadcast %639 : vector<8x1xf32> to vector<8x16xf32>
    %641 = arith.mulf %636, %640 : vector<8x16xf32>
    %642 = arith.mulf %638, %639 : vector<8x1xf32>
    %cst_183 = arith.constant dense<0.000000e+00> : vector<8x64xf32>
    %643 = tpu.matmul %641, %37, %cst_183 {dimension_numbers = #tpu.dot_dimension_numbers<[1], [0], [0], [1], [0, 0, 1, 1], [], []>} : vector<8x16xf32>, vector<16x64xf32>, vector<8x64xf32> -> vector<8x64xf32>
    %644 = vector.extract_strided_slice %643 {offsets = [0, 0], sizes = [8, 32], strides = [1, 1]} : vector<8x64xf32> to vector<8x32xf32>
    %645 = vector.extract_strided_slice %643 {offsets = [0, 32], sizes = [8, 32], strides = [1, 1]} : vector<8x64xf32> to vector<8x32xf32>
    %cst_184 = arith.constant dense<0.000000e+00> : vector<8x96xf32>
    %646 = tpu.matmul %644, %67, %cst_184 {dimension_numbers = #tpu.dot_dimension_numbers<[1], [0], [0], [1], [0, 0, 1, 1], [], []>} : vector<8x32xf32>, vector<32x96xf32>, vector<8x96xf32> -> vector<8x96xf32>
    %647 = vector.broadcast %74 : vector<1x96xf32> to vector<8x96xf32>
    %648 = arith.addf %646, %647 : vector<8x96xf32>
    %cst_185 = arith.constant dense<0.000000e+00> : vector<8x96xf32>
    %649 = tpu.matmul %596, %69, %cst_185 {dimension_numbers = #tpu.dot_dimension_numbers<[1], [0], [0], [1], [0, 0, 1, 1], [], []>} : vector<8x32xf32>, vector<32x96xf32>, vector<8x96xf32> -> vector<8x96xf32>
    %650 = vector.broadcast %75 : vector<1x96xf32> to vector<8x96xf32>
    %651 = arith.addf %649, %650 : vector<8x96xf32>
    %652 = vector.extract_strided_slice %648 {offsets = [0, 0], sizes = [8, 32], strides = [1, 1]} : vector<8x96xf32> to vector<8x32xf32>
    %653 = vector.extract_strided_slice %651 {offsets = [0, 0], sizes = [8, 32], strides = [1, 1]} : vector<8x96xf32> to vector<8x32xf32>
    %654 = arith.addf %652, %653 : vector<8x32xf32>
    %655 = arith.negf %654 : vector<8x32xf32>
    %656 = math.exp %655 : vector<8x32xf32>
    %cst_186 = arith.constant 1.000000e+00 : f32
    %657 = vector.broadcast %cst_186 : f32 to vector<8x32xf32>
    %658 = arith.addf %657, %656 : vector<8x32xf32>
    %659 = arith.divf %657, %658 : vector<8x32xf32>
    %660 = vector.extract_strided_slice %648 {offsets = [0, 32], sizes = [8, 32], strides = [1, 1]} : vector<8x96xf32> to vector<8x32xf32>
    %661 = vector.extract_strided_slice %651 {offsets = [0, 32], sizes = [8, 32], strides = [1, 1]} : vector<8x96xf32> to vector<8x32xf32>
    %662 = arith.addf %660, %661 : vector<8x32xf32>
    %663 = arith.negf %662 : vector<8x32xf32>
    %664 = math.exp %663 : vector<8x32xf32>
    %cst_187 = arith.constant 1.000000e+00 : f32
    %665 = vector.broadcast %cst_187 : f32 to vector<8x32xf32>
    %666 = arith.addf %665, %664 : vector<8x32xf32>
    %667 = arith.divf %665, %666 : vector<8x32xf32>
    %668 = vector.extract_strided_slice %648 {offsets = [0, 64], sizes = [8, 32], strides = [1, 1]} : vector<8x96xf32> to vector<8x32xf32>
    %669 = vector.extract_strided_slice %651 {offsets = [0, 64], sizes = [8, 32], strides = [1, 1]} : vector<8x96xf32> to vector<8x32xf32>
    %670 = arith.mulf %659, %669 : vector<8x32xf32>
    %671 = arith.addf %668, %670 : vector<8x32xf32>
    %672 = math.tanh %671 : vector<8x32xf32>
    %cst_188 = arith.constant 1.000000e+00 : f32
    %673 = vector.broadcast %cst_188 : f32 to vector<8x32xf32>
    %674 = arith.subf %673, %667 : vector<8x32xf32>
    %675 = arith.mulf %674, %672 : vector<8x32xf32>
    %676 = arith.mulf %667, %596 : vector<8x32xf32>
    %677 = arith.addf %675, %676 : vector<8x32xf32>
    %cst_189 = arith.constant dense<0.000000e+00> : vector<8xf32>
    %678 = vector.multi_reduction <add>, %677, %cst_189 [1] : vector<8x32xf32> to vector<8xf32>
    %679 = vector.shape_cast %678 : vector<8xf32> to vector<8x1xf32>
    %cst_190 = arith.constant 3.200000e+01 : f32
    %680 = vector.broadcast %cst_190 : f32 to vector<8x1xf32>
    %681 = arith.divf %679, %680 : vector<8x1xf32>
    %682 = vector.broadcast %681 : vector<8x1xf32> to vector<8x32xf32>
    %683 = arith.subf %677, %682 : vector<8x32xf32>
    %684 = arith.mulf %683, %683 : vector<8x32xf32>
    %cst_191 = arith.constant dense<0.000000e+00> : vector<8xf32>
    %685 = vector.multi_reduction <add>, %684, %cst_191 [1] : vector<8x32xf32> to vector<8xf32>
    %686 = vector.shape_cast %685 : vector<8xf32> to vector<8x1xf32>
    %cst_192 = arith.constant 3.200000e+01 : f32
    %687 = vector.broadcast %cst_192 : f32 to vector<8x1xf32>
    %688 = arith.divf %686, %687 : vector<8x1xf32>
    %689 = vector.broadcast %681 : vector<8x1xf32> to vector<8x32xf32>
    %690 = arith.subf %677, %689 : vector<8x32xf32>
    %cst_193 = arith.constant 9.99999974E-6 : f32
    %691 = vector.broadcast %cst_193 : f32 to vector<8x1xf32>
    %692 = arith.addf %688, %691 : vector<8x1xf32>
    %693 = math.rsqrt %692 : vector<8x1xf32>
    %694 = vector.broadcast %693 : vector<8x1xf32> to vector<8x32xf32>
    %695 = arith.mulf %690, %694 : vector<8x32xf32>
    %696 = vector.broadcast %61 : vector<1x32xf32> to vector<8x32xf32>
    %697 = arith.mulf %695, %696 : vector<8x32xf32>
    %698 = vector.broadcast %62 : vector<1x32xf32> to vector<8x32xf32>
    %699 = arith.addf %697, %698 : vector<8x32xf32>
    %cst_194 = arith.constant dense<0.000000e+00> : vector<8x64xf32>
    %700 = tpu.matmul %699, %71, %cst_194 {dimension_numbers = #tpu.dot_dimension_numbers<[1], [0], [0], [1], [0, 0, 1, 1], [], []>} : vector<8x32xf32>, vector<32x64xf32>, vector<8x64xf32> -> vector<8x64xf32>
    %701 = vector.broadcast %76 : vector<1x64xf32> to vector<8x64xf32>
    %702 = arith.addf %700, %701 : vector<8x64xf32>
    %cst_195 = arith.constant 0.000000e+00 : f32
    %703 = vector.broadcast %cst_195 : f32 to vector<8x64xf32>
    %704 = arith.maximumf %702, %703 : vector<8x64xf32>
    %cst_196 = arith.constant dense<0.000000e+00> : vector<8x32xf32>
    %705 = tpu.matmul %704, %73, %cst_196 {dimension_numbers = #tpu.dot_dimension_numbers<[1], [0], [0], [1], [0, 0, 1, 1], [], []>} : vector<8x64xf32>, vector<64x32xf32>, vector<8x32xf32> -> vector<8x32xf32>
    %706 = vector.broadcast %63 : vector<1x32xf32> to vector<8x32xf32>
    %707 = arith.addf %705, %706 : vector<8x32xf32>
    %708 = arith.addf %677, %707 : vector<8x32xf32>
    %cst_197 = arith.constant 2.000000e+00 : f32
    %709 = vector.broadcast %cst_197 : f32 to vector<8x32xf32>
    %710 = arith.mulf %709, %708 : vector<8x32xf32>
    %711 = arith.mulf %710, %644 : vector<8x32xf32>
    %712 = arith.subf %645, %711 : vector<8x32xf32>
    %713 = arith.mulf %708, %708 : vector<8x32xf32>
    %cst_198 = arith.constant 9.99999993E-9 : f32
    %714 = vector.broadcast %cst_198 : f32 to vector<8x32xf32>
    %715 = arith.addf %713, %714 : vector<8x32xf32>
    %716 = vector.broadcast %642 : vector<8x1xf32> to vector<8x32xf32>
    %717 = arith.mulf %715, %716 : vector<8x32xf32>
    %718 = arith.addf %712, %717 : vector<8x32xf32>
    %719 = math.log %718 : vector<8x32xf32>
    %cst_199 = arith.constant 5.000000e-01 : f32
    %720 = vector.broadcast %cst_199 : f32 to vector<8x32xf32>
    %721 = arith.mulf %720, %719 : vector<8x32xf32>
    %c1_200 = arith.constant 1 : index
    %c0_201 = arith.constant 0 : index
    %c0_202 = arith.constant 0 : index
    %722 = vector.load %arg7[%c1_200, %c0_201, %c0_202] : memref<3x128x128xf32, #tpu.memory_space<vmem>>, vector<1x64x128xf32>
    %723 = vector.shape_cast %722 : vector<1x64x128xf32> to vector<64x128xf32>
    %c2_203 = arith.constant 2 : index
    %c0_204 = arith.constant 0 : index
    %c0_205 = arith.constant 0 : index
    %724 = vector.load %arg7[%c2_203, %c0_204, %c0_205] : memref<3x128x128xf32, #tpu.memory_space<vmem>>, vector<1x128x32xf32>
    %725 = vector.shape_cast %724 : vector<1x128x32xf32> to vector<128x32xf32>
    %c1_206 = arith.constant 1 : index
    %c0_207 = arith.constant 0 : index
    %726 = vector.load %arg5[%c1_206, %c0_207] : memref<2x128xf32, #tpu.memory_space<vmem>>, vector<1x128xf32>
    %c13 = arith.constant 13 : index
    %c0_208 = arith.constant 0 : index
    %727 = vector.load %arg3[%c13, %c0_208] : memref<14x32xf32, #tpu.memory_space<vmem>>, vector<1x32xf32>
    %728 = tpu.concatenate %708, %721 in 1 : vector<8x32xf32>, vector<8x32xf32> -> vector<8x64xf32>
    %cst_209 = arith.constant dense<0.000000e+00> : vector<8x128xf32>
    %729 = tpu.matmul %728, %723, %cst_209 {dimension_numbers = #tpu.dot_dimension_numbers<[1], [0], [0], [1], [0, 0, 1, 1], [], []>} : vector<8x64xf32>, vector<64x128xf32>, vector<8x128xf32> -> vector<8x128xf32>
    %730 = vector.broadcast %726 : vector<1x128xf32> to vector<8x128xf32>
    %731 = arith.addf %729, %730 : vector<8x128xf32>
    %cst_210 = arith.constant 0.000000e+00 : f32
    %732 = vector.broadcast %cst_210 : f32 to vector<8x128xf32>
    %733 = arith.maximumf %731, %732 : vector<8x128xf32>
    %cst_211 = arith.constant dense<0.000000e+00> : vector<8x32xf32>
    %734 = tpu.matmul %733, %725, %cst_211 {dimension_numbers = #tpu.dot_dimension_numbers<[1], [0], [0], [1], [0, 0, 1, 1], [], []>} : vector<8x128xf32>, vector<128x32xf32>, vector<8x32xf32> -> vector<8x32xf32>
    %735 = vector.broadcast %727 : vector<1x32xf32> to vector<8x32xf32>
    %736 = arith.addf %734, %735 : vector<8x32xf32>
    %c0_212 = arith.constant 0 : index
    %c0_213 = arith.constant 0 : index
    %c0_214 = arith.constant 0 : index
    %737 = vector.load %arg8[%c0_212, %c0_213, %c0_214] : memref<1x8x32xf32, #tpu.memory_space<vmem>>, vector<1x8x32xf32>
    %738 = vector.shape_cast %737 : vector<1x8x32xf32> to vector<8x32xf32>
    %739 = vector.shape_cast %736 : vector<8x32xf32> to vector<1x8x32xf32>
    tpu.vector_store %arg8[%c0_212, %c0_213, %c0_214], %739 {strides = array<i32>} : memref<1x8x32xf32, #tpu.memory_space<vmem>>, vector<1x8x32xf32>,
    return
  }
  func.func @transform_0(%arg0: i32) -> (i32, i32, i32) {
    %c0_i32 = arith.constant 0 : i32
    %c0_i32_0 = arith.constant 0 : i32
    %c0_i32_1 = arith.constant 0 : i32
    return %arg0, %c0_i32, %c0_i32_0 : i32, i32, i32
  }
  func.func @transform_1(%arg0: i32) -> (i32, i32, i32, i32) {
    %c0_i32 = arith.constant 0 : i32
    %c0_i32_0 = arith.constant 0 : i32
    %c0_i32_1 = arith.constant 0 : i32
    %c0_i32_2 = arith.constant 0 : i32
    return %arg0, %c0_i32, %c0_i32_0, %c0_i32_1 : i32, i32, i32, i32
  }
  func.func @transform_2(%arg0: i32) -> (i32, i32) {
    %c0_i32 = arith.constant 0 : i32
    %c0_i32_0 = arith.constant 0 : i32
    %c0_i32_1 = arith.constant 0 : i32
    return %c0_i32, %c0_i32_0 : i32, i32
  }
  func.func @transform_3(%arg0: i32) -> (i32, i32) {
    %c0_i32 = arith.constant 0 : i32
    %c0_i32_0 = arith.constant 0 : i32
    %c0_i32_1 = arith.constant 0 : i32
    return %c0_i32, %c0_i32_0 : i32, i32
  }
  func.func @transform_4(%arg0: i32) -> (i32, i32) {
    %c0_i32 = arith.constant 0 : i32
    %c0_i32_0 = arith.constant 0 : i32
    %c0_i32_1 = arith.constant 0 : i32
    return %c0_i32, %c0_i32_0 : i32, i32
  }
  func.func @transform_5(%arg0: i32) -> (i32, i32, i32) {
    %c0_i32 = arith.constant 0 : i32
    %c0_i32_0 = arith.constant 0 : i32
    %c0_i32_1 = arith.constant 0 : i32
    %c0_i32_2 = arith.constant 0 : i32
    return %c0_i32, %c0_i32_0, %c0_i32_1 : i32, i32, i32
  }
  func.func @transform_6(%arg0: i32) -> (i32, i32, i32) {
    %c0_i32 = arith.constant 0 : i32
    %c0_i32_0 = arith.constant 0 : i32
    %c0_i32_1 = arith.constant 0 : i32
    %c0_i32_2 = arith.constant 0 : i32
    return %c0_i32, %c0_i32_0, %c0_i32_1 : i32, i32, i32
  }
  func.func @transform_7(%arg0: i32) -> (i32, i32, i32) {
    %c0_i32 = arith.constant 0 : i32
    %c0_i32_0 = arith.constant 0 : i32
    %c0_i32_1 = arith.constant 0 : i32
    return %arg0, %c0_i32, %c0_i32_0 : i32, i32, i32
  }
}

</mosaic_0001>

<bundles_post_ra>
// kernel: tpu_custom_call.1
= control target key start
LH: loop header
LB: loop body
LE: loop exit
PB: predicated region body
PF: predicated region fallthrough
CT: control target
= control target key end

     0   :  { %s6011_s0 = inlined_call_operand.hbm [shape: f32[2,16,32], index: 0, kind: input, shape index: {}]   ;;  %s6012_s1 = inlined_call_operand.hbm [shape: f32[2,2,8,32], index: 1, kind: input, shape index: {}]   ;;  %s6013_s2 = inlined_call_operand.hbm [shape: f32[14,32], index: 2, kind: input, shape index: {}]   ;;  %s6014_s3 = inlined_call_operand.vmem [shape: f32[2,96], index: 3, kind: input, shape index: {}]   ;;  %s6015_s4 = inlined_call_operand.vmem [shape: f32[2,128], index: 4, kind: input, shape index: {}]   ;;  %s6016_s5 = inlined_call_operand.hbm [shape: f32[6,32,96], index: 5, kind: input, shape index: {}]   ;;  %s6017_s6 = inlined_call_operand.hbm [shape: f32[3,128,128], index: 6, kind: input, shape index: {}]   ;;  %s6018_s7 = inlined_call_operand.hbm [shape: f32[2,8,32], index: 7, kind: output, shape index: {}]  }
   0x1   :  { %6027 = sst [smem:[#allocation19_spill]] %s6011_s0 }
   0x2   :  { %6028 = sst [smem:[#allocation20_spill]] %s6013_s2 }
   0x3   :  { %6029 = sst [smem:[#allocation21_spill]] %s6016_s5 }
   0x4   :  { %6030 = sst [smem:[#allocation22_spill]] %s6017_s6 }
   0x5   :  { %12 = vsyncpa [#allocation3], 0 }
   0x6   :  { %14 = vsyncpa [#allocation3 + $0x1], 0 }
   0x7   :  { %15 = vsyncpa [#allocation6], 0 }
   0x8   :  { %17 = vsyncpa [#allocation6 + $0x1], 0 }
   0x9   :  { %18 = vsyncpa [#allocation9], 0 }
   0xa   :  { %19 = vsyncpa [#allocation4], 0 }
   0xb   :  { %21 = vsyncpa [#allocation4 + $0x1], 0  ;;  %s5010_s24 = smov 0   ;;  %s5012_s25 = smov 0  }
   0xc   :  { %s5014_s26 = smov 0   ;;  %s5016_s27 = smov 0  }
   0xd LB: > { %6031 = sst [smem:[#allocation17_spill]] %s4951_s26  ;;  %s5031_s28 = sadd.s32 4294967295, %s4955_s27   ;;  %s4955_s27 = sphi %s5016_s27, %s6057_s27   ;;  %s4951_s26 = sphi %s5014_s26, %s6054_s26   ;;  %s4947_s25 = sphi %s5012_s25, %s6056_s25   ;;  %s4943_s24 = sphi %s5010_s24, %s6055_s24  }
   0xe   : > { %s3813_s29 = sadd.s32 4294967294, %s4955_s27   ;;  %p47_p0 = scmp.ne.s32.totalorder %s4947_s25, %s4943_s24 }
   0xf   : > { %p6019_p1 = scmp.eq.s32.totalorder %s5031_s28, 0  ;;  %p202_p2 = scmp.eq.s32.totalorder %s5031_s28, 1 }
  0x10   : > { %p208_p3 = scmp.eq.s32.totalorder %s3813_s29, 1  ;;  %p3814_p5 = scmp.ge.s32.totalorder %s4955_s27, 1 }
  0x11   : > { %p5040_p4 = por %p6019_p1, %p47_p0  ;;  %p215_p7 = scmp.lt.s32.totalorder %s4955_s27, 3 }
  0x12   : > { %p5045_p6 = por %p208_p3, %p47_p0  ;;  %s4957_s10 = smov [#allocation7]  }
  0x13   : > { %s6032_s30 = scalar_select %p5040_p4, 1, 0 }
  0x14   : > { %s6033_s8 = scalar_select %p5045_p6, 1, 0 }
  0x15   : > { %p5050_p8 = pnand %p3814_p5, %p215_p7  ;;  %s227_s11 = sshll.u32 %s4957_s10, 4  ;;  %s228_s11 = int_to_ptr.vmem [resolvable:$true] %s227_s11 }
  0x16   : > { %s4958_s13 = smov [#allocation8]   ;;  %s4959_s15 = smov [#allocation10]  }
  0x17   : > { %p4552_p9 = pneg %p5050_p8  ;;  %s246_s14 = sshll.u32 %s4958_s13, 4  ;;  %s247_s14 = int_to_ptr.vmem [resolvable:$true] %s246_s14 }
  0x18   : > { %s259_s16 = sshll.u32 %s4959_s15, 4  ;;  %s4756_s17 = scalar_lea.vmem %s228_s11, 256  ;;  %s260_s16 = int_to_ptr.vmem [resolvable:$true] %s259_s16 }
  0x19   : > { %p5059_p11 = pnand %p4552_p9, %p6019_p1  ;;  %p4757_p13 = scmp.ne.s32.totalorder %s228_s11, %s4756_s17 }
  0x1a   : > { %p4764_p5 = scmp.lt.s32.totalorder %s228_s11, %s228_s11  ;;  %p4765_p7 = scmp.lt.s32.totalorder %s4756_s17, %s4756_s17 }
  0x1b   : > { %p4747_p12 = pneg %p5059_p11 }
  0x1c   : > { %p4766_p9 = por %p4765_p7, %p4764_p5 }
  0x1d   : > { %p4759_p0 = pnand %p4757_p13, %p4747_p12 }
  0x1f   : > { %p4760_p3 = pneg %p4759_p0 }
  0x21   : > { %p4767_p10 = pnand %p4766_p9, %p4760_p3 }
  0x23   : > { %4770 = shalt.err (!%p4767_p10)
}
  0x24   : > { %s6020_s18 = smov 128   ;;  %s6022_s19 = smov 8  }
  0x25   : > { %s6036_s2 = sld [smem:[#allocation20_spill]]  ;;  %s4782_s22 = scalar_lea.vmem %s247_s14, 3072 }
  0x26   : > { %p4783_p13 = scmp.ne.s32.totalorder %s247_s14, %s4782_s22  ;;  %p4790_p3 = scmp.lt.s32.totalorder %s247_s14, %s247_s14 }
  0x27   : > { %p4791_p10 = scmp.lt.s32.totalorder %s4782_s22, %s4782_s22 }
  0x28   : > { %p4785_p0 = pnand %p4783_p13, %p4747_p12 }
  0x29   : > { %p4792_p7 = por %p4791_p10, %p4790_p3 }
  0x2a   : > { %p4786_p5 = pneg %p4785_p0 }
  0x2b   : > { %4555 = dma.hbm_to_vmem [thread:$0]  (!%p5059_p11), %s6036_s2, 256, %s228_s11, [#allocation6], %s6020_s18, %s6020_s18, %s6022_s19  }
  0x2c   : > { %p4793_p9 = pnand %p4792_p7, %p4786_p5 }
  0x2e   : > { %4796 = shalt.err (!%p4793_p9)
}
  0x2f   : > { %s6037_s5 = sld [smem:[#allocation21_spill]]  ;;  %s4808_s10 = scalar_lea.vmem %s260_s16, 6144 }
  0x30   : > { %p4809_p1 = scmp.ne.s32.totalorder %s260_s16, %s4808_s10  ;;  %p4816_p3 = scmp.lt.s32.totalorder %s260_s16, %s260_s16 }
  0x31   : > { %p4817_p5 = scmp.lt.s32.totalorder %s4808_s10, %s4808_s10 }
  0x32   : > { %p4811_p13 = pnand %p4809_p1, %p4747_p12 }
  0x33   : > { %p4818_p10 = por %p4817_p5, %p4816_p3 }
  0x34   : > { %p4812_p0 = pneg %p4811_p13 }
  0x35   : > { %4558 = dma.hbm_to_vmem [thread:$0]  (!%p5059_p11), %s6037_s5, 3072, %s247_s14, [#allocation9], %s6020_s18, %s6020_s18, %s6022_s19  }
  0x36   : > { %p4819_p7 = pnand %p4818_p10, %p4812_p0 }
  0x38   : > { %4822 = shalt.err (!%p4819_p7)
}
  0x39   : > { %s6038_s6 = sld [smem:[#allocation22_spill]]  ;;  %s5099_s14 = sadd.s32 1, %s4955_s27  }
  0x3a   : > { %s31_s12 = ssub.s32 %s4955_s27, %s5099_s14  ;;  %s34_s15 = sadd.s32 1, %s4951_s26 }
  0x3b   : > { %p32_p1 = scmp.eq.s32.totalorder %s31_s12, 0  ;;  %p41_p12 = scmp.ne.s32.totalorder %s4951_s26, %s4947_s25 }
  0x3c   : > { %p42_p9 = scmp.eq.s32.totalorder %s4955_s27, 0  ;;  %p4576_p13 = scmp.lt.s32.totalorder %s4955_s27, 2 }
  0x3d   : > { %s5109_s17 = scalar_select %p32_p1, %s4951_s26, %s34_s15  }
  0x3e   : > { %p43_p0 = por %p42_p9, %p41_p12  ;;  %p5113_p3 = por %p202_p2, %p41_p12 }
  0x3f   : > { %4561 = dma.hbm_to_vmem [thread:$0]  (!%p5059_p11), %s6038_s6, 6144, %s260_s16, [#allocation9], %s6020_s18, %s6020_s18, %s6022_s19  }
  0x40   : > { %6039 = sst [smem:[#allocation18_spill]] %s5109_s17  ;;  %s273_s21 = sand.u32 1, %s4951_s26  }
  0x41   : > { %s6040_s20 = scalar_select %p5113_p3, 1, 0 }
  0x42   : > { %s3894_s22 = sshll.u32 %s4955_s27, 8  ;;  %s5119_s16 = sshll.u32 %s273_s21, 4 }
  0x43   : > { %s6041_s0 = sld [smem:[#allocation19_spill]]  ;;  %s277_s11 = scalar_lea.vmem [#allocation2], %s5119_s16 }
  0x44   : > { %s284_s13 = sshll.u32 %s277_s11, 4  ;;  %p5127_p11 = pnand %p4576_p13, %p43_p0  ;;  %s5131_s13 = int_to_ptr.vmem [resolvable:$true] %s284_s13 }
  0x45   : > { %s5136_s23 = scalar_lea.hbm %s6012_s1, %s3894_s22  ;;  %s5138_s29 = scalar_lea.sflag [#allocation3], %s273_s21 }
  0x46   : > { %p4825_p5 = pneg %p5127_p11 }
  0x49   : > { %s5124_s10 = scalar_lea.hbm %s6041_s0, %s3894_s22  ;;  %s4828_s5 = scalar_lea.hbm %s6041_s0, 512 }
  0x4a   : > { %s4823_s19 = scalar_lea.hbm %s5124_s10, 256  ;;  %p4829_p1 = scmp.lt.s32.totalorder %s5124_s10, %s6041_s0 }
  0x4b   : > { %p4824_p2 = scmp.ne.s32.totalorder %s5124_s10, %s4823_s19  ;;  %p4830_p12 = scmp.lt.s32.totalorder %s4828_s5, %s4823_s19 }
  0x4d   : > { %p4826_p10 = pnand %p4825_p5, %p4824_p2  ;;  %p4831_p9 = por %p4830_p12, %p4829_p1 }
  0x4f   : > { %p4827_p7 = pneg %p4826_p10 }
  0x51   : > { %p4832_p13 = pnand %p4831_p9, %p4827_p7 }
  0x53   : > { %4835 = shalt.err (!%p4832_p13)
}
  0x54   : > { %s4836_s18 = scalar_lea.vmem %s5131_s13, 256  ;;  %s4962_s2 = smov [#allocation2]  }
  0x55   : > { %p4837_p0 = scmp.ne.s32.totalorder %s5131_s13, %s4836_s18  ;;  %s4841_s21 = sshll.u32 %s4962_s2, 4  ;;  %s4842_s21 = int_to_ptr.vmem [resolvable:$false] %s4841_s21 }
  0x56   : > { %s4843_s22 = scalar_lea.vmem %s4842_s21, 512  ;;  %p4844_p6 = scmp.lt.s32.totalorder %s5131_s13, %s4842_s21 }
  0x57   : > { %p4839_p2 = pnand %p4837_p0, %p4825_p5  ;;  %p4845_p3 = scmp.lt.s32.totalorder %s4843_s22, %s4836_s18 }
  0x59   : > { %p4840_p10 = pneg %p4839_p2  ;;  %p4846_p4 = por %p4845_p3, %p4844_p6 }
  0x5b   : > { %p4847_p1 = pnand %p4846_p4, %p4840_p10 }
  0x5d   : > { %4850 = shalt.err (!%p4847_p1)
}
  0x5e   : > { %s6043_s5 = smov 8   ;;  %s6044_s6 = smov 128  }
  0x5f   : > { %4565 = dma.hbm_to_vmem [thread:$0]  (!%p5127_p11), %s5124_s10, 256, %s5131_s13, %s5138_s29, %s6044_s6, %s6044_s6, %s6043_s5  }
  0x60   : > { %s298_s19 = scalar_lea.vmem [#allocation5], %s5119_s16  ;;  %s294_s15 = sand.u32 1, %s4955_s27  }
  0x61   : > { %s305_s17 = sshll.u32 %s298_s19, 4  ;;  %s295_s11 = scalar_lea.sflag [#allocation6], %s294_s15  ;;  %s5170_s17 = int_to_ptr.vmem [resolvable:$true] %s305_s17 }
  0x62   : > { %s4851_s18 = scalar_lea.hbm %s5136_s23, 256  ;;  %s4856_s22 = scalar_lea.hbm %s6012_s1, 512 }
  0x63   : > { %p4852_p4 = scmp.ne.s32.totalorder %s5136_s23, %s4851_s18  ;;  %p4857_p7 = scmp.lt.s32.totalorder %s5136_s23, %s6012_s1 }
  0x64   : > { %p4858_p12 = scmp.lt.s32.totalorder %s4856_s22, %s4851_s18 }
  0x65   : > { %p4854_p6 = pnand %p4852_p4, %p4825_p5 }
  0x66   : > { %p4859_p9 = por %p4858_p12, %p4857_p7 }
  0x67   : > { %p4855_p3 = pneg %p4854_p6 }
  0x69   : > { %p4860_p13 = pnand %p4859_p9, %p4855_p3 }
  0x6b   : > { %4863 = shalt.err (!%p4860_p13)
}
  0x6c   : > { %s4864_s16 = scalar_lea.vmem %s5170_s17, 256  ;;  %s4963_s10 = smov [#allocation5]  }
  0x6d   : > { %p4865_p0 = scmp.ne.s32.totalorder %s5170_s17, %s4864_s16  ;;  %s4869_s13 = sshll.u32 %s4963_s10, 4  ;;  %s4870_s13 = int_to_ptr.vmem [resolvable:$false] %s4869_s13 }
  0x6e   : > { %s4871_s29 = scalar_lea.vmem %s4870_s13, 512  ;;  %p4872_p1 = scmp.lt.s32.totalorder %s5170_s17, %s4870_s13 }
  0x6f   : > { %p4867_p2 = pnand %p4865_p0, %p4825_p5  ;;  %p4873_p4 = scmp.lt.s32.totalorder %s4871_s29, %s4864_s16 }
  0x71   : > { %p4868_p10 = pneg %p4867_p2  ;;  %p4874_p6 = por %p4873_p4, %p4872_p1 }
  0x73   : > { %p4875_p7 = pnand %p4874_p6, %p4868_p10 }
  0x75   : > { %4878 = shalt.err (!%p4875_p7)
}
  0x76   : > { %4568 = dma.hbm_to_vmem [thread:$0]  (!%p5127_p11), %s5136_s23, 256, %s5170_s17, %s295_s11, %s6044_s6, %s6044_s6, %s6043_s5  }
  0x77   : > { %317 = sbr.rel (%p5050_p8) target bundleno = 13386 (0x344a), region = 48  ;;  %s5200_s0 = sand.u32 (!%p5050_p8), 1, %s4947_s25  }
  0x78   : > { %s3826_s26 = sshll.u32 (!%p5050_p8), %s5200_s0, 4  ;;  %s320_s19 = scalar_lea.sflag (!%p5050_p8), [#allocation3], %s5200_s0 }
  0x79   : > { %s323_s15 = scalar_lea.vmem (!%p5050_p8), [#allocation2], %s3826_s26  ;;  %p6045_p5 = scmp.ne.s32.totalorder (!%p5050_p8), %s6032_s30, 0 }
  0x7c   : > { %4922 = dma.done.wait (%p6045_p5), %s320_s19, 256  }
  0x7d   : > { %4924 = vsyncadd (%p6045_p5), %s320_s19, 4294967040  ;;  %s328_s12 = sand.u32 1, %s5031_s28   ;;  %s332_s9 = scalar_lea.vmem [#allocation5], %s3826_s26 }
  0x7e   : > { %s329_s23 = scalar_lea.sflag [#allocation6], %s328_s12 }
  0x7f   : > { %4926 = dma.done.wait (%p6045_p5), %s329_s23, 256  }
  0x80   : > { %4928 = vsyncadd (%p6045_p5), %s329_s23, 4294967040  ;;  %p6046_p8 = scmp.eq.s32.totalorder %s5031_s28, 0 }
  0x82   : > { %4930 = dma.done.wait (%p6046_p8), [#allocation6], 256   ;;  %p6047_p11 = pmov %p6046_p8 }
  0x83   : > { %p6048_p3 = pmov %p6046_p8 }
  0x84   : > { %4932 = vsyncadd (%p6047_p11), [#allocation6], 4294967040 }
  0x85   : > { %4934 = dma.done.wait (%p6048_p3), [#allocation9], 9216   ;;  %p6049_p12 = pmov %p6048_p3 }
  0x86   : > { %vm384_vm0 = vcmask 261120   ;;  %v380_v0 = vld [vmem:[%s323_s15] sm:$0xff]  ;;  %v381_v1 = vld [vmem:[%s323_s15 + $0x8] sm:$0xff]  ;;  %v673_v8 = vlaneseq  ;;  %s4964_s30 = smov 32   ;;  %vm4966_vm1 = vmmov 0   ;;  %vm877_vm2 = vcmask 523264  }
  0x87   : > { %4936 = vsyncadd (%p6049_p12), [#allocation9], 4294958080  ;;  %v385_v2 = vsel %vm384_vm0, %v380_v0, 0.0  ;;  %v669_v3 = vld [vmem:[#allocation7 + $0x2] sm:$0x1]  ;;  %v388_v6 = vsel %vm384_vm0, %v381_v1, 0.0 }
  0x88   : > { %386 = vadd.xlane.f32.xlu0 %v385_v2  ;;  %v670_v4 = vmul.f32 1.442695, %v669_v3  ;;  %v684_v5 = vld [vmem:[#allocation7 + $0x3] sm:$0x1]  ;;  %v674_v9 = vshrl.u32 %v673_v8, 7  ;;  %v3839_v15 = vld [vmem:[%s332_s9 + $0x8] sm:$0xff] }
  0x89   : > { %v685_v7 = vmul.f32 1.442695, %v684_v5  ;;  %v672_v12 = vld [vmem:[%s332_s9] sm:$0xff]  ;;  %v428_v36 = vld [vmem:[#allocation8 + $0x38] sm:$0xff]  ;;  %v426_v42 = vld [vmem:[#allocation8 + $0x28] sm:$0xff]  ;;  %s4967_s17 = smov 64  }
  0x8a   : > { %4623 = vpow2.f32 %v670_v4  ;;  %v675_v10 = vsub.s32 0, %v674_v9  ;;  %v3838_v16 = vld [vmem:[#allocation7] ss:$0 sm:$0xff]  ;;  %v3840_v19 = vld [vmem:[#allocation7 + $0x1] ss:$0 sm:$0xff]  ;;  %v514_v37 = vld [vmem:[#allocation8 + $0x58] sm:$0xff]  ;;  %4102 = vmatprep.subr.mxu0 %v428_v36 }
  0x8b   : > { %4625 = vpow2.f32 %v685_v7  ;;  %v427_v38 = vld [vmem:[#allocation8 + $0x30] sm:$0xff]  ;;  %4113 = vmatprep.subr.mxu1 %v514_v37  ;;  %4103 = vmatpush3.msra.mxu0 %v428_v36  ;;  %v512_v50 = vld [vmem:[#allocation8 + $0x48] sm:$0xff]  ;;  %v425_v51 = vld [vmem:[#allocation8 + $0x20] sm:$0xff]  ;;  %vm956_vm3 = vcmask 130048   ;;  %s4968_s2 = smov 96   ;;  %s3831_s23 = sshll.u32 %s5200_s0, 3 }
  0x8c   : > { %389 = vadd.xlane.f32.xlu0 %v388_v6  ;;  %v513_v40 = vld [vmem:[#allocation8 + $0x50] sm:$0xff]  ;;  %4114 = vmatpush3.msra.mxu1 %v514_v37  ;;  %v511_v52 = vld [vmem:[#allocation8 + $0x40] sm:$0xff]  ;;  %v5229_v53 = vld [vmem:[#allocation8 + $0x18] sm:$0xff]  ;;  %s3891_s9 = sshll.u32 %s5031_s28, 7  ;;  %s3679_s18 = scalar_lea.sflag [#allocation4], %s5200_s0 }
  0x8d   : > { %4104 = vmatprep.subr.mxu0 %v427_v38  ;;  %4115 = vmatprep.subr.mxu1 %v513_v40  ;;  %v3832_v61 = vld [vmem:[#allocation7 + $0x4] ss:$0 sm:$0xff]  ;;  %v3833_v63 = vld [vmem:[#allocation7 + $0x5] ss:$0 sm:$0xff]  ;;  %s5973_s11 = scalar_lea.hbm %s6018_s7, %s3891_s9  ;;  %p6050_p13 = scmp.ne.s32.totalorder %s6040_s20, 0 }
  0x8e   : > { %4105 = vmatpush3.msra.mxu0 %v427_v38  ;;  %4116 = vmatpush3.msra.mxu1 %v513_v40  ;;  %v5234_v6 = vld [vmem:[#allocation8 + $0x10] sm:$0xff]  ;;  %v4965_v38 = vmov 0.0   ;;  %s4969_s28 = smov [#allocation11]  }
  0x8f   : > { %4106 = vmatprep.subr.mxu0 %v426_v42  ;;  %4117 = vmatprep.subr.mxu1 %v512_v50  ;;  %s4883_s21 = sshll.u32 %s4969_s28, 4  ;;  %s4884_s21 = int_to_ptr.vmem [resolvable:$false] %s4883_s21 }
  0x90   : > { %4107 = vmatpush3.msra.mxu0 %v426_v42  ;;  %4118 = vmatpush3.msra.mxu1 %v512_v50  ;;  %s4885_s22 = scalar_lea.vmem %s4884_s21, 256 }
  0x91   : > { %4108 = vmatprep.subr.mxu0 %v425_v51  ;;  %4119 = vmatprep.subr.mxu1 %v511_v52 }
  0x92   : > { %4109 = vmatpush3.msra.mxu0 %v425_v51  ;;  %4120 = vmatpush3.msra.mxu1 %v511_v52 }
  0x93   : > { %4124 = vmatprep.subr.mxu0 %v5229_v53  ;;  %4135 = vmatprep.subr.mxu1 %v4965_v38 }
  0x97   : > { %v4624_v11 = vpop.eup %4623 }
  0x98   : > { %v4626_v13 = vpop.eup %4625  ;;  %v676_v14 = vrot.slane %v4624_v11, %v675_v10 }
  0x99   : > { %v692_v17 = vrot.slane %v4626_v13, %v675_v10  ;;  %v5239_v10 = vld [vmem:[#allocation8 + $0x8] sm:$0xff] }
  0x9a   : > { %v677_v18 = vmul.f32 %v676_v14, %v672_v12  ;;  %v5243_v12 = vld [vmem:[#allocation8] sm:$0xff] }
  0x9b   : > { %v693_v20 = vmul.f32 %v3839_v15, %v692_v17  ;;  %v5249_v15 = vld [vmem:[#allocation7 + $0x6] ss:$0 sm:$0xff] }
  0x9c   : > { %v682_v21 = vadd.f32 %v3838_v16, %v677_v18  ;;  %v5251_v16 = vld [vmem:[#allocation7 + $0x7] ss:$0 sm:$0xff] }
  0x9d   : > { %v698_v22 = vadd.f32 %v3840_v19, %v693_v20  ;;  %v5253_v19 = vld [vmem:[#allocation7 + $0x8] ss:$0 sm:$0xff]  ;;  %v5255_v20 = vld [vmem:[#allocation7 + $0x9] ss:$0 sm:$0xff] }
  0x9e   : > { %v736_v23 = vsel %vm384_vm0, %v682_v21, 0.0 }
  0x9f   : > { %737 = vadd.xlane.f32.xlu1 %v736_v23  ;;  %v739_v24 = vsel %vm384_vm0, %v698_v22, 0.0 }
  0xa3   : > { %740 = vadd.xlane.f32.xlu1 %v739_v24 }
 0x111   : > { %v387_v25 = vpop.xlane.xlu0 %386 }
 0x112   : > { %v392_v26 = vmul.f32 0.03125, %v387_v25 }
 0x114   : > { %v394_v27 = vsub.f32 %v380_v0, %v392_v26 }
 0x115   : > { %v390_v28 = vpop.xlane.xlu0 %389 }
 0x116   : > { %v393_v29 = vmul.f32 0.03125, %v390_v28  ;;  %v396_v30 = vmul.f32 %v394_v27, %v394_v27 }
 0x118   : > { %v395_v31 = vsub.f32 %v381_v1, %v393_v29  ;;  %v398_v32 = vsel %vm384_vm0, %v396_v30, 0.0 }
 0x119   : > { %399 = vadd.xlane.f32.xlu0 %v398_v32 }
 0x11a   : > { %v397_v33 = vmul.f32 %v395_v31, %v395_v31 }
 0x11c   : > { %v401_v34 = vsel %vm384_vm0, %v397_v33, 0.0 }
 0x11d   : > { %402 = vadd.xlane.f32.xlu1 %v401_v34 }
 0x128   : > { %v738_v35 = vpop.xlane.xlu1 %737 }
 0x12c   : > { %v741_v39 = vpop.xlane.xlu1 %740 }
 0x12d   : > { %v742_v41 = vadd.f32 %v741_v39, %v738_v35 }
 0x12f   : > { %v743_v43 = vmul.f32 0.015625, %v742_v41 }
 0x131   : > { %v744_v44 = vsub.f32 %v682_v21, %v743_v43  ;;  %v749_v45 = vsub.f32 %v698_v22, %v743_v43 }
 0x133   : > { %v745_v46 = vmul.f32 %v744_v44, %v744_v44  ;;  %v750_v47 = vmul.f32 %v749_v45, %v749_v45 }
 0x135   : > { %v746_v48 = vsel %vm384_vm0, %v745_v46, 0.0  ;;  %v751_v49 = vsel %vm384_vm0, %v750_v47, 0.0 }
 0x136   : > { %747 = vadd.xlane.f32.xlu0 %v746_v48  ;;  %752 = vadd.xlane.f32.xlu1 %v751_v49 }
 0x1a2   : > { %v400_v54 = vpop.xlane.xlu0 %399 }
 0x1a3   : > { %v404_v55 = vmul.f32 0.03125, %v400_v54 }
 0x1a5   : > { %v406_v56 = vadd.f32 1e-05, %v404_v55 }
 0x1a6   : > { %v403_v57 = vpop.xlane.xlu1 %402 }
 0x1a7   : > { %4627 = vrsqrt.f32 %v406_v56  ;;  %v405_v58 = vmul.f32 0.03125, %v403_v57  ;;  %v5310_v56 = vld [vmem:[#allocation8 + $0x98] sm:$0xff] }
 0x1a9   : > { %v407_v59 = vadd.f32 1e-05, %v405_v58  ;;  %v5316_v58 = vld [vmem:[#allocation8 + $0x90] sm:$0xff] }
 0x1ab   : > { %4629 = vrsqrt.f32 %v407_v59  ;;  %v5322_v59 = vld [vmem:[#allocation8 + $0x88] sm:$0xff] }
 0x1b4   : > { %v4628_v60 = vpop.eup %4627 }
 0x1b5   : > { %v410_v62 = vmul.f32 %v4628_v60, %v394_v27  ;;  %v5326_v60 = vld [vmem:[#allocation8 + $0x80] sm:$0xff] }
 0x1b7   : > { %v416_v0 = vmul.f32 %v3832_v61, %v410_v62 }
 0x1b8   : > { %v4630_v1 = vpop.eup %4629 }
 0x1b9   : > { %v411_v2 = vmul.f32 %v4630_v1, %v395_v31  ;;  %v422_v3 = vadd.f32 %v3833_v63, %v416_v0 }
 0x1bb   : > { %v417_v4 = vmul.f32 %v3832_v61, %v411_v2  ;;  %4110 = vmatprep.mubr.msk.f32.mxu0 %vm384_vm0, %v422_v3  ;;  %4121 = vmatprep.mubr.msk.f32.mxu1 %vm384_vm0, %v422_v3  ;;  %v5339_v3 = vld [vmem:[%s6014_s3 + $0x1] ss:$0 sm:$0xff] }
 0x1bd   : > { %v423_v5 = vadd.f32 %v3833_v63, %v417_v4 }
 0x1bf   : > { %v753_v7 = vpop.xlane.xlu1 %752  ;;  %v748_v8 = vpop.xlane.xlu0 %747  ;;  %4111 = vmatmul.mubr.msk.f32.vlgmr.msra.gmra.mxu0 %vm384_vm0, %v423_v5  ;;  %4122 = vmatmul.mubr.msk.f32.vlgmr.msra.gmra.mxu1 %vm384_vm0, %v423_v5 }
 0x1c0   : > { %v754_v9 = vadd.f32 %v753_v7, %v748_v8  ;;  %4125 = vmatpush3.msra.mxu0 %v5229_v53  ;;  %4151 = vmatprep.mubr.msk.f32.mxu1 %vm4966_vm1, %v4965_v38 }
 0x1c1   : > { %4126 = vmatprep.subr.mxu0 %v5234_v6 }
 0x1c2   : > { %v755_v11 = vmul.f32 0.015625, %v754_v9  ;;  %4127 = vmatpush3.msra.mxu0 %v5234_v6 }
 0x1c3   : > { %4128 = vmatprep.subr.mxu0 %v5239_v10 }
 0x1c4   : > { %v756_v13 = vadd.f32 1e-05, %v755_v11  ;;  %4129 = vmatpush3.msra.mxu0 %v5239_v10 }
 0x1c5   : > { %4130 = vmatprep.subr.mxu0 %v5243_v12 }
 0x1c6   : > { %4631 = vrsqrt.f32 %v756_v13  ;;  %4131 = vmatpush3.msra.mxu0 %v5243_v12 }
 0x1c7   : > { %4154 = vmatprep.subr.mxu0 %v4965_v38 }
 0x1d3   : > { %v4632_v14 = vpop.eup %4631 }
 0x1d4   : > { %v758_v17 = vmul.f32 %v4632_v14, %v744_v44  ;;  %v769_v18 = vmul.f32 %v4632_v14, %v749_v45 }
 0x1d6   : > { %v763_v21 = vmul.f32 %v5249_v15, %v758_v17  ;;  %v774_v22 = vmul.f32 %v5251_v16, %v769_v18 }
 0x1d8   : > { %v5260_v23 = vadd.f32 %v5253_v19, %v763_v21  ;;  %v779_v24 = vadd.f32 %v5255_v20, %v774_v22 }
 0x1da   : > { %4132 = vmatprep.mubr.msk.f32.mxu0 %vm384_vm0, %v5260_v23 }
 0x1db   : > { %4133 = vmatmul.mubr.msk.f32.vlgmr.msra.gmra.mxu0 %vm384_vm0, %v779_v24 }
 0x1dc   : > { %4158 = vmatprep.mubr.msk.f32.mxu0 %vm4966_vm1, %v4965_v38 }
 0x27f   : > { %v4112_v25 = vpop.f32.mrf.mxu0  ;;  %v4123_v39 = vpop.f32.mrf.mxu1 }
 0x280   : > { %v657_v40 = vmul.f32 %v4123_v39, %v4123_v39  ;;  %v591_v42 = vmul.f32 %v4112_v25, %v4112_v25 }
 0x281   : > { %v501_v26 = vpop.f32.mrf.mxu0  ;;  %v581_v61 = vpop.f32.mrf.mxu1 }
 0x282   : > { %624 = vxpose.xlu1.b32.start [1/2] (short) (narrow) %v501_v26, 32  ;;  %v590_v41 = vmul.f32 %v501_v26, %v501_v26 }
 0x286   : > { %625 = vxpose.xlu1.b32.end [2/2] (short) (narrow) %v4112_v25, 32 }
 0x29b   : > { %v4134_v27 = vpop.f32.mrf.mxu0 }
 0x29c   : > { %v861_v28 = vmul.f32 -2.0, %v4134_v27 }
 0x29d   : > { %v852_v30 = vpop.f32.mrf.mxu0 }
 0x29e   : > { %v862_v29 = vmul.f32 1.442695, %v861_v28  ;;  %v872_v33 = vmul.f32 %v852_v30, %v852_v30  ;;  %v656_v28 = vmul.f32 %v581_v61, %v581_v61 }
 0x2a0   : > { %4633 = vpow2.f32 %v862_v29 }
 0x2ad   : > { %v4634_v31 = vpop.eup %4633 }
 0x2ae   : > { %v864_v32 = vmul.f32 0.17677669, %v4634_v31 }
 0x2b0   : > { %v865_v34 = vmul.f32 %v864_v32, %v852_v30  ;;  %v873_v35 = vmul.f32 %v872_v33, %v864_v32 }
 0x2b2   : > { %v866_v36 = vmul.f32 -2.0, %v865_v34  ;;  %v874_v37 = vsel %vm384_vm0, %v873_v35, 0.0  ;;  %v5355_v35 = vld [vmem:[#allocation8 + $0x78] sm:$0xff] }
 0x2b4   : > { %868 = vrot.lane.b32.xlu0 %v866_v36, %s4964_s30  ;;  %v5358_v36 = vld [vmem:[#allocation8 + $0x70] sm:$0xff] }
 0x2b5   : > { %875 = vadd.xlane.f32.xlu1 %v874_v37  ;;  %v5370_v37 = vld [vmem:[#allocation8 + $0x60] sm:$0xff] }
 0x2c6   : > { %662 = vrot.lane.b32.xlu1 %v657_v40, %s4964_s30 }
 0x2d2   : > { %592 = vxpose.xlu0.b32.start [1/2] (short) (narrow) %v590_v41, 32  ;;  %v5383_v41 = vld [vmem:[%s6014_s3] ss:$0 sm:$0xff] }
 0x2d6   : > { %593 = vxpose.xlu0.b32.end [2/2] (short) (narrow) %v591_v42, 32 }
 0x2fe   : > { %v5275_v43 = vpop.trf.xlu1 }
 0x302   : > { %v5277_v44 = vpop.trf.xlu1 }
 0x306   : > { %v5279_v45 = vpop.trf.xlu1 }
 0x30a   : > { %v5281_v46 = vpop.trf.xlu1 }
 0x30b   : > { %4136 = vmatpush3.msra.mxu1 %v5281_v46 }
 0x30c   : > { %4137 = vmatprep.subr.mxu1 %v4965_v38 }
 0x30d   : > { %4138 = vmatpush3.msra.mxu1 %v5279_v45 }
 0x30e   : > { %4139 = vmatprep.subr.mxu1 %v4965_v38 }
 0x30f   : > { %4140 = vmatpush3.msra.mxu1 %v5277_v44 }
 0x310   : > { %4141 = vmatprep.subr.mxu1 %v4965_v38 }
 0x311   : > { %4142 = vmatpush3.msra.mxu1 %v5275_v43 }
 0x312   : > { %4143 = vmatprep.subr.mxu1 %v4965_v38 }
 0x326   : > { %v869_v50 = vpop.permute.xlu0 %868 }
 0x327   : > { %v871_v57 = vsel %vm384_vm0, %v864_v32, %v869_v50 }
 0x33e   : > { %v876_v47 = vpop.xlane.xlu1 %875 }
 0x342   : > { %v663_v48 = vpop.permute.xlu1 %662 }
 0x343   : > { %v5292_v49 = vsel %vm384_vm0, %v4123_v39, %v663_v48 }
 0x344   : > { %4155 = vmatpush3.msra.mxu0 %v5292_v49 }
 0x345   : > { %4156 = vmatprep.subr.mxu0 %v4965_v38 }
 0x34e   : > { %v5296_v51 = vpop.trf.xlu0 }
 0x352   : > { %v5298_v52 = vpop.trf.xlu0 }
 0x356   : > { %v5300_v54 = vpop.trf.xlu0 }
 0x35a   : > { %v5302_v55 = vpop.trf.xlu0 }
 0x35b   : > { %4144 = vmatpush3.msra.mxu1 %v5302_v55 }
 0x35c   : > { %4145 = vmatprep.subr.mxu1 %v4965_v38 }
 0x35d   : > { %4146 = vmatpush3.msra.mxu1 %v5300_v54 }
 0x35e   : > { %4147 = vmatprep.subr.mxu1 %v4965_v38 }
 0x35f   : > { %4148 = vmatpush3.msra.mxu1 %v5298_v52 }
 0x360   : > { %4149 = vmatprep.subr.mxu1 %v4965_v38 }
 0x361   : > { %4150 = vmatpush3.msra.mxu1 %v5296_v51 }
 0x362   : > { %4152 = vmatmul.mubr.msk.f32.vlgmr.msra.gmra.mxu1 %vm877_vm2, %v871_v57  ;;  %4172 = vmatprep.subr.mxu1 %v4965_v38 }
 0x363   : > { %4173 = vmatpush3.msra.mxu1 %v5310_v56  ;;  %4180 = vmatprep.mubr.msk.f32.mxu1 %vm4966_vm1, %v4965_v38 }
 0x364   : > { %4174 = vmatprep.subr.mxu1 %v4965_v38 }
 0x365   : > { %4175 = vmatpush3.msra.mxu1 %v5316_v58 }
 0x366   : > { %4176 = vmatprep.subr.mxu1 %v4965_v38 }
 0x367   : > { %4177 = vmatpush3.msra.mxu1 %v5322_v59 }
 0x368   : > { %4178 = vmatprep.subr.mxu1 %v4965_v38 }
 0x369   : > { %4179 = vmatpush3.msra.mxu1 %v5326_v60 }
 0x36a   : > { %4181 = vmatmul.mubr.msk.f32.vlgmr.msra.gmra.mxu1 %vm384_vm0, %v5260_v23  ;;  %4194 = vmatprep.subr.mxu1 %v4965_v38 }
 0x36b   : > { %4210 = vmatprep.mubr.msk.f32.mxu1 %vm4966_vm1, %v4965_v38 }
 0x422   : > { %v947_v62 = vpop.f32.mrf.mxu1 }
 0x423   : > { %v948_v63 = vadd.f32 %v947_v62, %v876_v47 }
 0x424   : > { %v4153_v0 = vpop.f32.mrf.mxu1 }
 0x425   : > { %v951_v1 = vsub.f32 0.0, %v948_v63 }
 0x427   : > { %v952_v2 = vmul.f32 1.442695, %v951_v1 }
 0x429   : > { %4635 = vpow2.f32 %v952_v2 }
 0x42a   : > { %v1192_v4 = vpop.f32.mrf.mxu1 }
 0x42b   : > { %v1193_v5 = vadd.f32 %v5339_v3, %v1192_v4 }
 0x42c   : > { %v4182_v7 = vpop.f32.mrf.mxu1 }
 0x42d   : > { %1204 = vrot.lane.b32.xlu1 %v1193_v5, %s4967_s17 }
 0x436   : > { %v4636_v8 = vpop.eup %4635 }
 0x437   : > { %v954_v9 = vadd.f32 1e-08, %v4636_v8 }
 0x439   : > { %v955_v11 = vmul.f32 0.125, %v954_v9 }
 0x43b   : > { %v957_v13 = vsel %vm956_vm3, %v955_v11, 0.0 }
 0x43c   : > { %v958_v14 = vrot.slane %v957_v13, 4 }
 0x43e   : > { %v959_v17 = vadd.f32 %v958_v14, %v957_v13 }
 0x440   : > { %v960_v18 = vrot.slane %v959_v17, 2 }
 0x442   : > { %v961_v21 = vadd.f32 %v960_v18, %v959_v17 }
 0x444   : > { %v962_v22 = vrot.slane %v961_v21, 1 }
 0x446   : > { %v963_v24 = vadd.f32 %v962_v22, %v961_v21 }
 0x448   : > { %4637 = vrcp.f32 %v963_v24 }
 0x455   : > { %v4638_v25 = vpop.eup %4637 }
 0x456   : > { %v965_v26 = vmul.f32 %v4638_v25, %v955_v11 }
 0x458   : > { %v966_v27 = vsel %vm956_vm3, %v965_v26, 0.0 }
 0x459   : > { %967 = vadd.xlane.f32.xlu0 %v966_v27 }
 0x46f   : > { %660 = vrot.lane.b32.xlu0 %v656_v28, %s4964_s30 }
 0x473   : > { %1220 = vrot.lane.b32.xlu0 %v5260_v23, %s4964_s30  ;;  %v5364_v23 = vld [vmem:[#allocation8 + $0x68] sm:$0xff] }
 0x49f   : > { %v1205_v0 = vpop.permute.xlu1 %1204 }
 0x4e2   : > { %v968_v29 = vpop.xlane.xlu0 %967 }
 0x4e3   : > { %4639 = vrcp.f32 %v968_v29 }
 0x4e6   : > { %v661_v30 = vpop.permute.xlu0 %660 }
 0x4e7   : > { %v5349_v31 = vsel %vm384_vm0, %v581_v61, %v661_v30  ;;  %v5400_v30 = vld [vmem:[#allocation8 + $0xb8] sm:$0xff] }
 0x4e8   : > { %4157 = vmatpush3.msra.mxu0 %v5349_v31 }
 0x4e9   : > { %4161 = vmatprep.subr.mxu0 %v4965_v38 }
 0x4ea   : > { %v1221_v9 = vpop.permute.xlu0 %1220 }
 0x4f0   : > { %v4640_v32 = vpop.eup %4639 }
 0x4f1   : > { %v5353_v33 = vmul.f32 %v4640_v32, %v968_v29  ;;  %v970_v34 = vmul.f32 %v4640_v32, %v965_v26  ;;  %v3854_v26 = vld [vmem:[#allocation7 + $0xa] ss:$0 sm:$0xff]  ;;  %v3855_v29 = vld [vmem:[#allocation7 + $0xb] ss:$0 sm:$0xff]  ;;  %v5402_v32 = vld [vmem:[#allocation8 + $0xb0] sm:$0xff] }
 0x4f3   : > { %4159 = vmatmul.mubr.msk.f32.vlgmr.msra.gmra.mxu0 %vm956_vm3, %v970_v34  ;;  %v5406_v34 = vld [vmem:[#allocation8 + $0xa8] sm:$0xff] }
 0x4f4   : > { %4162 = vmatpush3.msra.mxu0 %v5355_v35  ;;  %4169 = vmatprep.mubr.msk.f32.mxu0 %vm4966_vm1, %v4965_v38 }
 0x4f5   : > { %4163 = vmatprep.subr.mxu0 %v4965_v38 }
 0x4f6   : > { %4164 = vmatpush3.msra.mxu0 %v5358_v36 }
 0x4f7   : > { %4165 = vmatprep.subr.mxu0 %v4965_v38 }
 0x4f8   : > { %4166 = vmatpush3.msra.mxu0 %v5364_v23 }
 0x4f9   : > { %4167 = vmatprep.subr.mxu0 %v4965_v38 }
 0x4fa   : > { %4168 = vmatpush3.msra.mxu0 %v5370_v37 }
 0x4fb   : > { %4183 = vmatprep.subr.mxu0 %v4965_v38 }
 0x5b3   : > { %v5374_v39 = vpop.f32.mrf.mxu0 }
 0x5b4   : > { %4170 = vmatmul.mubr.msk.f32.vlgmr.msra.gmra.mxu0 %vm384_vm0, %v5374_v39 }
 0x5b5   : > { %v4160_v40 = vpop.f32.mrf.mxu0  ;;  %4191 = vmatprep.mubr.msk.f32.mxu0 %vm4966_vm1, %v4965_v38  ;;  %4184 = vmatpush3.msra.mxu0 %v5400_v30 }
 0x5b6   : > { %4185 = vmatprep.subr.mxu0 %v4965_v38  ;;  %v5410_v40 = vld [vmem:[#allocation8 + $0xa0] sm:$0xff] }
 0x5b7   : > { %4186 = vmatpush3.msra.mxu0 %v5402_v32 }
 0x5b8   : > { %4187 = vmatprep.subr.mxu0 %v4965_v38 }
 0x5b9   : > { %4188 = vmatpush3.msra.mxu0 %v5406_v34 }
 0x5ba   : > { %4189 = vmatprep.subr.mxu0 %v4965_v38 }
 0x5bb   : > { %4190 = vmatpush3.msra.mxu0 %v5410_v40 }
 0x5bc   : > { %4213 = vmatprep.subr.mxu0 %v5229_v53 }
 0x674   : > { %v1118_v42 = vpop.f32.mrf.mxu0 }
 0x675   : > { %v1119_v47 = vadd.f32 %v5383_v41, %v1118_v42 }
 0x676   : > { %v4171_v48 = vpop.f32.mrf.mxu0 }
 0x677   : > { %v1196_v50 = vadd.f32 %v1193_v5, %v1119_v47 }
 0x679   : > { %v3853_v57 = vmul.f32 -1.442695, %v1196_v50  ;;  %v5416_v50 = vld [vmem:[#allocation10 + $0x38] sm:$0xff] }
 0x67a   : > { %4195 = vmatpush3.msra.mxu1 %v5416_v50 }
 0x67b   : > { %4641 = vpow2.f32 %v3853_v57  ;;  %v5418_v57 = vld [vmem:[#allocation10 + $0x30] sm:$0xff]  ;;  %4196 = vmatprep.subr.mxu1 %v4965_v38 }
 0x67c   : > { %4197 = vmatpush3.msra.mxu1 %v5418_v57 }
 0x67d   : > { %4198 = vmatprep.subr.mxu1 %v4965_v38 }
 0x688   : > { %v4642_v61 = vpop.eup %4641 }
 0x689   : > { %v1200_v62 = vadd.f32 1.0, %v4642_v61  ;;  %v5422_v61 = vld [vmem:[#allocation10 + $0x28] sm:$0xff] }
 0x68a   : > { %4199 = vmatpush3.msra.mxu1 %v5422_v61 }
 0x68b   : > { %4643 = vrcp.f32 %v1200_v62  ;;  %v5426_v62 = vld [vmem:[#allocation10 + $0x20] sm:$0xff]  ;;  %4200 = vmatprep.subr.mxu1 %v4965_v38 }
 0x68c   : > { %4201 = vmatpush3.msra.mxu1 %v5426_v62 }
 0x68d   : > { %4202 = vmatprep.subr.mxu1 %v4965_v38 }
 0x698   : > { %v4644_v63 = vpop.eup %4643 }
 0x699   : > { %v1207_v1 = vmul.f32 %v4644_v63, %v1205_v0  ;;  %v1214_v8 = vsub.f32 1.0, %v4644_v63  ;;  %v1223_v11 = vmul.f32 %v4644_v63, %v1221_v9 }
 0x69b   : > { %1209 = vrot.lane.b32.xlu1 %v1207_v1, %s4967_s17  ;;  %v5432_v1 = vld [vmem:[#allocation10 + $0x18] sm:$0xff] }
 0x69c   : > { %4203 = vmatpush3.msra.mxu1 %v5432_v1 }
 0x69d   : > { %4204 = vmatprep.subr.mxu1 %v4965_v38 }
 0x70d   : > { %v1210_v2 = vpop.permute.xlu1 %1209 }
 0x70e   : > { %v1212_v4 = vadd.f32 %v1210_v2, %v1119_v47 }
 0x710   : > { %4645 = vtanh.f32 %v1212_v4  ;;  %v5436_v4 = vld [vmem:[#allocation10 + $0x10] sm:$0xff] }
 0x711   : > { %4205 = vmatpush3.msra.mxu1 %v5436_v4 }
 0x712   : > { %4206 = vmatprep.subr.mxu1 %v4965_v38 }
 0x71d   : > { %v4646_v7 = vpop.eup %4645 }
 0x71e   : > { %1216 = vrot.lane.b32.xlu1 %v4646_v7, %s4968_s2 }
 0x790   : > { %v1217_v5 = vpop.permute.xlu1 %1216 }
 0x791   : > { %v1219_v13 = vmul.f32 %v1217_v5, %v1214_v8 }
 0x793   : > { %v5388_v14 = vadd.f32 %v1223_v11, %v1219_v13  ;;  %v5456_v11 = vld [vmem:[#allocation10 + $0x8] sm:$0xff]  ;;  %v5460_v13 = vld [vmem:[#allocation10] sm:$0xff] }
 0x794   : > { %4207 = vmatpush3.msra.mxu1 %v5456_v11 }
 0x795   : > { %1226 = vrot.lane.b32.xlu1 %v5388_v14, %s4968_s2  ;;  %4208 = vmatprep.subr.mxu1 %v4965_v38 }
 0x796   : > { %4209 = vmatpush3.msra.mxu1 %v5460_v13 }
 0x797   : > { %4224 = vmatprep.subr.mxu1 %v4965_v38 }
 0x807   : > { %v1227_v17 = vpop.permute.xlu1 %1226 }
 0x808   : > { %v1229_v18 = vsel %vm384_vm0, %v1227_v17, 0.0 }
 0x809   : > { %1230 = vadd.xlane.f32.xlu0 %v1229_v18 }
 0x81f   : > { %1251 = vrot.lane.b32.xlu0 %v3854_v26, %s4964_s30 }
 0x892   : > { %v1231_v21 = vpop.xlane.xlu0 %1230 }
 0x893   : > { %v1232_v22 = vmul.f32 0.03125, %v1231_v21  ;;  %v5489_v21 = vld [vmem:[#allocation7 + $0xc] ss:$0 sm:$0xff] }
 0x895   : > { %v1233_v24 = vsub.f32 %v5388_v14, %v1232_v22 }
 0x896   : > { %v5429_v0 = vpop.permute.xlu0 %1251 }
 0x897   : > { %v1234_v25 = vmul.f32 %v1233_v24, %v1233_v24 }
 0x899   : > { %1236 = vrot.lane.b32.xlu1 %v1234_v25, %s4968_s2 }
 0x90b   : > { %v1237_v27 = vpop.permute.xlu1 %1236 }
 0x90c   : > { %v1239_v28 = vsel %vm384_vm0, %v1237_v27, 0.0 }
 0x90d   : > { %1240 = vadd.xlane.f32.xlu1 %v1239_v28 }
 0x91e   : > { %1260 = vrot.lane.b32.xlu1 %v3855_v29, %s4964_s30 }
 0x922   : > { %1427 = vrot.lane.b32.xlu1 %v5374_v39, %s4964_s30 }
 0x996   : > { %v1241_v42 = vpop.xlane.xlu1 %1240 }
 0x997   : > { %v1242_v47 = vmul.f32 0.03125, %v1241_v42 }
 0x999   : > { %v1243_v48 = vadd.f32 1e-05, %v1242_v47 }
 0x99a   : > { %v5440_v8 = vpop.permute.xlu1 %1260 }
 0x99b   : > { %4647 = vrsqrt.f32 %v1243_v48 }
 0x99e   : > { %v1428_v42 = vpop.permute.xlu1 %1427 }
 0x9a8   : > { %v4648_v63 = vpop.eup %4647 }
 0x9a9   : > { %v1245_v2 = vmul.f32 %v4648_v63, %v1233_v24 }
 0x9ab   : > { %v1254_v7 = vmul.f32 %v5429_v0, %v1245_v2 }
 0x9ad   : > { %v1263_v9 = vadd.f32 %v5440_v8, %v1254_v7 }
 0x9af   : > { %1269 = vrot.lane.b32.xlu0 %v1263_v9, %s4968_s2 }
 0xa21   : > { %v1270_v5 = vpop.permute.xlu0 %1269 }
 0xa22   : > { %4192 = vmatmul.mubr.msk.f32.vlgmr.msra.gmra.mxu0 %vm384_vm0, %v1270_v5 }
 0xa23   : > { %4214 = vmatpush3.msra.mxu0 %v5229_v53 }
 0xa24   : > { %4215 = vmatprep.subr.mxu0 %v5234_v6 }
 0xa25   : > { %4216 = vmatpush3.msra.mxu0 %v5234_v6  ;;  %v5467_v6 = vld [vmem:[%s6015_s4] ss:$0 sm:$0xff] }
 0xa26   : > { %4217 = vmatprep.subr.mxu0 %v5239_v10 }
 0xa27   : > { %4218 = vmatpush3.msra.mxu0 %v5239_v10 }
 0xa28   : > { %4219 = vmatprep.subr.mxu0 %v5243_v12 }
 0xa29   : > { %4220 = vmatpush3.msra.mxu0 %v5243_v12 }
 0xa2a   : > { %4261 = vmatprep.subr.mxu0 %v4965_v38 }
 0xae2   : > { %v1339_v10 = vpop.f32.mrf.mxu0 }
 0xae3   : > { %v1340_v12 = vadd.f32 %v5467_v6, %v1339_v10 }
 0xae4   : > { %v4193_v17 = vpop.f32.mrf.mxu0 }
 0xae5   : > { %v1343_v18 = vmax.f32 %v1340_v12, 0.0 }
 0xae7   : > { %4211 = vmatmul.mubr.msk.f32.vlgmr.msra.gmra.mxu1 %vm877_vm2, %v1343_v18 }
 0xae8   : > { %4225 = vmatpush3.msra.mxu1 %v5281_v46  ;;  %4240 = vmatprep.mubr.msk.f32.mxu1 %vm4966_vm1, %v4965_v38 }
 0xae9   : > { %4226 = vmatprep.subr.mxu1 %v4965_v38 }
 0xaea   : > { %4227 = vmatpush3.msra.mxu1 %v5279_v45 }
 0xaeb   : > { %4228 = vmatprep.subr.mxu1 %v4965_v38 }
 0xaec   : > { %4229 = vmatpush3.msra.mxu1 %v5277_v44 }
 0xaed   : > { %4230 = vmatprep.subr.mxu1 %v4965_v38 }
 0xaee   : > { %4231 = vmatpush3.msra.mxu1 %v5275_v43 }
 0xaef   : > { %4232 = vmatprep.subr.mxu1 %v4965_v38 }
 0xaf0   : > { %4233 = vmatpush3.msra.mxu1 %v5302_v55 }
 0xaf1   : > { %4234 = vmatprep.subr.mxu1 %v4965_v38 }
 0xaf2   : > { %4235 = vmatpush3.msra.mxu1 %v5300_v54 }
 0xaf3   : > { %4236 = vmatprep.subr.mxu1 %v4965_v38 }
 0xaf4   : > { %4237 = vmatpush3.msra.mxu1 %v5298_v52 }
 0xaf5   : > { %4238 = vmatprep.subr.mxu1 %v4965_v38 }
 0xaf6   : > { %4239 = vmatpush3.msra.mxu1 %v5296_v51 }
 0xaf7   : > { %4243 = vmatprep.subr.mxu1 %v4965_v38 }
 0xba7   : > { %v1417_v22 = vpop.f32.mrf.mxu1 }
 0xba8   : > { %v1418_v24 = vadd.f32 %v5489_v21, %v1417_v22 }
 0xba9   : > { %v4212_v25 = vpop.f32.mrf.mxu1 }
 0xbaa   : > { %1422 = vrot.lane.b32.xlu0 %v1418_v24, %s4964_s30 }
 0xc1c   : > { %v1423_v26 = vpop.permute.xlu0 %1422 }
 0xc1d   : > { %v1425_v27 = vadd.f32 %v1423_v26, %v5388_v14 }
 0xc1f   : > { %v1426_v28 = vmul.f32 2.0, %v1425_v27  ;;  %v1432_v29 = vmul.f32 %v1425_v27, %v1425_v27  ;;  %1449 = vrot.lane.b32.xlu0 %v1425_v27, %s4968_s2 }
 0xc21   : > { %v1430_v47 = vmul.f32 %v1428_v42, %v1426_v28  ;;  %v1433_v48 = vadd.f32 1e-08, %v1432_v29 }
 0xc23   : > { %v1431_v63 = vsub.f32 %v5374_v39, %v1430_v47  ;;  %v1434_v2 = vmul.f32 %v1433_v48, %v5353_v33 }
 0xc25   : > { %v1435_v7 = vadd.f32 %v1434_v2, %v1431_v63 }
 0xc27   : > { %4649 = vlog2.f32 %v1435_v7 }
 0xc34   : > { %v4650_v9 = vpop.eup %4649 }
 0xc35   : > { %v1437_v5 = vmul.f32 0.6931472, %v4650_v9 }
 0xc37   : > { %v1438_v10 = vmul.f32 0.5, %v1437_v5 }
 0xc39   : > { %1456 = vrot.lane.b32.xlu1 %v1438_v10, %s4968_s2 }
 0xc91   : > { %v1450_v12 = vpop.permute.xlu0 %1449 }
 0xc92   : > { %v1452_v14 = vsel %vm384_vm0, %v1450_v12, 0.0 }
 0xc93   : > { %1453 = vadd.xlane.f32.xlu0 %v1452_v14 }
 0xcab   : > { %v1457_v17 = vpop.permute.xlu1 %1456 }
 0xcac   : > { %v1459_v18 = vsel %vm384_vm0, %v1457_v17, 0.0 }
 0xcad   : > { %1460 = vadd.xlane.f32.xlu1 %v1459_v18 }
 0xd1c   : > { %v1454_v22 = vpop.xlane.xlu0 %1453 }
 0xd36   : > { %v1461_v24 = vpop.xlane.xlu1 %1460 }
 0xd37   : > { %v1462_v39 = vadd.f32 %v1461_v24, %v1454_v22 }
 0xd39   : > { %v1463_v25 = vmul.f32 0.015625, %v1462_v39 }
 0xd3b   : > { %v1464_v26 = vsub.f32 %v1425_v27, %v1463_v25  ;;  %v1473_v28 = vsub.f32 %v1438_v10, %v1463_v25 }
 0xd3d   : > { %v1474_v29 = vmul.f32 %v1473_v28, %v1473_v28  ;;  %v1465_v42 = vmul.f32 %v1464_v26, %v1464_v26 }
 0xd3f   : > { %1476 = vrot.lane.b32.xlu1 %v1474_v29, %s4968_s2  ;;  %1467 = vrot.lane.b32.xlu0 %v1465_v42, %s4968_s2 }
 0xdb1   : > { %v1477_v47 = vpop.permute.xlu1 %1476  ;;  %v1468_v48 = vpop.permute.xlu0 %1467 }
 0xdb2   : > { %v1479_v63 = vsel %vm384_vm0, %v1477_v47, 0.0  ;;  %v1470_v2 = vsel %vm384_vm0, %v1468_v48, 0.0 }
 0xdb3   : > { %1480 = vadd.xlane.f32.xlu1 %v1479_v63  ;;  %1471 = vadd.xlane.f32.xlu0 %v1470_v2 }
 0xdc4   : > { %1499 = vrot.lane.b32.xlu1 %v5251_v16, %s4964_s30 }
 0xdc8   : > { %1504 = vrot.lane.b32.xlu1 %v5255_v20, %s4964_s30 }
 0xdc9   : > { %1488 = vrot.lane.b32.xlu0 %v5249_v15, %s4964_s30 }
 0xdcd   : > { %1493 = vrot.lane.b32.xlu0 %v5253_v19, %s4964_s30 }
 0xe3c   : > { %v1481_v27 = vpop.xlane.xlu1 %1480  ;;  %v1472_v7 = vpop.xlane.xlu0 %1471 }
 0xe3d   : > { %v1482_v9 = vadd.f32 %v1481_v27, %v1472_v7 }
 0xe3f   : > { %v1483_v5 = vmul.f32 0.015625, %v1482_v9 }
 0xe40   : > { %v5512_v12 = vpop.permute.xlu1 %1499  ;;  %v5514_v14 = vpop.permute.xlu0 %1488 }
 0xe41   : > { %v1484_v10 = vadd.f32 1e-05, %v1483_v5 }
 0xe43   : > { %4651 = vrsqrt.f32 %v1484_v10  ;;  %v1439_v10 = vrot.slane %v5353_v33, 4 }
 0xe44   : > { %v5516_v20 = vpop.permute.xlu1 %1504  ;;  %v5518_v22 = vpop.permute.xlu0 %1493 }
 0xe50   : > { %v4652_v16 = vpop.eup %4651 }
 0xe51   : > { %v1497_v17 = vmul.f32 %v4652_v16, %v1473_v28  ;;  %v1486_v18 = vmul.f32 %v4652_v16, %v1464_v26  ;;  %v1440_v16 = vadd.f32 %v1439_v10, %v5353_v33 }
 0xe53   : > { %v1502_v15 = vmul.f32 %v5512_v12, %v1497_v17  ;;  %v1491_v19 = vmul.f32 %v5514_v14, %v1486_v18  ;;  %v1441_v17 = vrot.slane %v1440_v16, 2 }
 0xe55   : > { %v1507_v24 = vadd.f32 %v5516_v20, %v1502_v15  ;;  %v5524_v39 = vadd.f32 %v5518_v22, %v1491_v19  ;;  %v1442_v18 = vadd.f32 %v1441_v17, %v1440_v16 }
 0xe57   : > { %1512 = vrot.lane.b32.xlu1 %v1507_v24, %s4968_s2  ;;  %1510 = vrot.lane.b32.xlu0 %v5524_v39, %s4968_s2  ;;  %v1443_v15 = vrot.slane %v1442_v18, 1 }
 0xe59   : > { %v1444_v19 = vadd.f32 %v1443_v15, %v1442_v18 }
 0xec9   : > { %v1513_v25 = vpop.permute.xlu1 %1512  ;;  %v1511_v26 = vpop.permute.xlu0 %1510 }
 0xeca   : > { %4221 = vmatprep.mubr.msk.f32.mxu0 %vm384_vm0, %v1511_v26 }
 0xecb   : > { %4222 = vmatmul.mubr.msk.f32.vlgmr.msra.gmra.mxu0 %vm384_vm0, %v1513_v25 }
 0xecc   : > { %4262 = vmatpush3.msra.mxu0 %v5310_v56  ;;  %4269 = vmatprep.mubr.msk.f32.mxu0 %vm4966_vm1, %v4965_v38 }
 0xecd   : > { %4263 = vmatprep.subr.mxu0 %v4965_v38 }
 0xece   : > { %4264 = vmatpush3.msra.mxu0 %v5316_v58 }
 0xecf   : > { %4265 = vmatprep.subr.mxu0 %v4965_v38 }
 0xed0   : > { %4266 = vmatpush3.msra.mxu0 %v5322_v59 }
 0xed1   : > { %4267 = vmatprep.subr.mxu0 %v4965_v38 }
 0xed2   : > { %4268 = vmatpush3.msra.mxu0 %v5326_v60 }
 0xed3   : > { %4270 = vmatmul.mubr.msk.f32.vlgmr.msra.gmra.mxu0 %vm384_vm0, %v1511_v26  ;;  %4283 = vmatprep.subr.mxu0 %v4965_v38  ;;  %v1445_v26 = vadd.f32 1e-08, %v1444_v19 }
 0xed4   : > { %4284 = vmatpush3.msra.mxu0 %v5416_v50  ;;  %4299 = vmatprep.mubr.msk.f32.mxu0 %vm4966_vm1, %v4965_v38 }
 0xed5   : > { %4285 = vmatprep.subr.mxu0 %v4965_v38 }
 0xed6   : > { %4286 = vmatpush3.msra.mxu0 %v5418_v57 }
 0xed7   : > { %4287 = vmatprep.subr.mxu0 %v4965_v38 }
 0xed8   : > { %4288 = vmatpush3.msra.mxu0 %v5422_v61 }
 0xed9   : > { %4289 = vmatprep.subr.mxu0 %v4965_v38 }
 0xeda   : > { %4290 = vmatpush3.msra.mxu0 %v5426_v62 }
 0xedb   : > { %4291 = vmatprep.subr.mxu0 %v4965_v38 }
 0xedc   : > { %4292 = vmatpush3.msra.mxu0 %v5432_v1 }
 0xedd   : > { %4293 = vmatprep.subr.mxu0 %v4965_v38 }
 0xede   : > { %4294 = vmatpush3.msra.mxu0 %v5436_v4 }
 0xedf   : > { %4295 = vmatprep.subr.mxu0 %v4965_v38 }
 0xee0   : > { %4296 = vmatpush3.msra.mxu0 %v5456_v11 }
 0xee1   : > { %4297 = vmatprep.subr.mxu0 %v4965_v38 }
 0xee2   : > { %4298 = vmatpush3.msra.mxu0 %v5460_v13 }
 0xee3   : > { %4332 = vmatprep.subr.mxu0 %v4965_v38 }
 0xf8b   : > { %v4223_v56 = vpop.f32.mrf.mxu0 }
 0xf8c   : > { %v1593_v58 = vmul.f32 -2.0, %v4223_v56 }
 0xf8d   : > { %v1584_v60 = vpop.f32.mrf.mxu0 }
 0xf8e   : > { %v1594_v59 = vmul.f32 1.442695, %v1593_v58  ;;  %v1604_v48 = vmul.f32 %v1584_v60, %v1584_v60 }
 0xf90   : > { %4653 = vpow2.f32 %v1594_v59 }
 0xf91   : > { %4655 = vrcp.f32 %v1445_v26 }
 0xf93   : > { %v1914_v28 = vpop.f32.mrf.mxu0 }
 0xf94   : > { %v1915_v19 = vadd.f32 %v5339_v3, %v1914_v28 }
 0xf95   : > { %v4271_v29 = vpop.f32.mrf.mxu0 }
 0xf9d   : > { %v4654_v42 = vpop.eup %4653 }
 0xf9e   : > { %v1596_v47 = vmul.f32 0.17677669, %v4654_v42  ;;  %v4656_v29 = vpop.eup %4655 }
 0xfa0   : > { %v1597_v63 = vmul.f32 %v1596_v47, %v1584_v60  ;;  %v1605_v2 = vmul.f32 %v1604_v48, %v1596_v47  ;;  %v1447_v48 = vmul.f32 %v4656_v29, %v5353_v33 }
 0xfa2   : > { %v1598_v27 = vmul.f32 -2.0, %v1597_v63  ;;  %v1606_v7 = vsel %vm384_vm0, %v1605_v2, 0.0 }
 0xfa3   : > { %1607 = vadd.xlane.f32.xlu1 %v1606_v7 }
 0xfa4   : > { %1600 = vrot.lane.b32.xlu0 %v1598_v27, %s4964_s30 }
0x1016   : > { %v1601_v9 = vpop.permute.xlu0 %1600 }
0x1017   : > { %v1603_v5 = vsel %vm384_vm0, %v1596_v47, %v1601_v9 }
0x1018   : > { %4241 = vmatmul.mubr.msk.f32.vlgmr.msra.gmra.mxu1 %vm877_vm2, %v1603_v5 }
0x1019   : > { %4244 = vmatpush3.msra.mxu1 %v5292_v49  ;;  %4247 = vmatprep.mubr.msk.f32.mxu1 %vm4966_vm1, %v4965_v38 }
0x101a   : > { %4245 = vmatprep.subr.mxu1 %v4965_v38 }
0x101b   : > { %4246 = vmatpush3.msra.mxu1 %v5349_v31 }
0x101c   : > { %4250 = vmatprep.subr.mxu1 %v4965_v38 }
0x102c   : > { %v1608_v24 = vpop.xlane.xlu1 %1607 }
0x10d8   : > { %v1678_v25 = vpop.f32.mrf.mxu1 }
0x10d9   : > { %v1679_v56 = vadd.f32 %v1678_v25, %v1608_v24 }
0x10da   : > { %v4242_v58 = vpop.f32.mrf.mxu1 }
0x10db   : > { %v1682_v59 = vsub.f32 0.0, %v1679_v56 }
0x10dd   : > { %v1683_v60 = vmul.f32 1.442695, %v1682_v59 }
0x10df   : > { %4657 = vpow2.f32 %v1683_v60 }
0x10ec   : > { %v4658_v42 = vpop.eup %4657 }
0x10ed   : > { %v1685_v47 = vadd.f32 1e-08, %v4658_v42 }
0x10ef   : > { %v1686_v63 = vmul.f32 %v1685_v47, %v1447_v48 }
0x10f1   : > { %v1687_v2 = vsel %vm956_vm3, %v1686_v63, 0.0 }
0x10f2   : > { %v1688_v27 = vrot.slane %v1687_v2, 4 }
0x10f4   : > { %v1689_v7 = vadd.f32 %v1688_v27, %v1687_v2 }
0x10f6   : > { %v1690_v9 = vrot.slane %v1689_v7, 2 }
0x10f8   : > { %v1691_v5 = vadd.f32 %v1690_v9, %v1689_v7 }
0x10fa   : > { %v1692_v10 = vrot.slane %v1691_v5, 1 }
0x10fc   : > { %v1693_v16 = vadd.f32 %v1692_v10, %v1691_v5 }
0x10fe   : > { %4659 = vrcp.f32 %v1693_v16 }
0x110b   : > { %v4660_v17 = vpop.eup %4659 }
0x110c   : > { %v1695_v18 = vmul.f32 %v4660_v17, %v1686_v63 }
0x110e   : > { %v1696_v15 = vsel %vm956_vm3, %v1695_v18, 0.0 }
0x110f   : > { %1697 = vadd.xlane.f32.xlu0 %v1696_v15 }
0x1125   : > { %1926 = vrot.lane.b32.xlu0 %v1915_v19, %s4967_s17 }
0x1198   : > { %v1698_v33 = vpop.xlane.xlu0 %1697 }
0x1199   : > { %4661 = vrcp.f32 %v1698_v33 }
0x119c   : > { %v1927_v29 = vpop.permute.xlu0 %1926 }
0x11a6   : > { %v4662_v24 = vpop.eup %4661 }
0x11a7   : > { %v5577_v25 = vmul.f32 %v4662_v24, %v1698_v33  ;;  %v1700_v26 = vmul.f32 %v4662_v24, %v1695_v18 }
0x11a9   : > { %4248 = vmatmul.mubr.msk.f32.vlgmr.msra.gmra.mxu1 %vm956_vm3, %v1700_v26 }
0x11aa   : > { %4251 = vmatpush3.msra.mxu1 %v5355_v35  ;;  %4258 = vmatprep.mubr.msk.f32.mxu1 %vm4966_vm1, %v4965_v38 }
0x11ab   : > { %4252 = vmatprep.subr.mxu1 %v4965_v38 }
0x11ac   : > { %4253 = vmatpush3.msra.mxu1 %v5358_v36 }
0x11ad   : > { %4254 = vmatprep.subr.mxu1 %v4965_v38 }
0x11ae   : > { %4255 = vmatpush3.msra.mxu1 %v5364_v23 }
0x11af   : > { %4256 = vmatprep.subr.mxu1 %v4965_v38 }
0x11b0   : > { %4257 = vmatpush3.msra.mxu1 %v5370_v37 }
0x11b1   : > { %4272 = vmatprep.subr.mxu1 %v4965_v38 }
0x1269   : > { %v5590_v3 = vpop.f32.mrf.mxu1 }
0x126a   : > { %4259 = vmatmul.mubr.msk.f32.vlgmr.msra.gmra.mxu1 %vm384_vm0, %v5590_v3 }
0x126b   : > { %v4249_v35 = vpop.f32.mrf.mxu1  ;;  %4273 = vmatpush3.msra.mxu1 %v5400_v30  ;;  %4280 = vmatprep.mubr.msk.f32.mxu1 %vm4966_vm1, %v4965_v38 }
0x126c   : > { %4274 = vmatprep.subr.mxu1 %v4965_v38 }
0x126d   : > { %4275 = vmatpush3.msra.mxu1 %v5402_v32 }
0x126e   : > { %4276 = vmatprep.subr.mxu1 %v4965_v38 }
0x126f   : > { %4277 = vmatpush3.msra.mxu1 %v5406_v34 }
0x1270   : > { %4278 = vmatprep.subr.mxu1 %v4965_v38 }
0x1271   : > { %4279 = vmatpush3.msra.mxu1 %v5410_v40 }
0x1272   : > { %4302 = vmatprep.subr.mxu1 %v5229_v53 }
0x132a   : > { %v1844_v36 = vpop.f32.mrf.mxu1 }
0x132b   : > { %v1845_v23 = vadd.f32 %v5383_v41, %v1844_v36 }
0x132c   : > { %v4260_v37 = vpop.f32.mrf.mxu1 }
0x132d   : > { %v1918_v28 = vadd.f32 %v1915_v19, %v1845_v23 }
0x132f   : > { %v3866_v56 = vmul.f32 -1.442695, %v1918_v28  ;;  %v5618_v28 = vld [vmem:[#allocation8 + $0x18] sm:$0xff] }
0x1331   : > { %4663 = vpow2.f32 %v3866_v56  ;;  %v5621_v56 = vld [vmem:[#allocation8 + $0x10] sm:$0xff] }
0x133e   : > { %v4664_v58 = vpop.eup %4663 }
0x133f   : > { %v1922_v59 = vadd.f32 1.0, %v4664_v58  ;;  %v5625_v58 = vld [vmem:[#allocation8 + $0x8] sm:$0xff] }
0x1341   : > { %4665 = vrcp.f32 %v1922_v59  ;;  %v5629_v59 = vld [vmem:[#allocation8] sm:$0xff] }
0x134e   : > { %v4666_v60 = vpop.eup %4665 }
0x134f   : > { %v1929_v42 = vmul.f32 %v4666_v60, %v1927_v29  ;;  %v1936_v53 = vsub.f32 1.0, %v4666_v60  ;;  %v1942_v2 = vmul.f32 %v4666_v60, %v5524_v39 }
0x1351   : > { %1931 = vrot.lane.b32.xlu1 %v1929_v42, %s4967_s17 }
0x13c3   : > { %v1932_v47 = vpop.permute.xlu1 %1931 }
0x13c4   : > { %v1934_v48 = vadd.f32 %v1932_v47, %v1845_v23 }
0x13c6   : > { %4667 = vtanh.f32 %v1934_v48 }
0x13d3   : > { %v4668_v63 = vpop.eup %4667 }
0x13d4   : > { %1938 = vrot.lane.b32.xlu1 %v4668_v63, %s4968_s2 }
0x1446   : > { %v1939_v41 = vpop.permute.xlu1 %1938 }
0x1447   : > { %v1941_v27 = vmul.f32 %v1939_v41, %v1936_v53 }
0x1449   : > { %v1943_v7 = vadd.f32 %v1942_v2, %v1941_v27 }
0x144b   : > { %1945 = vrot.lane.b32.xlu0 %v1943_v7, %s4968_s2 }
0x14bd   : > { %v1946_v9 = vpop.permute.xlu0 %1945 }
0x14be   : > { %v1948_v5 = vsel %vm384_vm0, %v1946_v9, 0.0 }
0x14bf   : > { %1949 = vadd.xlane.f32.xlu1 %v1948_v5 }
0x1548   : > { %v1950_v10 = vpop.xlane.xlu1 %1949 }
0x1549   : > { %v1951_v16 = vmul.f32 0.03125, %v1950_v10 }
0x154b   : > { %v1952_v17 = vsub.f32 %v1943_v7, %v1951_v16 }
0x154d   : > { %v1953_v18 = vmul.f32 %v1952_v17, %v1952_v17 }
0x154f   : > { %1955 = vrot.lane.b32.xlu0 %v1953_v18, %s4968_s2 }
0x15c1   : > { %v1956_v15 = vpop.permute.xlu0 %1955 }
0x15c2   : > { %v1958_v19 = vsel %vm384_vm0, %v1956_v15, 0.0 }
0x15c3   : > { %1959 = vadd.xlane.f32.xlu0 %v1958_v19 }
0x164c   : > { %v1960_v33 = vpop.xlane.xlu0 %1959 }
0x164d   : > { %v1961_v39 = vmul.f32 0.03125, %v1960_v33 }
0x164f   : > { %v1962_v24 = vadd.f32 1e-05, %v1961_v39 }
0x1651   : > { %4669 = vrsqrt.f32 %v1962_v24 }
0x165e   : > { %v4670_v26 = vpop.eup %4669 }
0x165f   : > { %v1964_v35 = vmul.f32 %v4670_v26, %v1952_v17 }
0x1661   : > { %v1965_v36 = vmul.f32 %v1964_v35, %v5429_v0 }
0x1663   : > { %v1966_v23 = vadd.f32 %v1965_v36, %v5440_v8 }
0x1665   : > { %1968 = vrot.lane.b32.xlu1 %v1966_v23, %s4968_s2 }
0x1669   : > { %2122 = vrot.lane.b32.xlu1 %v5590_v3, %s4964_s30 }
0x16d7   : > { %v1969_v37 = vpop.permute.xlu1 %1968 }
0x16d8   : > { %4281 = vmatmul.mubr.msk.f32.vlgmr.msra.gmra.mxu1 %vm384_vm0, %v1969_v37 }
0x16d9   : > { %4303 = vmatpush3.msra.mxu1 %v5618_v28 }
0x16da   : > { %4304 = vmatprep.subr.mxu1 %v5621_v56 }
0x16db   : > { %4305 = vmatpush3.msra.mxu1 %v5621_v56  ;;  %v2123_v5 = vpop.permute.xlu1 %2122 }
0x16dc   : > { %4306 = vmatprep.subr.mxu1 %v5625_v58 }
0x16dd   : > { %4307 = vmatpush3.msra.mxu1 %v5625_v58 }
0x16de   : > { %4308 = vmatprep.subr.mxu1 %v5629_v59 }
0x16df   : > { %4309 = vmatpush3.msra.mxu1 %v5629_v59 }
0x16e0   : > { %4313 = vmatprep.subr.mxu1 %v4965_v38 }
0x1798   : > { %v2038_v60 = vpop.f32.mrf.mxu1 }
0x1799   : > { %v2039_v29 = vadd.f32 %v5467_v6, %v2038_v60 }
0x179a   : > { %v4282_v42 = vpop.f32.mrf.mxu1 }
0x179b   : > { %v2042_v47 = vmax.f32 %v2039_v29, 0.0 }
0x179d   : > { %4300 = vmatmul.mubr.msk.f32.vlgmr.msra.gmra.mxu0 %vm877_vm2, %v2042_v47 }
0x179e   : > { %4333 = vmatpush3.msra.mxu0 %v5292_v49  ;;  %4336 = vmatprep.mubr.msk.f32.mxu0 %vm4966_vm1, %v4965_v38 }
0x179f   : > { %4334 = vmatprep.subr.mxu0 %v4965_v38 }
0x17a0   : > { %4335 = vmatpush3.msra.mxu0 %v5349_v31 }
0x17a1   : > { %4339 = vmatprep.subr.mxu0 %v4965_v38 }
0x185d   : > { %v2112_v48 = vpop.f32.mrf.mxu0 }
0x185e   : > { %v2113_v63 = vadd.f32 %v5489_v21, %v2112_v48 }
0x185f   : > { %v4301_v53 = vpop.f32.mrf.mxu0 }
0x1860   : > { %2117 = vrot.lane.b32.xlu0 %v2113_v63, %s4964_s30 }
0x18d2   : > { %v2118_v41 = vpop.permute.xlu0 %2117 }
0x18d3   : > { %v2120_v2 = vadd.f32 %v2118_v41, %v1943_v7 }
0x18d5   : > { %v2121_v27 = vmul.f32 2.0, %v2120_v2  ;;  %v2127_v9 = vmul.f32 %v2120_v2, %v2120_v2  ;;  %2144 = vrot.lane.b32.xlu1 %v2120_v2, %s4968_s2 }
0x18d7   : > { %v2125_v10 = vmul.f32 %v2123_v5, %v2121_v27  ;;  %v2128_v16 = vadd.f32 1e-08, %v2127_v9 }
0x18d9   : > { %v2126_v17 = vsub.f32 %v5590_v3, %v2125_v10  ;;  %v2129_v18 = vmul.f32 %v2128_v16, %v5577_v25 }
0x18db   : > { %v2130_v15 = vadd.f32 %v2129_v18, %v2126_v17 }
0x18dd   : > { %4671 = vlog2.f32 %v2130_v15 }
0x18ea   : > { %v4672_v19 = vpop.eup %4671 }
0x18eb   : > { %v2132_v33 = vmul.f32 0.6931472, %v4672_v19 }
0x18ed   : > { %v2133_v39 = vmul.f32 0.5, %v2132_v33 }
0x18ef   : > { %2151 = vrot.lane.b32.xlu0 %v2133_v39, %s4968_s2 }
0x1947   : > { %v2145_v24 = vpop.permute.xlu1 %2144 }
0x1948   : > { %v2147_v7 = vsel %vm384_vm0, %v2145_v24, 0.0 }
0x1949   : > { %2148 = vadd.xlane.f32.xlu1 %v2147_v7 }
0x1961   : > { %v2152_v26 = vpop.permute.xlu0 %2151 }
0x1962   : > { %v2154_v35 = vsel %vm384_vm0, %v2152_v26, 0.0 }
0x1963   : > { %2155 = vadd.xlane.f32.xlu0 %v2154_v35 }
0x19d2   : > { %v2149_v36 = vpop.xlane.xlu1 %2148 }
0x19ec   : > { %v2156_v23 = vpop.xlane.xlu0 %2155 }
0x19ed   : > { %v2157_v3 = vadd.f32 %v2156_v23, %v2149_v36 }
0x19ef   : > { %v2158_v37 = vmul.f32 0.015625, %v2157_v3 }
0x19f1   : > { %v2159_v60 = vsub.f32 %v2120_v2, %v2158_v37  ;;  %v2168_v29 = vsub.f32 %v2133_v39, %v2158_v37 }
0x19f3   : > { %v2169_v42 = vmul.f32 %v2168_v29, %v2168_v29  ;;  %v2160_v47 = vmul.f32 %v2159_v60, %v2159_v60 }
0x19f5   : > { %2171 = vrot.lane.b32.xlu1 %v2169_v42, %s4968_s2  ;;  %2162 = vrot.lane.b32.xlu0 %v2160_v47, %s4968_s2 }
0x1a67   : > { %v2172_v48 = vpop.permute.xlu1 %2171  ;;  %v2163_v63 = vpop.permute.xlu0 %2162 }
0x1a68   : > { %v2174_v53 = vsel %vm384_vm0, %v2172_v48, 0.0  ;;  %v2165_v41 = vsel %vm384_vm0, %v2163_v63, 0.0 }
0x1a69   : > { %2175 = vadd.xlane.f32.xlu0 %v2174_v53  ;;  %2166 = vadd.xlane.f32.xlu1 %v2165_v41  ;;  %v5687_v41 = vld [vmem:[#allocation8 + $0x98] sm:$0xff] }
0x1af2   : > { %v2167_v27 = vpop.xlane.xlu1 %2166  ;;  %v2176_v9 = vpop.xlane.xlu0 %2175 }
0x1af3   : > { %v2177_v5 = vadd.f32 %v2176_v9, %v2167_v27  ;;  %v5693_v27 = vld [vmem:[#allocation8 + $0x90] sm:$0xff]  ;;  %v5697_v9 = vld [vmem:[#allocation8 + $0x88] sm:$0xff] }
0x1af5   : > { %v2178_v10 = vmul.f32 0.015625, %v2177_v5  ;;  %v5701_v5 = vld [vmem:[#allocation8 + $0x80] sm:$0xff] }
0x1af7   : > { %v2179_v2 = vadd.f32 1e-05, %v2178_v10 }
0x1af9   : > { %4673 = vrsqrt.f32 %v2179_v2 }
0x1b06   : > { %v4674_v16 = vpop.eup %4673 }
0x1b07   : > { %v2184_v17 = vmul.f32 %v4674_v16, %v2168_v29  ;;  %v2181_v18 = vmul.f32 %v4674_v16, %v2159_v60 }
0x1b09   : > { %v2185_v15 = vmul.f32 %v2184_v17, %v5512_v12  ;;  %v2182_v19 = vmul.f32 %v2181_v18, %v5514_v14 }
0x1b0b   : > { %v2186_v33 = vadd.f32 %v2185_v15, %v5516_v20  ;;  %v5658_v39 = vadd.f32 %v2182_v19, %v5518_v22  ;;  %v5729_v19 = vld [vmem:[%s6014_s3 + $0x1] ss:$0 sm:$0xff] }
0x1b0d   : > { %2191 = vrot.lane.b32.xlu1 %v2186_v33, %s4968_s2  ;;  %2189 = vrot.lane.b32.xlu0 %v5658_v39, %s4968_s2 }
0x1b7f   : > { %v2192_v24 = vpop.permute.xlu1 %2191  ;;  %v2190_v7 = vpop.permute.xlu0 %2189 }
0x1b80   : > { %4310 = vmatprep.mubr.msk.f32.mxu1 %vm384_vm0, %v2190_v7 }
0x1b81   : > { %4311 = vmatmul.mubr.msk.f32.vlgmr.msra.gmra.mxu1 %vm384_vm0, %v2192_v24 }
0x1b82   : > { %4314 = vmatpush3.msra.mxu1 %v5281_v46  ;;  %4329 = vmatprep.mubr.msk.f32.mxu1 %vm4966_vm1, %v4965_v38 }
0x1b83   : > { %4315 = vmatprep.subr.mxu1 %v4965_v38 }
0x1b84   : > { %4316 = vmatpush3.msra.mxu1 %v5279_v45 }
0x1b85   : > { %4317 = vmatprep.subr.mxu1 %v4965_v38 }
0x1b86   : > { %4318 = vmatpush3.msra.mxu1 %v5277_v44 }
0x1b87   : > { %4319 = vmatprep.subr.mxu1 %v4965_v38 }
0x1b88   : > { %4320 = vmatpush3.msra.mxu1 %v5275_v43 }
0x1b89   : > { %4321 = vmatprep.subr.mxu1 %v4965_v38 }
0x1b8a   : > { %4322 = vmatpush3.msra.mxu1 %v5302_v55 }
0x1b8b   : > { %4323 = vmatprep.subr.mxu1 %v4965_v38 }
0x1b8c   : > { %4324 = vmatpush3.msra.mxu1 %v5300_v54 }
0x1b8d   : > { %4325 = vmatprep.subr.mxu1 %v4965_v38 }
0x1b8e   : > { %4326 = vmatpush3.msra.mxu1 %v5298_v52 }
0x1b8f   : > { %4327 = vmatprep.subr.mxu1 %v4965_v38 }
0x1b90   : > { %4328 = vmatpush3.msra.mxu1 %v5296_v51 }
0x1b91   : > { %4350 = vmatprep.subr.mxu1 %v4965_v38 }
0x1c41   : > { %v4312_v26 = vpop.f32.mrf.mxu1 }
0x1c42   : > { %v2272_v35 = vmul.f32 -2.0, %v4312_v26 }
0x1c43   : > { %v2263_v23 = vpop.f32.mrf.mxu1 }
0x1c44   : > { %v2273_v36 = vmul.f32 1.442695, %v2272_v35  ;;  %v2283_v60 = vmul.f32 %v2263_v23, %v2263_v23 }
0x1c46   : > { %4675 = vpow2.f32 %v2273_v36 }
0x1c53   : > { %v4676_v3 = vpop.eup %4675 }
0x1c54   : > { %v2275_v37 = vmul.f32 0.17677669, %v4676_v3 }
0x1c56   : > { %v2276_v29 = vmul.f32 %v2275_v37, %v2263_v23  ;;  %v2284_v42 = vmul.f32 %v2283_v60, %v2275_v37 }
0x1c58   : > { %v2277_v47 = vmul.f32 -2.0, %v2276_v29  ;;  %v2285_v48 = vsel %vm384_vm0, %v2284_v42, 0.0 }
0x1c59   : > { %2286 = vadd.xlane.f32.xlu0 %v2285_v48 }
0x1c5a   : > { %2279 = vrot.lane.b32.xlu1 %v2277_v47, %s4964_s30 }
0x1ccc   : > { %v2280_v63 = vpop.permute.xlu1 %2279 }
0x1ccd   : > { %v2282_v53 = vsel %vm384_vm0, %v2275_v37, %v2280_v63 }
0x1cce   : > { %4330 = vmatmul.mubr.msk.f32.vlgmr.msra.gmra.mxu1 %vm877_vm2, %v2282_v53 }
0x1ccf   : > { %4351 = vmatpush3.msra.mxu1 %v5687_v41  ;;  %4358 = vmatprep.mubr.msk.f32.mxu1 %vm4966_vm1, %v4965_v38 }
0x1cd0   : > { %4352 = vmatprep.subr.mxu1 %v4965_v38 }
0x1cd1   : > { %4353 = vmatpush3.msra.mxu1 %v5693_v27 }
0x1cd2   : > { %4354 = vmatprep.subr.mxu1 %v4965_v38 }
0x1cd3   : > { %4355 = vmatpush3.msra.mxu1 %v5697_v9 }
0x1cd4   : > { %4356 = vmatprep.subr.mxu1 %v4965_v38 }
0x1cd5   : > { %4357 = vmatpush3.msra.mxu1 %v5701_v5 }
0x1cd6   : > { %4359 = vmatmul.mubr.msk.f32.vlgmr.msra.gmra.mxu1 %vm384_vm0, %v2190_v7  ;;  %4372 = vmatprep.subr.mxu1 %v4965_v38 }
0x1cd7   : > { %4373 = vmatpush3.msra.mxu1 %v5416_v50  ;;  %4388 = vmatprep.mubr.msk.f32.mxu1 %vm4966_vm1, %v4965_v38  ;;  %v2134_v50 = vrot.slane %v5577_v25, 4 }
0x1cd8   : > { %4374 = vmatprep.subr.mxu1 %v4965_v38 }
0x1cd9   : > { %4375 = vmatpush3.msra.mxu1 %v5418_v57  ;;  %v2135_v57 = vadd.f32 %v2134_v50, %v5577_v25 }
0x1cda   : > { %4376 = vmatprep.subr.mxu1 %v4965_v38 }
0x1cdb   : > { %4377 = vmatpush3.msra.mxu1 %v5422_v61  ;;  %v2136_v61 = vrot.slane %v2135_v57, 2 }
0x1cdc   : > { %4378 = vmatprep.subr.mxu1 %v4965_v38 }
0x1cdd   : > { %4379 = vmatpush3.msra.mxu1 %v5426_v62  ;;  %v2137_v62 = vadd.f32 %v2136_v61, %v2135_v57 }
0x1cde   : > { %4380 = vmatprep.subr.mxu1 %v4965_v38 }
0x1cdf   : > { %4381 = vmatpush3.msra.mxu1 %v5432_v1  ;;  %v2138_v1 = vrot.slane %v2137_v62, 1 }
0x1ce0   : > { %4382 = vmatprep.subr.mxu1 %v4965_v38 }
0x1ce1   : > { %4383 = vmatpush3.msra.mxu1 %v5436_v4  ;;  %v2139_v10 = vadd.f32 %v2138_v1, %v2137_v62  ;;  %v5743_v62 = vld [vmem:[#allocation8 + $0x78] sm:$0xff]  ;;  %v5749_v1 = vld [vmem:[#allocation8 + $0x70] sm:$0xff] }
0x1ce2   : > { %4384 = vmatprep.subr.mxu1 %v4965_v38  ;;  %v2287_v2 = vpop.xlane.xlu0 %2286 }
0x1ce3   : > { %4385 = vmatpush3.msra.mxu1 %v5456_v11  ;;  %v2140_v16 = vadd.f32 1e-08, %v2139_v10  ;;  %v5753_v10 = vld [vmem:[#allocation8 + $0x68] sm:$0xff] }
0x1ce4   : > { %4386 = vmatprep.subr.mxu1 %v4965_v38 }
0x1ce5   : > { %4387 = vmatpush3.msra.mxu1 %v5460_v13  ;;  %4677 = vrcp.f32 %v2140_v16 }
0x1ce6   : > { %4421 = vmatprep.subr.mxu1 %v4965_v38 }
0x1cf2   : > { %v4678_v7 = vpop.eup %4677 }
0x1cf3   : > { %v2142_v36 = vmul.f32 %v4678_v7, %v5577_v25 }
0x1d8e   : > { %v2357_v4 = vpop.f32.mrf.mxu1 }
0x1d8f   : > { %v2358_v17 = vadd.f32 %v2357_v4, %v2287_v2  ;;  %v5757_v2 = vld [vmem:[#allocation8 + $0x60] sm:$0xff] }
0x1d90   : > { %v4331_v18 = vpop.f32.mrf.mxu1 }
0x1d91   : > { %v2361_v11 = vsub.f32 0.0, %v2358_v17 }
0x1d93   : > { %v2362_v15 = vmul.f32 1.442695, %v2361_v11 }
0x1d95   : > { %4679 = vpow2.f32 %v2362_v15 }
0x1d96   : > { %v2593_v13 = vpop.f32.mrf.mxu1 }
0x1d97   : > { %v2594_v33 = vadd.f32 %v5729_v19, %v2593_v13 }
0x1d98   : > { %v4360_v24 = vpop.f32.mrf.mxu1 }
0x1d99   : > { %2605 = vrot.lane.b32.xlu0 %v2594_v33, %s4967_s17 }
0x1da2   : > { %v4680_v26 = vpop.eup %4679 }
0x1da3   : > { %v2364_v35 = vadd.f32 1e-08, %v4680_v26 }
0x1da5   : > { %v2365_v23 = vmul.f32 %v2364_v35, %v2142_v36 }
0x1da7   : > { %v2366_v3 = vsel %vm956_vm3, %v2365_v23, 0.0 }
0x1da8   : > { %v2367_v37 = vrot.slane %v2366_v3, 4 }
0x1daa   : > { %v2368_v60 = vadd.f32 %v2367_v37, %v2366_v3 }
0x1dac   : > { %v2369_v29 = vrot.slane %v2368_v60, 2 }
0x1dae   : > { %v2370_v42 = vadd.f32 %v2369_v29, %v2368_v60 }
0x1db0   : > { %v2371_v47 = vrot.slane %v2370_v42, 1 }
0x1db2   : > { %v2372_v48 = vadd.f32 %v2371_v47, %v2370_v42 }
0x1db4   : > { %4681 = vrcp.f32 %v2372_v48 }
0x1dc1   : > { %v4682_v63 = vpop.eup %4681 }
0x1dc2   : > { %v2374_v53 = vmul.f32 %v4682_v63, %v2365_v23 }
0x1dc4   : > { %v2375_v50 = vsel %vm956_vm3, %v2374_v53, 0.0 }
0x1dc5   : > { %2376 = vadd.xlane.f32.xlu1 %v2375_v50 }
0x1e0b   : > { %v2606_v7 = vpop.permute.xlu0 %2605 }
0x1e4e   : > { %v5736_v57 = vpop.xlane.xlu1 %2376 }
0x1e4f   : > { %4683 = vrcp.f32 %v5736_v57 }
0x1e5c   : > { %v5739_v25 = vpop.eup %4683 }
0x1e5d   : > { %v2379_v61 = vmul.f32 %v5739_v25, %v2374_v53 }
0x1e5f   : > { %4337 = vmatmul.mubr.msk.f32.vlgmr.msra.gmra.mxu0 %vm956_vm3, %v2379_v61 }
0x1e60   : > { %4340 = vmatpush3.msra.mxu0 %v5743_v62  ;;  %4347 = vmatprep.mubr.msk.f32.mxu0 %vm4966_vm1, %v4965_v38 }
0x1e61   : > { %4341 = vmatprep.subr.mxu0 %v4965_v38 }
0x1e62   : > { %4342 = vmatpush3.msra.mxu0 %v5749_v1 }
0x1e63   : > { %4343 = vmatprep.subr.mxu0 %v4965_v38 }
0x1e64   : > { %4344 = vmatpush3.msra.mxu0 %v5753_v10 }
0x1e65   : > { %4345 = vmatprep.subr.mxu0 %v4965_v38 }
0x1e66   : > { %4346 = vmatpush3.msra.mxu0 %v5757_v2 }
0x1e67   : > { %4361 = vmatprep.subr.mxu0 %v4965_v38 }
0x1f1f   : > { %v5761_v4 = vpop.f32.mrf.mxu0 }
0x1f20   : > { %4348 = vmatmul.mubr.msk.f32.vlgmr.msra.gmra.mxu0 %vm384_vm0, %v5761_v4 }
0x1f21   : > { %v4338_v16 = vpop.f32.mrf.mxu0  ;;  %4362 = vmatpush3.msra.mxu0 %v5400_v30  ;;  %4369 = vmatprep.mubr.msk.f32.mxu0 %vm4966_vm1, %v4965_v38  ;;  %v5778_v30 = vld [vmem:[%s6014_s3] ss:$0 sm:$0xff] }
0x1f22   : > { %4363 = vmatprep.subr.mxu0 %v4965_v38 }
0x1f23   : > { %4364 = vmatpush3.msra.mxu0 %v5402_v32 }
0x1f24   : > { %4365 = vmatprep.subr.mxu0 %v4965_v38 }
0x1f25   : > { %4366 = vmatpush3.msra.mxu0 %v5406_v34 }
0x1f26   : > { %4367 = vmatprep.subr.mxu0 %v4965_v38 }
0x1f27   : > { %4368 = vmatpush3.msra.mxu0 %v5410_v40 }
0x1f28   : > { %4391 = vmatprep.subr.mxu0 %v5618_v28 }
0x1fe0   : > { %v2523_v17 = vpop.f32.mrf.mxu0 }
0x1fe1   : > { %v2524_v18 = vadd.f32 %v5778_v30, %v2523_v17 }
0x1fe2   : > { %v4349_v11 = vpop.f32.mrf.mxu0 }
0x1fe3   : > { %v2597_v32 = vadd.f32 %v2594_v33, %v2524_v18 }
0x1fe5   : > { %v3875_v15 = vmul.f32 -1.442695, %v2597_v32 }
0x1fe7   : > { %4685 = vpow2.f32 %v3875_v15 }
0x1ff4   : > { %v4686_v13 = vpop.eup %4685 }
0x1ff5   : > { %v2601_v34 = vadd.f32 1.0, %v4686_v13 }
0x1ff7   : > { %4687 = vrcp.f32 %v2601_v34 }
0x2004   : > { %v4688_v24 = vpop.eup %4687 }
0x2005   : > { %v2608_v40 = vmul.f32 %v4688_v24, %v2606_v7  ;;  %v2615_v23 = vsub.f32 1.0, %v4688_v24  ;;  %v2621_v33 = vmul.f32 %v4688_v24, %v5658_v39 }
0x2007   : > { %2610 = vrot.lane.b32.xlu1 %v2608_v40, %s4967_s17 }
0x2079   : > { %v2611_v26 = vpop.permute.xlu1 %2610 }
0x207a   : > { %v2613_v35 = vadd.f32 %v2611_v26, %v2524_v18 }
0x207c   : > { %4689 = vtanh.f32 %v2613_v35 }
0x2089   : > { %v4690_v36 = vpop.eup %4689 }
0x208a   : > { %2617 = vrot.lane.b32.xlu0 %v4690_v36, %s4968_s2  ;;  %v5815_v36 = vmul.f32 %v5739_v25, %v5736_v57 }
0x20fc   : > { %v2618_v3 = vpop.permute.xlu0 %2617 }
0x20fd   : > { %v2620_v37 = vmul.f32 %v2618_v3, %v2615_v23 }
0x20ff   : > { %v2622_v60 = vadd.f32 %v2621_v33, %v2620_v37 }
0x2101   : > { %2624 = vrot.lane.b32.xlu1 %v2622_v60, %s4968_s2 }
0x2173   : > { %v2625_v29 = vpop.permute.xlu1 %2624 }
0x2174   : > { %v2627_v42 = vsel %vm384_vm0, %v2625_v29, 0.0 }
0x2175   : > { %2628 = vadd.xlane.f32.xlu0 %v2627_v42 }
0x21fe   : > { %v2629_v47 = vpop.xlane.xlu0 %2628 }
0x21ff   : > { %v2630_v48 = vmul.f32 0.03125, %v2629_v47 }
0x2201   : > { %v2631_v63 = vsub.f32 %v2622_v60, %v2630_v48 }
0x2203   : > { %v2632_v53 = vmul.f32 %v2631_v63, %v2631_v63 }
0x2205   : > { %2634 = vrot.lane.b32.xlu1 %v2632_v53, %s4968_s2 }
0x2277   : > { %v2635_v50 = vpop.permute.xlu1 %2634 }
0x2278   : > { %v2637_v61 = vsel %vm384_vm0, %v2635_v50, 0.0 }
0x2279   : > { %2638 = vadd.xlane.f32.xlu1 %v2637_v61 }
0x2302   : > { %v2639_v16 = vpop.xlane.xlu1 %2638 }
0x2303   : > { %v2640_v39 = vmul.f32 0.03125, %v2639_v16 }
0x2305   : > { %v2641_v17 = vadd.f32 1e-05, %v2640_v39 }
0x2307   : > { %4691 = vrsqrt.f32 %v2641_v17 }
0x2314   : > { %v4692_v18 = vpop.eup %4691 }
0x2315   : > { %v2643_v11 = vmul.f32 %v4692_v18, %v2631_v63 }
0x2317   : > { %v2644_v32 = vmul.f32 %v2643_v11, %v5429_v0 }
0x2319   : > { %v2645_v15 = vadd.f32 %v2644_v32, %v5440_v8 }
0x231b   : > { %2647 = vrot.lane.b32.xlu0 %v2645_v15, %s4968_s2 }
0x231f   : > { %2801 = vrot.lane.b32.xlu0 %v5761_v4, %s4964_s30 }
0x238d   : > { %v2648_v13 = vpop.permute.xlu0 %2647 }
0x238e   : > { %4370 = vmatmul.mubr.msk.f32.vlgmr.msra.gmra.mxu0 %vm384_vm0, %v2648_v13 }
0x238f   : > { %4392 = vmatpush3.msra.mxu0 %v5618_v28 }
0x2390   : > { %4393 = vmatprep.subr.mxu0 %v5621_v56 }
0x2391   : > { %4394 = vmatpush3.msra.mxu0 %v5621_v56 }
0x2392   : > { %4395 = vmatprep.subr.mxu0 %v5625_v58 }
0x2393   : > { %4396 = vmatpush3.msra.mxu0 %v5625_v58 }
0x2394   : > { %4397 = vmatprep.subr.mxu0 %v5629_v59 }
0x2395   : > { %4398 = vmatpush3.msra.mxu0 %v5629_v59 }
0x2396   : > { %4402 = vmatprep.subr.mxu0 %v4965_v38 }
0x244e   : > { %v2717_v34 = vpop.f32.mrf.mxu0 }
0x244f   : > { %v2718_v24 = vadd.f32 %v5467_v6, %v2717_v34 }
0x2450   : > { %v4371_v7 = vpop.f32.mrf.mxu0 }
0x2451   : > { %v2721_v40 = vmax.f32 %v2718_v24, 0.0 }
0x2453   : > { %4389 = vmatmul.mubr.msk.f32.vlgmr.msra.gmra.mxu1 %vm877_vm2, %v2721_v40 }
0x2454   : > { %4422 = vmatpush3.msra.mxu1 %v5292_v49  ;;  %4425 = vmatprep.mubr.msk.f32.mxu1 %vm4966_vm1, %v4965_v38  ;;  %v2802_v49 = vpop.permute.xlu0 %2801 }
0x2455   : > { %4423 = vmatprep.subr.mxu1 %v4965_v38 }
0x2456   : > { %4424 = vmatpush3.msra.mxu1 %v5349_v31 }
0x2457   : > { %4428 = vmatprep.subr.mxu1 %v4965_v38 }
0x2513   : > { %v2791_v28 = vpop.f32.mrf.mxu1 }
0x2514   : > { %v2792_v56 = vadd.f32 %v5489_v21, %v2791_v28 }
0x2515   : > { %v4390_v58 = vpop.f32.mrf.mxu1 }
0x2516   : > { %2796 = vrot.lane.b32.xlu1 %v2792_v56, %s4964_s30 }
0x2588   : > { %v2797_v6 = vpop.permute.xlu1 %2796 }
0x2589   : > { %v2799_v59 = vadd.f32 %v2797_v6, %v2622_v60 }
0x258b   : > { %v2800_v26 = vmul.f32 2.0, %v2799_v59  ;;  %v2806_v35 = vmul.f32 %v2799_v59, %v2799_v59  ;;  %2823 = vrot.lane.b32.xlu0 %v2799_v59, %s4968_s2 }
0x258d   : > { %v2804_v31 = vmul.f32 %v2802_v49, %v2800_v26  ;;  %v2807_v23 = vadd.f32 1e-08, %v2806_v35 }
0x258f   : > { %v2805_v3 = vsub.f32 %v5761_v4, %v2804_v31  ;;  %v2808_v21 = vmul.f32 %v2807_v23, %v5815_v36  ;;  %v4735_v23 = vld [vmem:[#allocation10 + $0x18] sm:$0xff] }
0x2591   : > { %v2809_v33 = vadd.f32 %v2808_v21, %v2805_v3  ;;  %v4736_v3 = vld [vmem:[#allocation10 + $0x10] sm:$0xff]  ;;  %v4737_v21 = vld [vmem:[#allocation10 + $0x8] sm:$0xff] }
0x2593   : > { %4693 = vlog2.f32 %v2809_v33  ;;  %v4738_v33 = vld [vmem:[#allocation10] sm:$0xff] }
0x25a0   : > { %v4694_v37 = vpop.eup %4693 }
0x25a1   : > { %v2811_v29 = vmul.f32 0.6931472, %v4694_v37  ;;  %v2813_v37 = vrot.slane %v5815_v36, 4 }
0x25a3   : > { %v2812_v60 = vmul.f32 0.5, %v2811_v29  ;;  %v2814_v29 = vadd.f32 %v2813_v37, %v5815_v36 }
0x25a5   : > { %2830 = vrot.lane.b32.xlu1 %v2812_v60, %s4968_s2 }
0x25fd   : > { %v2824_v42 = vpop.permute.xlu0 %2823 }
0x25fe   : > { %v2826_v47 = vsel %vm384_vm0, %v2824_v42, 0.0 }
0x25ff   : > { %2827 = vadd.xlane.f32.xlu0 %v2826_v47 }
0x2617   : > { %v2831_v48 = vpop.permute.xlu1 %2830 }
0x2618   : > { %v2833_v57 = vsel %vm384_vm0, %v2831_v48, 0.0 }
0x2619   : > { %2834 = vadd.xlane.f32.xlu1 %v2833_v57 }
0x2688   : > { %v2828_v25 = vpop.xlane.xlu0 %2827 }
0x26a2   : > { %v2835_v63 = vpop.xlane.xlu1 %2834 }
0x26a3   : > { %v2836_v4 = vadd.f32 %v2835_v63, %v2828_v25 }
0x26a5   : > { %v2837_v53 = vmul.f32 0.015625, %v2836_v4 }
0x26a7   : > { %v2838_v50 = vsub.f32 %v2799_v59, %v2837_v53  ;;  %v2847_v61 = vsub.f32 %v2812_v60, %v2837_v53  ;;  %v2815_v60 = vrot.slane %v2814_v29, 2 }
0x26a9   : > { %v2848_v16 = vmul.f32 %v2847_v61, %v2847_v61  ;;  %v2839_v39 = vmul.f32 %v2838_v50, %v2838_v50  ;;  %v2816_v42 = vadd.f32 %v2815_v60, %v2814_v29 }
0x26ab   : > { %2850 = vrot.lane.b32.xlu1 %v2848_v16, %s4968_s2  ;;  %2841 = vrot.lane.b32.xlu0 %v2839_v39, %s4968_s2  ;;  %v2817_v47 = vrot.slane %v2816_v42, 1 }
0x26ad   : > { %v2818_v48 = vadd.f32 %v2817_v47, %v2816_v42 }
0x26af   : > { %v2819_v63 = vadd.f32 1e-08, %v2818_v48 }
0x271d   : > { %v2851_v17 = vpop.permute.xlu1 %2850  ;;  %v2842_v18 = vpop.permute.xlu0 %2841 }
0x271e   : > { %v2853_v11 = vsel %vm384_vm0, %v2851_v17, 0.0  ;;  %v2844_v32 = vsel %vm384_vm0, %v2842_v18, 0.0 }
0x271f   : > { %2854 = vadd.xlane.f32.xlu1 %v2853_v11  ;;  %2845 = vadd.xlane.f32.xlu0 %v2844_v32 }
0x27a8   : > { %v2855_v15 = vpop.xlane.xlu1 %2854  ;;  %v2846_v13 = vpop.xlane.xlu0 %2845 }
0x27a9   : > { %v2856_v34 = vadd.f32 %v2855_v15, %v2846_v13 }
0x27ab   : > { %v2857_v24 = vmul.f32 0.015625, %v2856_v34 }
0x27ad   : > { %v2858_v7 = vadd.f32 1e-05, %v2857_v24 }
0x27af   : > { %4695 = vrsqrt.f32 %v2858_v7 }
0x27bc   : > { %v4696_v40 = vpop.eup %4695 }
0x27bd   : > { %v2863_v28 = vmul.f32 %v4696_v40, %v2847_v61  ;;  %v2860_v56 = vmul.f32 %v4696_v40, %v2838_v50 }
0x27bf   : > { %v2864_v58 = vmul.f32 %v2863_v28, %v5512_v12  ;;  %v2861_v6 = vmul.f32 %v2860_v56, %v5514_v14 }
0x27c1   : > { %v2865_v59 = vadd.f32 %v2864_v58, %v5516_v20  ;;  %v5830_v26 = vadd.f32 %v2861_v6, %v5518_v22 }
0x27c3   : > { %2870 = vrot.lane.b32.xlu1 %v2865_v59, %s4968_s2  ;;  %2868 = vrot.lane.b32.xlu0 %v5830_v26, %s4968_s2 }
0x2835   : > { %v2871_v35 = vpop.permute.xlu1 %2870  ;;  %v2869_v49 = vpop.permute.xlu0 %2868 }
0x2836   : > { %4399 = vmatprep.mubr.msk.f32.mxu0 %vm384_vm0, %v2869_v49 }
0x2837   : > { %4400 = vmatmul.mubr.msk.f32.vlgmr.msra.gmra.mxu0 %vm384_vm0, %v2871_v35 }
0x2838   : > { %4403 = vmatpush3.msra.mxu0 %v5281_v46  ;;  %4418 = vmatprep.mubr.msk.f32.mxu0 %vm4966_vm1, %v4965_v38 }
0x2839   : > { %4404 = vmatprep.subr.mxu0 %v4965_v38 }
0x283a   : > { %4405 = vmatpush3.msra.mxu0 %v5279_v45 }
0x283b   : > { %4406 = vmatprep.subr.mxu0 %v4965_v38 }
0x283c   : > { %4407 = vmatpush3.msra.mxu0 %v5277_v44 }
0x283d   : > { %4408 = vmatprep.subr.mxu0 %v4965_v38 }
0x283e   : > { %4409 = vmatpush3.msra.mxu0 %v5275_v43 }
0x283f   : > { %4410 = vmatprep.subr.mxu0 %v4965_v38 }
0x2840   : > { %4411 = vmatpush3.msra.mxu0 %v5302_v55 }
0x2841   : > { %4412 = vmatprep.subr.mxu0 %v4965_v38 }
0x2842   : > { %4413 = vmatpush3.msra.mxu0 %v5300_v54 }
0x2843   : > { %4414 = vmatprep.subr.mxu0 %v4965_v38 }
0x2844   : > { %4415 = vmatpush3.msra.mxu0 %v5298_v52 }
0x2845   : > { %4416 = vmatprep.subr.mxu0 %v4965_v38 }
0x2846   : > { %4417 = vmatpush3.msra.mxu0 %v5296_v51 }
0x2847   : > { %4439 = vmatprep.subr.mxu0 %v4965_v38 }
0x28f7   : > { %v4401_v44 = vpop.f32.mrf.mxu0 }
0x28f8   : > { %v2951_v43 = vmul.f32 -2.0, %v4401_v44 }
0x28f9   : > { %v2942_v46 = vpop.f32.mrf.mxu0 }
0x28fa   : > { %v2952_v45 = vmul.f32 1.442695, %v2951_v43  ;;  %v2962_v14 = vmul.f32 %v2942_v46, %v2942_v46 }
0x28fc   : > { %4697 = vpow2.f32 %v2952_v45  ;;  %v4739_v45 = vld [vmem:[#allocation8 + $0xb8] sm:$0xff] }
0x28fd   : > { %4699 = vrcp.f32 %v2819_v63 }
0x2909   : > { %v4698_v55 = vpop.eup %4697 }
0x290a   : > { %v2954_v12 = vmul.f32 0.17677669, %v4698_v55  ;;  %v4700_v17 = vpop.eup %4699 }
0x290b   : > { %v2821_v32 = vmul.f32 %v4700_v17, %v5815_v36  ;;  %v4743_v17 = vld [vmem:[%s6015_s4] ss:$0 sm:$0xff] }
0x290c   : > { %v2955_v20 = vmul.f32 %v2954_v12, %v2942_v46  ;;  %v2963_v54 = vmul.f32 %v2962_v14, %v2954_v12 }
0x290e   : > { %v2956_v22 = vmul.f32 -2.0, %v2955_v20  ;;  %v2964_v31 = vsel %vm384_vm0, %v2963_v54, 0.0 }
0x290f   : > { %2965 = vadd.xlane.f32.xlu1 %v2964_v31 }
0x2910   : > { %2958 = vrot.lane.b32.xlu0 %v2956_v22, %s4964_s30 }
0x2982   : > { %v2959_v52 = vpop.permute.xlu0 %2958 }
0x2983   : > { %v2961_v51 = vsel %vm384_vm0, %v2954_v12, %v2959_v52 }
0x2984   : > { %4419 = vmatmul.mubr.msk.f32.vlgmr.msra.gmra.mxu0 %vm877_vm2, %v2961_v51 }
0x2985   : > { %4440 = vmatpush3.msra.mxu0 %v5687_v41  ;;  %4447 = vmatprep.mubr.msk.f32.mxu0 %vm4966_vm1, %v4965_v38  ;;  %v4731_v41 = vld [vmem:[#allocation10 + $0x38] sm:$0xff] }
0x2986   : > { %4441 = vmatprep.subr.mxu0 %v4965_v38 }
0x2987   : > { %4442 = vmatpush3.msra.mxu0 %v5693_v27  ;;  %v4732_v27 = vld [vmem:[#allocation10 + $0x30] sm:$0xff] }
0x2988   : > { %4443 = vmatprep.subr.mxu0 %v4965_v38 }
0x2989   : > { %4444 = vmatpush3.msra.mxu0 %v5697_v9  ;;  %v4733_v9 = vld [vmem:[#allocation10 + $0x28] sm:$0xff] }
0x298a   : > { %4445 = vmatprep.subr.mxu0 %v4965_v38 }
0x298b   : > { %4446 = vmatpush3.msra.mxu0 %v5701_v5  ;;  %v4734_v5 = vld [vmem:[#allocation10 + $0x20] sm:$0xff] }
0x298c   : > { %4448 = vmatmul.mubr.msk.f32.vlgmr.msra.gmra.mxu0 %vm384_vm0, %v2869_v49  ;;  %4461 = vmatprep.subr.mxu0 %v4965_v38 }
0x298d   : > { %4462 = vmatpush3.msra.mxu0 %v4731_v41  ;;  %4477 = vmatprep.mubr.msk.f32.mxu0 %vm4966_vm1, %v4965_v38 }
0x298e   : > { %4463 = vmatprep.subr.mxu0 %v4965_v38 }
0x298f   : > { %4464 = vmatpush3.msra.mxu0 %v4732_v27 }
0x2990   : > { %4465 = vmatprep.subr.mxu0 %v4965_v38 }
0x2991   : > { %4466 = vmatpush3.msra.mxu0 %v4733_v9 }
0x2992   : > { %4467 = vmatprep.subr.mxu0 %v4965_v38 }
0x2993   : > { %4468 = vmatpush3.msra.mxu0 %v4734_v5 }
0x2994   : > { %4469 = vmatprep.subr.mxu0 %v4965_v38 }
0x2995   : > { %4470 = vmatpush3.msra.mxu0 %v4735_v23 }
0x2996   : > { %4471 = vmatprep.subr.mxu0 %v4965_v38 }
0x2997   : > { %4472 = vmatpush3.msra.mxu0 %v4736_v3 }
0x2998   : > { %4473 = vmatprep.subr.mxu0 %v4965_v38  ;;  %v2966_v57 = vpop.xlane.xlu1 %2965 }
0x2999   : > { %4474 = vmatpush3.msra.mxu0 %v4737_v21 }
0x299a   : > { %4475 = vmatprep.subr.mxu0 %v4965_v38 }
0x299b   : > { %4476 = vmatpush3.msra.mxu0 %v4738_v33 }
0x299c   : > { %4499 = vmatprep.subr.mxu0 %v4965_v38 }
0x2a44   : > { %v3036_v25 = vpop.f32.mrf.mxu0 }
0x2a45   : > { %v3037_v4 = vadd.f32 %v3036_v25, %v2966_v57 }
0x2a46   : > { %v4420_v53 = vpop.f32.mrf.mxu0 }
0x2a47   : > { %v3040_v50 = vsub.f32 0.0, %v3037_v4 }
0x2a49   : > { %v3041_v61 = vmul.f32 1.442695, %v3040_v50 }
0x2a4b   : > { %4701 = vpow2.f32 %v3041_v61 }
0x2a4c   : > { %v3272_v16 = vpop.f32.mrf.mxu0 }
0x2a4d   : > { %v3273_v35 = vadd.f32 %v5729_v19, %v3272_v16 }
0x2a4e   : > { %v4449_v39 = vpop.f32.mrf.mxu0 }
0x2a58   : > { %v4702_v18 = vpop.eup %4701 }
0x2a59   : > { %v3043_v11 = vadd.f32 1e-08, %v4702_v18 }
0x2a5b   : > { %v3044_v15 = vmul.f32 %v3043_v11, %v2821_v32  ;;  %v3500_v32 = vld [vmem:[#allocation10 + $0xb8] sm:$0xff] }
0x2a5d   : > { %v3045_v13 = vsel %vm956_vm3, %v3044_v15, 0.0 }
0x2a5e   : > { %v3046_v34 = vrot.slane %v3045_v13, 4 }
0x2a60   : > { %v3047_v24 = vadd.f32 %v3046_v34, %v3045_v13  ;;  %v4744_v13 = vld [vmem:[#allocation7 + $0xc] ss:$0 sm:$0xff] }
0x2a62   : > { %v3048_v7 = vrot.slane %v3047_v24, 2 }
0x2a64   : > { %v3049_v40 = vadd.f32 %v3048_v7, %v3047_v24  ;;  %v3498_v7 = vld [vmem:[#allocation10 + $0xa8] sm:$0xff] }
0x2a66   : > { %v3050_v28 = vrot.slane %v3049_v40, 1 }
0x2a68   : > { %v3051_v56 = vadd.f32 %v3050_v28, %v3049_v40  ;;  %v3497_v40 = vld [vmem:[#allocation10 + $0xa0] sm:$0xff]  ;;  %v3496_v28 = vld [vmem:[#allocation10 + $0x98] sm:$0xff] }
0x2a6a   : > { %4703 = vrcp.f32 %v3051_v56  ;;  %v3495_v56 = vld [vmem:[#allocation10 + $0x90] sm:$0xff] }
0x2a77   : > { %v4704_v58 = vpop.eup %4703 }
0x2a78   : > { %v3053_v6 = vmul.f32 %v4704_v58, %v3044_v15  ;;  %v3499_v15 = vld [vmem:[#allocation10 + $0xb0] sm:$0xff]  ;;  %v3494_v58 = vld [vmem:[#allocation10 + $0x88] sm:$0xff] }
0x2a7a   : > { %v3054_v59 = vsel %vm956_vm3, %v3053_v6, 0.0 }
0x2a7b   : > { %3055 = vadd.xlane.f32.xlu0 %v3054_v59  ;;  %v3517_v59 = vld [vmem:[#allocation10 + $0x178] sm:$0xff] }
0x2a91   : > { %3284 = vrot.lane.b32.xlu0 %v3273_v35, %s4967_s17 }
0x2b04   : > { %v3056_v36 = vpop.xlane.xlu0 %3055 }
0x2b05   : > { %4705 = vrcp.f32 %v3056_v36 }
0x2b08   : > { %v3285_v52 = vpop.permute.xlu0 %3284 }
0x2b12   : > { %v4706_v49 = vpop.eup %4705 }
0x2b13   : > { %v5887_v44 = vmul.f32 %v4706_v49, %v3056_v36  ;;  %v3058_v43 = vmul.f32 %v4706_v49, %v3053_v6  ;;  %v3493_v6 = vld [vmem:[#allocation10 + $0x80] sm:$0xff]  ;;  %v3515_v36 = vld [vmem:[#allocation10 + $0x168] sm:$0xff] }
0x2b14   : > { %v3514_v49 = vld [vmem:[#allocation10 + $0x160] sm:$0xff] }
0x2b15   : > { %4426 = vmatmul.mubr.msk.f32.vlgmr.msra.gmra.mxu1 %vm956_vm3, %v3058_v43  ;;  %v3513_v43 = vld [vmem:[#allocation10 + $0x158] sm:$0xff] }
0x2b16   : > { %4429 = vmatpush3.msra.mxu1 %v5743_v62  ;;  %4436 = vmatprep.mubr.msk.f32.mxu1 %vm4966_vm1, %v4965_v38 }
0x2b17   : > { %4430 = vmatprep.subr.mxu1 %v4965_v38 }
0x2b18   : > { %4431 = vmatpush3.msra.mxu1 %v5749_v1  ;;  %v4740_v1 = vld [vmem:[#allocation8 + $0xb0] sm:$0xff] }
0x2b19   : > { %4432 = vmatprep.subr.mxu1 %v4965_v38 }
0x2b1a   : > { %4433 = vmatpush3.msra.mxu1 %v5753_v10  ;;  %v4741_v10 = vld [vmem:[#allocation8 + $0xa8] sm:$0xff] }
0x2b1b   : > { %4434 = vmatprep.subr.mxu1 %v4965_v38 }
0x2b1c   : > { %4435 = vmatpush3.msra.mxu1 %v5757_v2  ;;  %v4742_v2 = vld [vmem:[#allocation8 + $0xa0] sm:$0xff] }
0x2b1d   : > { %4450 = vmatprep.subr.mxu1 %v4965_v38 }
0x2bd5   : > { %v5900_v19 = vpop.f32.mrf.mxu1 }
0x2bd6   : > { %4437 = vmatmul.mubr.msk.f32.vlgmr.msra.gmra.mxu1 %vm384_vm0, %v5900_v19 }
0x2bd7   : > { %v4427_v62 = vpop.f32.mrf.mxu1  ;;  %4451 = vmatpush3.msra.mxu1 %v4739_v45  ;;  %4458 = vmatprep.mubr.msk.f32.mxu1 %vm4966_vm1, %v4965_v38 }
0x2bd8   : > { %4452 = vmatprep.subr.mxu1 %v4965_v38  ;;  %v3512_v62 = vld [vmem:[#allocation10 + $0x150] sm:$0xff] }
0x2bd9   : > { %4453 = vmatpush3.msra.mxu1 %v4740_v1 }
0x2bda   : > { %4454 = vmatprep.subr.mxu1 %v4965_v38 }
0x2bdb   : > { %4455 = vmatpush3.msra.mxu1 %v4741_v10  ;;  %v3511_v10 = vld [vmem:[#allocation10 + $0x148] sm:$0xff] }
0x2bdc   : > { %4456 = vmatprep.subr.mxu1 %v4965_v38 }
0x2bdd   : > { %4457 = vmatpush3.msra.mxu1 %v4742_v2 }
0x2bde   : > { %4480 = vmatprep.subr.mxu1 %v4965_v38 }
0x2c96   : > { %v3202_v46 = vpop.f32.mrf.mxu1 }
0x2c97   : > { %v3203_v55 = vadd.f32 %v5778_v30, %v3202_v46 }
0x2c98   : > { %v4438_v12 = vpop.f32.mrf.mxu1 }
0x2c99   : > { %v3276_v14 = vadd.f32 %v3273_v35, %v3203_v55  ;;  %v3516_v35 = vld [vmem:[#allocation10 + $0x170] sm:$0xff] }
0x2c9b   : > { %v3884_v20 = vmul.f32 -1.442695, %v3276_v14 }
0x2c9d   : > { %4707 = vpow2.f32 %v3884_v20 }
0x2caa   : > { %v4708_v54 = vpop.eup %4707 }
0x2cab   : > { %v3280_v22 = vadd.f32 1.0, %v4708_v54  ;;  %v3509_v54 = vld [vmem:[#allocation10 + $0x138] sm:$0xff] }
0x2cad   : > { %4709 = vrcp.f32 %v3280_v22 }
0x2cba   : > { %v4710_v31 = vpop.eup %4709 }
0x2cbb   : > { %v3287_v51 = vmul.f32 %v4710_v31, %v3285_v52  ;;  %v3294_v5 = vsub.f32 1.0, %v4710_v31  ;;  %v3300_v23 = vmul.f32 %v4710_v31, %v5830_v26  ;;  %v3508_v52 = vld [vmem:[#allocation10 + $0x130] sm:$0xff] }
0x2cbd   : > { %3289 = vrot.lane.b32.xlu1 %v3287_v51, %s4967_s17 }
0x2d2f   : > { %v3290_v41 = vpop.permute.xlu1 %3289 }
0x2d30   : > { %v3292_v27 = vadd.f32 %v3290_v41, %v3203_v55  ;;  %v3510_v55 = vld [vmem:[#allocation10 + $0x140] sm:$0xff]  ;;  %v3507_v41 = vld [vmem:[#allocation10 + $0x128] sm:$0xff] }
0x2d32   : > { %4711 = vtanh.f32 %v3292_v27  ;;  %v3506_v27 = vld [vmem:[#allocation10 + $0x120] sm:$0xff] }
0x2d3f   : > { %v4712_v9 = vpop.eup %4711 }
0x2d40   : > { %3296 = vrot.lane.b32.xlu1 %v4712_v9, %s4968_s2  ;;  %v3505_v9 = vld [vmem:[#allocation10 + $0x118] sm:$0xff] }
0x2db2   : > { %v3297_v30 = vpop.permute.xlu1 %3296 }
0x2db3   : > { %v3299_v3 = vmul.f32 %v3297_v30, %v3294_v5 }
0x2db5   : > { %v5914_v21 = vadd.f32 %v3300_v23, %v3299_v3  ;;  %v3504_v3 = vld [vmem:[#allocation10 + $0x110] sm:$0xff] }
0x2db7   : > { %3303 = vrot.lane.b32.xlu0 %v5914_v21, %s4968_s2 }
0x2e29   : > { %v3304_v33 = vpop.permute.xlu0 %3303 }
0x2e2a   : > { %v3306_v37 = vsel %vm384_vm0, %v3304_v33, 0.0  ;;  %v3502_v33 = vld [vmem:[#allocation10 + $0x100] sm:$0xff] }
0x2e2b   : > { %3307 = vadd.xlane.f32.xlu1 %v3306_v37  ;;  %v3887_v37 = vld [vmem:[%s6015_s4 + $0x1] ss:$0 sm:$0xff] }
0x2eb4   : > { %v3308_v29 = vpop.xlane.xlu1 %3307 }
0x2eb5   : > { %v3309_v60 = vmul.f32 0.03125, %v3308_v29 }
0x2eb7   : > { %v3310_v42 = vsub.f32 %v5914_v21, %v3309_v60 }
0x2eb9   : > { %v3311_v47 = vmul.f32 %v3310_v42, %v3310_v42 }
0x2ebb   : > { %3313 = vrot.lane.b32.xlu0 %v3311_v47, %s4968_s2 }
0x2f2d   : > { %v3314_v48 = vpop.permute.xlu0 %3313 }
0x2f2e   : > { %v3316_v26 = vsel %vm384_vm0, %v3314_v48, 0.0  ;;  %v3889_v48 = vld [vmem:[#allocation7 + $0xd] ss:$0 sm:$0xff] }
0x2f2f   : > { %3317 = vadd.xlane.f32.xlu0 %v3316_v26 }
0x2fb8   : > { %v3318_v57 = vpop.xlane.xlu0 %3317 }
0x2fb9   : > { %v3319_v25 = vmul.f32 0.03125, %v3318_v57 }
0x2fbb   : > { %v3320_v63 = vadd.f32 1e-05, %v3319_v25 }
0x2fbd   : > { %4713 = vrsqrt.f32 %v3320_v63 }
0x2fca   : > { %v4714_v4 = vpop.eup %4713 }
0x2fcb   : > { %v3322_v53 = vmul.f32 %v4714_v4, %v3310_v42 }
0x2fcd   : > { %v3323_v50 = vmul.f32 %v3322_v53, %v5429_v0 }
0x2fcf   : > { %v3324_v61 = vadd.f32 %v3323_v50, %v5440_v8 }
0x2fd1   : > { %3326 = vrot.lane.b32.xlu1 %v3324_v61, %s4968_s2 }
0x2fd5   : > { %3480 = vrot.lane.b32.xlu1 %v5900_v19, %s4964_s30 }
0x3043   : > { %v3327_v16 = vpop.permute.xlu1 %3326 }
0x3044   : > { %4459 = vmatmul.mubr.msk.f32.vlgmr.msra.gmra.mxu1 %vm384_vm0, %v3327_v16 }
0x3045   : > { %4496 = vmatprep.mubr.msk.f32.mxu1 %vm4966_vm1, %v4965_v38  ;;  %4481 = vmatpush3.msra.mxu1 %v3500_v32 }
0x3046   : > { %4482 = vmatprep.subr.mxu1 %v4965_v38 }
0x3047   : > { %4483 = vmatpush3.msra.mxu1 %v3499_v15  ;;  %v3481_v12 = vpop.permute.xlu1 %3480 }
0x3048   : > { %4484 = vmatprep.subr.mxu1 %v4965_v38 }
0x3049   : > { %4485 = vmatpush3.msra.mxu1 %v3498_v7 }
0x304a   : > { %4486 = vmatprep.subr.mxu1 %v4965_v38 }
0x304b   : > { %4487 = vmatpush3.msra.mxu1 %v3497_v40 }
0x304c   : > { %4488 = vmatprep.subr.mxu1 %v4965_v38 }
0x304d   : > { %4489 = vmatpush3.msra.mxu1 %v3496_v28 }
0x304e   : > { %4490 = vmatprep.subr.mxu1 %v4965_v38 }
0x304f   : > { %4491 = vmatpush3.msra.mxu1 %v3495_v56 }
0x3050   : > { %4492 = vmatprep.subr.mxu1 %v4965_v38 }
0x3051   : > { %4493 = vmatpush3.msra.mxu1 %v3494_v58 }
0x3052   : > { %4494 = vmatprep.subr.mxu1 %v4965_v38 }
0x3053   : > { %4495 = vmatpush3.msra.mxu1 %v3493_v6 }
0x3104   : > { %v3396_v39 = vpop.f32.mrf.mxu1 }
0x3105   : > { %v3397_v18 = vadd.f32 %v4743_v17, %v3396_v39 }
0x3106   : > { %v4460_v0 = vpop.f32.mrf.mxu1 }
0x3107   : > { %v3400_v11 = vmax.f32 %v3397_v18, 0.0 }
0x3109   : > { %4478 = vmatmul.mubr.msk.f32.vlgmr.msra.gmra.mxu0 %vm877_vm2, %v3400_v11 }
0x310a   : > { %4531 = vmatprep.mubr.msk.f32.mxu0 %vm4966_vm1, %v4965_v38  ;;  %4500 = vmatpush3.msra.mxu0 %v3517_v59 }
0x310b   : > { %4501 = vmatprep.subr.mxu0 %v4965_v38 }
0x310c   : > { %4502 = vmatpush3.msra.mxu0 %v3516_v35 }
0x310d   : > { %4503 = vmatprep.subr.mxu0 %v4965_v38 }
0x310e   : > { %4504 = vmatpush3.msra.mxu0 %v3515_v36 }
0x310f   : > { %4505 = vmatprep.subr.mxu0 %v4965_v38 }
0x3110   : > { %4506 = vmatpush3.msra.mxu0 %v3514_v49 }
0x3111   : > { %4507 = vmatprep.subr.mxu0 %v4965_v38 }
0x3112   : > { %4508 = vmatpush3.msra.mxu0 %v3513_v43 }
0x3113   : > { %4509 = vmatprep.subr.mxu0 %v4965_v38 }
0x3114   : > { %4510 = vmatpush3.msra.mxu0 %v3512_v62 }
0x3115   : > { %4511 = vmatprep.subr.mxu0 %v4965_v38 }
0x3116   : > { %4512 = vmatpush3.msra.mxu0 %v3511_v10 }
0x3117   : > { %4513 = vmatprep.subr.mxu0 %v4965_v38 }
0x3118   : > { %4514 = vmatpush3.msra.mxu0 %v3510_v55 }
0x3119   : > { %4515 = vmatprep.subr.mxu0 %v4965_v38 }
0x311a   : > { %4516 = vmatpush3.msra.mxu0 %v3509_v54 }
0x311b   : > { %4517 = vmatprep.subr.mxu0 %v4965_v38 }
0x311c   : > { %4518 = vmatpush3.msra.mxu0 %v3508_v52 }
0x311d   : > { %4519 = vmatprep.subr.mxu0 %v4965_v38 }
0x311e   : > { %4520 = vmatpush3.msra.mxu0 %v3507_v41 }
0x311f   : > { %4521 = vmatprep.subr.mxu0 %v4965_v38 }
0x3120   : > { %4522 = vmatpush3.msra.mxu0 %v3506_v27 }
0x3121   : > { %4523 = vmatprep.subr.mxu0 %v4965_v38 }
0x3122   : > { %4524 = vmatpush3.msra.mxu0 %v3505_v9 }
0x3123   : > { %4525 = vmatprep.subr.mxu0 %v4965_v38 }
0x3124   : > { %4526 = vmatpush3.msra.mxu0 %v3504_v3 }
0x3125   : > { %4527 = vmatprep.subr.mxu0 %v4965_v38 }
0x31c9   : > { %v3470_v8 = vpop.f32.mrf.mxu0 }
0x31ca   : > { %v3471_v34 = vadd.f32 %v4744_v13, %v3470_v8 }
0x31cb   : > { %v4479_v24 = vpop.f32.mrf.mxu0 }
0x31cc   : > { %3475 = vrot.lane.b32.xlu0 %v3471_v34, %s4964_s30  ;;  %s379_s30 = scalar_lea.vmem [#allocation11], %s3831_s23 }
0x31cd   : > { %s3692_s5 = sshll.u32 %s379_s30, 4  ;;  %s3693_s5 = int_to_ptr.vmem [resolvable:$true] %s3692_s5 }
0x31ce   : > { %p4886_p10 = scmp.lt.s32.totalorder %s3693_s5, %s4884_s21 }
0x323e   : > { %v3476_v45 = vpop.permute.xlu0 %3475 }
0x323f   : > { %v3478_v1 = vadd.f32 %v3476_v45, %v5914_v21  ;;  %v3503_v21 = vld [vmem:[#allocation10 + $0x108] sm:$0xff] }
0x3240   : > { %4528 = vmatpush3.msra.mxu0 %v3503_v21 }
0x3241   : > { %v3479_v2 = vmul.f32 2.0, %v3478_v1  ;;  %v3485_v46 = vmul.f32 %v3478_v1, %v3478_v1  ;;  %3521 = vrot.lane.b32.xlu1 %v3478_v1, %s4968_s2  ;;  %4529 = vmatprep.subr.mxu0 %v4965_v38  ;;  %s4879_s2 = scalar_lea.vmem %s3693_s5, 128 }
0x3242   : > { %4530 = vmatpush3.msra.mxu0 %v3502_v33  ;;  %p4880_p9 = scmp.ne.s32.totalorder %s3693_s5, %s4879_s2  ;;  %p4887_p1 = scmp.lt.s32.totalorder %s4885_s22, %s4879_s2 }
0x3243   : > { %v3483_v14 = vmul.f32 %v3481_v12, %v3479_v2  ;;  %v3486_v20 = vadd.f32 1e-08, %v3485_v46 }
0x3244   : > { %p4881_p0 = pnand %p4880_p9, %p6050_p13  ;;  %p4888_p4 = por %p4887_p1, %p4886_p10 }
0x3245   : > { %v3484_v22 = vsub.f32 %v5900_v19, %v3483_v14  ;;  %v3487_v31 = vmul.f32 %v3486_v20, %v5887_v44 }
0x3246   : > { %p4882_p2 = pneg %p4881_p0 }
0x3247   : > { %v3488_v51 = vadd.f32 %v3487_v31, %v3484_v22 }
0x3248   : > { %p4889_p6 = pnand %p4888_p4, %p4882_p2 }
0x3249   : > { %4715 = vlog2.f32 %v3488_v51 }
0x3256   : > { %v4716_v44 = vpop.eup %4715 }
0x3257   : > { %v3490_v19 = vmul.f32 0.6931472, %v4716_v44 }
0x3259   : > { %v3491_v5 = vmul.f32 0.5, %v3490_v19 }
0x32b3   : > { %v3522_v30 = vpop.permute.xlu1 %3521 }
0x32b4   : > { %v3524_v23 = vsel %vm384_vm0, %v3522_v30, %v3491_v5 }
0x32b5   : > { %4497 = vmatmul.mubr.msk.f32.vlgmr.msra.gmra.mxu1 %vm877_vm2, %v3524_v23 }
0x3375   : > { %v3598_v29 = vpop.f32.mrf.mxu1 }
0x3376   : > { %v3599_v60 = vadd.f32 %v3887_v37, %v3598_v29 }
0x3377   : > { %v4498_v42 = vpop.f32.mrf.mxu1 }
0x3378   : > { %v3602_v47 = vmax.f32 %v3599_v60, 0.0 }
0x337a   : > { %4532 = vmatmul.mubr.f32.vlgmr.msra.gmra.mxu0 %v3602_v47 }
0x343a   : > { %v3673_v26 = vpop.f32.mrf.mxu0 }
0x343b   : > { %v3674_v57 = vadd.f32 %v3889_v48, %v3673_v26 }
0x343c   : > { %v4533_v38 = vpop.f32.mrf.mxu0 }
0x343d   : > { %3677 = vst.msk [vmem:[%s379_s30] sm:$0xff] %vm384_vm0, %v3674_v57 }
0x343e   : > { %4892 = shalt.err (!%p4889_p6)
}
0x343f   : > { %s4893_s16 = scalar_lea.hbm %s5973_s11, 128  ;;  %s4897_s13 = scalar_lea.hbm %s6018_s7, 256 }
0x3440   : > { %p4894_p7 = scmp.ne.s32.totalorder %s5973_s11, %s4893_s16  ;;  %p4898_p11 = scmp.lt.s32.totalorder %s5973_s11, %s6018_s7 }
0x3441   : > { %p4899_p3 = scmp.lt.s32.totalorder %s4897_s13, %s4893_s16 }
0x3442   : > { %p4895_p5 = pnand %p4894_p7, %p6050_p13 }
0x3443   : > { %p4900_p12 = por %p4899_p3, %p4898_p11 }
0x3444   : > { %p4896_p8 = pneg %p4895_p5 }
0x3446   : > { %p4901_p9 = pnand %p4900_p12, %p4896_p8 }
0x3448   : > { %4904 = shalt.err (!%p4901_p9)
}
0x3449   : > { %4550 = dma.vmem_to_hbm [thread:$0]  (%p6050_p13), %s3693_s5, 128, %s5973_s11, %s3679_s18  }
0x344a PF: > { %s3704_s19 = sand.u32 1, %s4943_s24   ;;  %p6051_p0 = scmp.ne.s32.totalorder %s6033_s8, 0 }
0x344b   : > { %p6052_p2 = scmp.ge.s32.totalorder %s4955_s27, 2  ;;  %s3705_s15 = scalar_lea.sflag [#allocation4], %s3704_s19 }
0x344d   : > { %p4570_p10 = pnand %p6052_p2, %p6051_p0 }
0x344f   : > { %p4571_p1 = pneg %p4570_p10 }
0x3451   : > { %4938 = dma.done.wait (%p4571_p1), %s3705_s15, 128  }
0x3452   : > { %4940 = vsyncadd (%p4571_p1), %s3705_s15, 4294967168  ;;  %s6053_s12 = sld [smem:[#allocation17_spill]]  ;;  %p24_p4 = scmp.ge.s32.totalorder %s5099_s14, 4  }
0x3453   : > { %s6054_s26 = sld [smem:[#allocation18_spill]]  ;;  %s6055_s24 = smov %s4947_s25 }
0x3454   : > { %s6057_s27 = smov %s5099_s14  ;;  %26 = sbr.rel (!%p24_p4) target bundleno = 13 (0xd), region = 126 }
0x3458   : > { %s6056_s25 = smov %s6053_s12 }
0x3459   :  { %3710 = vsyncpa [#allocation3], 1 }
0x345a   :  { %3712 = vsyncpa [#allocation3 + $0x1], 1 }
0x345b   :  { %3713 = vsyncpa [#allocation6], 1 }
0x345c   :  { %3715 = vsyncpa [#allocation6 + $0x1], 1 }
0x345d   :  { %3716 = vsyncpa [#allocation9], 1 }
0x345e   :  { %3717 = vsyncpa [#allocation4], 1 }
0x345f   :  { %3719 = vsyncpa [#allocation4 + $0x1], 1 }

</bundles_post_ra>
